<compile_context>
chip_gen: v7x
topology: tpu7x:2x2x1
jax: 0.10.0
libtpu: 0.0.40
codegen_flags: <defaults>
</compile_context>

<pallas_src>
import jax
import jax.numpy as jnp
from jax.experimental import pallas as pl
from jax.experimental.pallas import tpu as pltpu

BN_EPS = 1e-5
LANES = 128


def _round_up(n, m):
    return (n + m - 1) // m * m


# ------------------------------ kernel helpers ------------------------------ #

def _store_padded(p_ref, z, h, w, c):
    """Write z (h, w, c) into the interior of a (h+2, w+2, c) padded scratch.
    Only the four 1-pixel halo strips are zeroed (re-done every grid step so the
    kernel stays correct when the batch axis is sharded across TensorCores)."""
    zero_row = jnp.zeros((1, w + 2, c), p_ref.dtype)
    zero_col = jnp.zeros((h, 1, c), p_ref.dtype)
    p_ref[0:1, :, :] = zero_row
    p_ref[h + 1:h + 2, :, :] = zero_row
    p_ref[1:h + 1, 0:1, :] = zero_col
    p_ref[1:h + 1, w + 1:w + 2, :] = zero_col
    p_ref[1:h + 1, 1:w + 1, :] = z


def _im2col_3x3(p_ref, ho, wo, c, stride):
    """Gather the 9 (optionally strided) 3x3 taps from a padded (H+2, W+2, c)
    scratch into one (ho*wo, 9*c) bf16 im2col matrix -> one big-K MXU matmul."""
    cols = []
    for ky in range(3):
        for kx in range(3):
            if stride == 1:
                patch = p_ref[ky:ky + ho, kx:kx + wo, :]
            else:
                patch = p_ref[pl.ds(ky, ho, stride=stride),
                              pl.ds(kx, wo, stride=stride), :]
            cols.append(patch.reshape(ho * wo, c).astype(jnp.bfloat16))
    return jnp.concatenate(cols, axis=1)


def _make_wide_basic_kernel(H, W, Ho, Wo, Cip, Cop, stride, conv_shortcut):
    def kernel(x_ref, s1_ref, t1_ref, w1_ref, s2_ref, t2_ref, w2_ref, b_ref,
               *rest):
        if conv_shortcut:
            wsc_ref, o_ref, p1_ref, p2_ref = rest
        else:
            o_ref, p1_ref, p2_ref = rest

        # --- bn1 (eval affine) + relu, f32 on the VPU ---
        x = x_ref[0]                                        # (H, W, Cip) f32
        z1 = jnp.maximum(x * s1_ref[...] + t1_ref[...], 0.0)
        _store_padded(p1_ref, z1, H, W, Cip)

        # --- conv1: 3x3, pad=1 -> single bf16 im2col matmul, f32 accumulation ---
        col1 = _im2col_3x3(p1_ref, H, W, Cip, 1)            # (H*W, 9*Cip) bf16
        y1 = jnp.dot(col1, w1_ref[...], preferred_element_type=jnp.float32)

        # TODO(synk): nn.Dropout treated as inference identity; training-mode
        # random masking / 1/(1-p) scaling is not implemented.

        # --- bn2 + relu (conv1 bias pre-folded into t2 by the wrapper) ---
        z2 = jnp.maximum(y1 * s2_ref[...] + t2_ref[...], 0.0).reshape(H, W, Cop)
        _store_padded(p2_ref, z2, H, W, Cop)

        # --- conv2: 3x3, pad=1, stride applied in-kernel: only strided output
        #     positions are gathered / multiplied (no wasted MXU work/writeback) ---
        col2 = _im2col_3x3(p2_ref, Ho, Wo, Cop, stride)     # (Ho*Wo, 9*Cop) bf16
        y2 = jnp.dot(col2, w2_ref[...], preferred_element_type=jnp.float32)

        # --- fused epilogue: shortcut branch + (b2 [+ shortcut bias]) ---
        if conv_shortcut:
            if stride == 1:
                xs = x_ref[...]
            else:
                xs = x_ref[:, pl.ds(0, Ho, stride=stride),
                           pl.ds(0, Wo, stride=stride), :]
            xs = xs.reshape(Ho * Wo, Cip).astype(jnp.bfloat16)
            sc = jnp.dot(xs, wsc_ref[...], preferred_element_type=jnp.float32)
        else:
            sc = x.reshape(Ho * Wo, Cop)                    # identity shortcut (f32)

        out = y2 + sc + b_ref[...]
        o_ref[...] = out.reshape(1, Ho, Wo, Cop)

    return kernel


def _const_spec(shape):
    zeros = (0,) * len(shape)
    return pl.BlockSpec(shape, lambda n, _z=zeros: _z)


# ------------------------------ Python wrapper ------------------------------ #

def wide_basic_forward(x_nchw, params, stride):
    planes, in_planes = params['conv1_w'].shape[0], params['conv1_w'].shape[1]
    N, _, H, W = x_nchw.shape
    Ho = (H - 1) // stride + 1
    Wo = (W - 1) // stride + 1
    Cip = _round_up(in_planes, LANES)
    Cop = _round_up(planes, LANES)
    conv_shortcut = (stride != 1) or (in_planes != planes)
    f32, bf16 = jnp.float32, jnp.bfloat16

    # NCHW -> NHWC, zero-pad channels to a 128-lane multiple.
    x = jnp.transpose(x_nchw, (0, 2, 3, 1)).astype(f32)
    x = jnp.pad(x, ((0, 0), (0, 0), (0, 0), (0, Cip - in_planes)))

    def bn_affine(g, b, m, v, cpad, extra_shift=None):
        s = (g * jax.lax.rsqrt(v + BN_EPS)).astype(f32)
        t = (b - m * s).astype(f32)
        if extra_shift is not None:              # fold preceding conv bias: bn(y+b1)
            t = t + s * extra_shift.astype(f32)
        s = jnp.pad(s, (0, cpad - s.shape[0])).reshape(1, cpad)
        t = jnp.pad(t, (0, cpad - t.shape[0])).reshape(1, cpad)
        return s, t

    s1, t1 = bn_affine(params['bn1_g'], params['bn1_b'],
                       params['bn1_m'], params['bn1_v'], Cip)
    s2, t2 = bn_affine(params['bn2_g'], params['bn2_b'],
                       params['bn2_m'], params['bn2_v'], Cop,
                       extra_shift=params['conv1_b'])

    def conv_w(w_oihw, cin_p, cout_p):
        # (Cout, Cin, kh, kw) -> (kh, kw, Cin, Cout) -> zero-pad -> (9*Cin_p, Cout_p)
        w = jnp.transpose(w_oihw, (2, 3, 1, 0)).astype(f32)
        kh, kw, ci, co = w.shape
        w = jnp.pad(w, ((0, 0), (0, 0), (0, cin_p - ci), (0, cout_p - co)))
        return w.reshape(kh * kw * cin_p, cout_p).astype(bf16)

    w1 = conv_w(params['conv1_w'], Cip, Cop)
    w2 = conv_w(params['conv2_w'], Cop, Cop)

    bias = params['conv2_b'].astype(f32)
    if conv_shortcut:
        bias = bias + params['sc_b'].astype(f32)
    bias = jnp.pad(bias, (0, Cop - planes)).reshape(1, Cop)

    inputs = [x, s1, t1, w1, s2, t2, w2, bias]
    in_specs = [
        pl.BlockSpec((1, H, W, Cip), lambda n: (n, 0, 0, 0)),
        _const_spec((1, Cip)), _const_spec((1, Cip)),
        _const_spec((9 * Cip, Cop)),
        _const_spec((1, Cop)), _const_spec((1, Cop)),
        _const_spec((9 * Cop, Cop)),
        _const_spec((1, Cop)),
    ]
    if conv_shortcut:
        wsc = jnp.transpose(params['sc_w'].reshape(planes, in_planes), (1, 0))
        wsc = jnp.pad(wsc.astype(f32),
                      ((0, Cip - in_planes), (0, Cop - planes))).astype(bf16)
        inputs.append(wsc)
        in_specs.append(_const_spec((Cip, Cop)))

    kernel = _make_wide_basic_kernel(H, W, Ho, Wo, Cip, Cop, stride, conv_shortcut)

    out = pl.pallas_call(
        kernel,
        grid=(N,),                                  # pipelined over batch images
        out_shape=jax.ShapeDtypeStruct((N, Ho, Wo, Cop), f32),
        in_specs=in_specs,
        out_specs=pl.BlockSpec((1, Ho, Wo, Cop), lambda n: (n, 0, 0, 0)),
        scratch_shapes=[pltpu.VMEM((H + 2, W + 2, Cip), f32),   # padded relu(bn1(x))
                        pltpu.VMEM((H + 2, W + 2, Cop), f32)],  # padded relu(bn2(.))
        compiler_params=pltpu.CompilerParams(
            # batch axis is independent -> shard across TensorCores on multi-TC chips
            dimension_semantics=("parallel",),
            # explicit VMEM budget; raise / re-tile per generation for real WRN widths
            vmem_limit_bytes=32 * 1024 * 1024),
    )(*inputs)

    out = out[..., :planes]                         # drop lane padding
    return jnp.transpose(out, (0, 3, 1, 2))         # NHWC -> NCHW


# --------------------------- plain-JAX references ---------------------------- #

def reference_forward(x_nchw, params, stride, conv_dtype=jnp.float32):
    """Reference.  conv_dtype=bf16 reproduces the kernel's quantization points
    (bf16 MXU operands, f32 accumulation) for a tight numerics check."""
    x = jnp.transpose(x_nchw, (0, 2, 3, 1)).astype(jnp.float32)
    in_planes = params['conv1_w'].shape[1]
    planes = params['conv1_w'].shape[0]

    def bn(v, g, b, m, var):
        return (v - m) * g * jax.lax.rsqrt(var + BN_EPS) + b

    def conv(v, w_oihw, b, s, pad):
        w = jnp.transpose(w_oihw, (2, 3, 1, 0))
        o = jax.lax.conv_general_dilated(
            v.astype(conv_dtype), w.astype(conv_dtype),
            window_strides=(s, s), padding=pad,
            dimension_numbers=('NHWC', 'HWIO', 'NHWC'),
            preferred_element_type=jnp.float32)
        return o + b.reshape(1, 1, 1, -1).astype(jnp.float32)

    h = jnp.maximum(bn(x, params['bn1_g'], params['bn1_b'],
                       params['bn1_m'], params['bn1_v']), 0.0)
    h = conv(h, params['conv1_w'], params['conv1_b'], 1, [(1, 1), (1, 1)])
    h = jnp.maximum(bn(h, params['bn2_g'], params['bn2_b'],
                       params['bn2_m'], params['bn2_v']), 0.0)
    h = conv(h, params['conv2_w'], params['conv2_b'], stride, [(1, 1), (1, 1)])
    if stride != 1 or in_planes != planes:
        sc = conv(x, params['sc_w'], params['sc_b'], stride, [(0, 0), (0, 0)])
    else:
        sc = x
    return jnp.transpose(h + sc, (0, 3, 1, 2))


def init_params(key, in_planes, planes):
    ks = jax.random.split(key, 14)
    f = jnp.float32
    return {
        'bn1_g': jax.random.uniform(ks[0], (in_planes,), f, 0.5, 1.5),
        'bn1_b': 0.1 * jax.random.normal(ks[1], (in_planes,), f),
        'bn1_m': 0.1 * jax.random.normal(ks[2], (in_planes,), f),
        'bn1_v': jax.random.uniform(ks[3], (in_planes,), f, 0.5, 1.5),
        'conv1_w': 0.2 * jax.random.normal(ks[4], (planes, in_planes, 3, 3), f),
        'conv1_b': 0.1 * jax.random.normal(ks[5], (planes,), f),
        'bn2_g': jax.random.uniform(ks[6], (planes,), f, 0.5, 1.5),
        'bn2_b': 0.1 * jax.random.normal(ks[7], (planes,), f),
        'bn2_m': 0.1 * jax.random.normal(ks[8], (planes,), f),
        'bn2_v': jax.random.uniform(ks[9], (planes,), f, 0.5, 1.5),
        'conv2_w': 0.2 * jax.random.normal(ks[10], (planes, planes, 3, 3), f),
        'conv2_b': 0.1 * jax.random.normal(ks[11], (planes,), f),
        'sc_w': 0.2 * jax.random.normal(ks[12], (planes, in_planes, 1, 1), f),
        'sc_b': 0.1 * jax.random.normal(ks[13], (planes,), f),
    }


if __name__ == "__main__":
    key = jax.random.PRNGKey(0)
    kx, kp, kx2, kp2 = jax.random.split(key, 4)

    # --- Case 1: projection shortcut (stride 2, channel expansion) ---
    N, in_planes, planes, H, W, stride = 2, 4, 8, 16, 16, 2
    x = jax.random.normal(kx, (N, in_planes, H, W), jnp.float32)
    params = init_params(kp, in_planes, planes)

    out = jax.block_until_ready(wide_basic_forward(x, params, stride))
    ref_f32 = reference_forward(x, params, stride)
    ref_bf16 = reference_forward(x, params, stride, conv_dtype=jnp.bfloat16)
    assert out.shape == ref_f32.shape == (N, planes, H // stride, W // stride), out.shape
    err_matched = float(jnp.max(jnp.abs(out - ref_bf16)))   # matched bf16-MXU numerics
    err_f32 = float(jnp.max(jnp.abs(out - ref_f32)))        # vs pure-f32 semantics
    assert err_matched < 2e-2, f"matched-precision error too large: {err_matched}"
    assert err_f32 < 1e-1, f"f32-reference error too large: {err_f32}"

    # --- Case 2: identity shortcut (stride 1, equal channels) ---
    N2, planes2, H2, W2 = 2, 8, 8, 8
    x2 = jax.random.normal(kx2, (N2, planes2, H2, W2), jnp.float32)
    params2 = init_params(kp2, planes2, planes2)
    out2 = jax.block_until_ready(wide_basic_forward(x2, params2, 1))
    ref2_bf16 = reference_forward(x2, params2, 1, conv_dtype=jnp.bfloat16)
    ref2_f32 = reference_forward(x2, params2, 1)
    assert out2.shape == (N2, planes2, H2, W2), out2.shape
    err2_matched = float(jnp.max(jnp.abs(out2 - ref2_bf16)))
    err2_f32 = float(jnp.max(jnp.abs(out2 - ref2_f32)))
    assert err2_matched < 2e-2, f"identity-path matched error too large: {err2_matched}"
    assert err2_f32 < 1e-1, f"identity-path f32 error too large: {err2_f32}"

    print("KERNEL_OK")
</pallas_src>

<mosaic_0001>
module attributes {stable_mosaic.version = 11 : i64} {
  func.func @kernel(%arg0: i32, %arg1: memref<1x16x16x128xf32, #tpu.memory_space<vmem>>, %arg2: memref<1x128xf32, #tpu.memory_space<vmem>>, %arg3: memref<1x128xf32, #tpu.memory_space<vmem>>, %arg4: memref<1152x128xbf16, #tpu.memory_space<vmem>>, %arg5: memref<1x128xf32, #tpu.memory_space<vmem>>, %arg6: memref<1x128xf32, #tpu.memory_space<vmem>>, %arg7: memref<1152x128xbf16, #tpu.memory_space<vmem>>, %arg8: memref<1x128xf32, #tpu.memory_space<vmem>>, %arg9: memref<128x128xbf16, #tpu.memory_space<vmem>>, %arg10: memref<1x8x8x128xf32, #tpu.memory_space<vmem>>, %arg11: memref<18x18x128xf32, #tpu.memory_space<vmem>>, %arg12: memref<18x18x128xf32, #tpu.memory_space<vmem>>) attributes {dimension_semantics = [#tpu.dimension_semantics<parallel>], iteration_bounds = array<i64: 2>, scalar_prefetch = 0 : i64, scratch_operands = 2 : i64, tpu.core_type = #tpu.core_type<tc>, window_params = [{transform_indices = @transform_0, window_bounds = array<i64: 1, 16, 16, 128>}, {pipeline_mode = #tpu.pipeline_mode<synchronous>, transform_indices = @transform_1, window_bounds = array<i64: 1, 128>}, {pipeline_mode = #tpu.pipeline_mode<synchronous>, transform_indices = @transform_2, window_bounds = array<i64: 1, 128>}, {pipeline_mode = #tpu.pipeline_mode<synchronous>, transform_indices = @transform_3, window_bounds = array<i64: 1152, 128>}, {pipeline_mode = #tpu.pipeline_mode<synchronous>, transform_indices = @transform_4, window_bounds = array<i64: 1, 128>}, {pipeline_mode = #tpu.pipeline_mode<synchronous>, transform_indices = @transform_5, window_bounds = array<i64: 1, 128>}, {pipeline_mode = #tpu.pipeline_mode<synchronous>, transform_indices = @transform_6, window_bounds = array<i64: 1152, 128>}, {pipeline_mode = #tpu.pipeline_mode<synchronous>, transform_indices = @transform_7, window_bounds = array<i64: 1, 128>}, {pipeline_mode = #tpu.pipeline_mode<synchronous>, transform_indices = @transform_8, window_bounds = array<i64: 128, 128>}, {transform_indices = @transform_9, window_bounds = array<i64: 1, 8, 8, 128>}]} {
    %c0 = arith.constant 0 : index
    %c0_0 = arith.constant 0 : index
    %c0_1 = arith.constant 0 : index
    %c0_2 = arith.constant 0 : index
    %0 = vector.load %arg1[%c0, %c0_0, %c0_1, %c0_2] : memref<1x16x16x128xf32, #tpu.memory_space<vmem>>, vector<1x16x16x128xf32>
    %1 = vector.shape_cast %0 : vector<1x16x16x128xf32> to vector<16x16x128xf32>
    %c0_3 = arith.constant 0 : index
    %c0_4 = arith.constant 0 : index
    %2 = vector.load %arg2[%c0_3, %c0_4] : memref<1x128xf32, #tpu.memory_space<vmem>>, vector<1x128xf32>
    %3 = vector.shape_cast %2 : vector<1x128xf32> to vector<1x1x128xf32>
    %4 = vector.broadcast %3 : vector<1x1x128xf32> to vector<16x16x128xf32>
    %5 = arith.mulf %1, %4 : vector<16x16x128xf32>
    %c0_5 = arith.constant 0 : index
    %c0_6 = arith.constant 0 : index
    %6 = vector.load %arg3[%c0_5, %c0_6] : memref<1x128xf32, #tpu.memory_space<vmem>>, vector<1x128xf32>
    %7 = vector.shape_cast %6 : vector<1x128xf32> to vector<1x1x128xf32>
    %8 = vector.broadcast %7 : vector<1x1x128xf32> to vector<16x16x128xf32>
    %9 = arith.addf %5, %8 : vector<16x16x128xf32>
    %cst = arith.constant 0.000000e+00 : f32
    %10 = vector.broadcast %cst : f32 to vector<16x16x128xf32>
    %11 = arith.maximumf %9, %10 : vector<16x16x128xf32>
    %cst_7 = arith.constant 0.000000e+00 : f32
    %12 = vector.broadcast %cst_7 : f32 to vector<1x18x128xf32>
    %cst_8 = arith.constant 0.000000e+00 : f32
    %13 = vector.broadcast %cst_8 : f32 to vector<16x1x128xf32>
    %c0_9 = arith.constant 0 : index
    %c0_10 = arith.constant 0 : index
    %c0_11 = arith.constant 0 : index
    %14 = vector.load %arg11[%c0_9, %c0_10, %c0_11] : memref<18x18x128xf32, #tpu.memory_space<vmem>>, vector<1x18x128xf32>
    tpu.vector_store %arg11[%c0_9, %c0_10, %c0_11], %12 {strides = array<i32>} : memref<18x18x128xf32, #tpu.memory_space<vmem>>, vector<1x18x128xf32>,
    %c17 = arith.constant 17 : index
    %c0_12 = arith.constant 0 : index
    %c0_13 = arith.constant 0 : index
    %15 = vector.load %arg11[%c17, %c0_12, %c0_13] : memref<18x18x128xf32, #tpu.memory_space<vmem>>, vector<1x18x128xf32>
    tpu.vector_store %arg11[%c17, %c0_12, %c0_13], %12 {strides = array<i32>} : memref<18x18x128xf32, #tpu.memory_space<vmem>>, vector<1x18x128xf32>,
    %c1 = arith.constant 1 : index
    %c0_14 = arith.constant 0 : index
    %c0_15 = arith.constant 0 : index
    %16 = vector.load %arg11[%c1, %c0_14, %c0_15] : memref<18x18x128xf32, #tpu.memory_space<vmem>>, vector<16x1x128xf32>
    tpu.vector_store %arg11[%c1, %c0_14, %c0_15], %13 {strides = array<i32>} : memref<18x18x128xf32, #tpu.memory_space<vmem>>, vector<16x1x128xf32>,
    %c1_16 = arith.constant 1 : index
    %c17_17 = arith.constant 17 : index
    %c0_18 = arith.constant 0 : index
    %17 = vector.load %arg11[%c1_16, %c17_17, %c0_18] : memref<18x18x128xf32, #tpu.memory_space<vmem>>, vector<16x1x128xf32>
    tpu.vector_store %arg11[%c1_16, %c17_17, %c0_18], %13 {strides = array<i32>} : memref<18x18x128xf32, #tpu.memory_space<vmem>>, vector<16x1x128xf32>,
    %c1_19 = arith.constant 1 : index
    %c1_20 = arith.constant 1 : index
    %c0_21 = arith.constant 0 : index
    %18 = vector.load %arg11[%c1_19, %c1_20, %c0_21] : memref<18x18x128xf32, #tpu.memory_space<vmem>>, vector<16x16x128xf32>
    tpu.vector_store %arg11[%c1_19, %c1_20, %c0_21], %11 {strides = array<i32>} : memref<18x18x128xf32, #tpu.memory_space<vmem>>, vector<16x16x128xf32>,
    %c0_22 = arith.constant 0 : index
    %c0_23 = arith.constant 0 : index
    %c0_24 = arith.constant 0 : index
    %19 = vector.load %arg11[%c0_22, %c0_23, %c0_24] : memref<18x18x128xf32, #tpu.memory_space<vmem>>, vector<16x16x128xf32>
    %20 = vector.shape_cast %19 : vector<16x16x128xf32> to vector<256x128xf32>
    %21 = arith.truncf %20 : vector<256x128xf32> to vector<256x128xbf16>
    %c0_25 = arith.constant 0 : index
    %c1_26 = arith.constant 1 : index
    %c0_27 = arith.constant 0 : index
    %22 = vector.load %arg11[%c0_25, %c1_26, %c0_27] : memref<18x18x128xf32, #tpu.memory_space<vmem>>, vector<16x16x128xf32>
    %23 = vector.shape_cast %22 : vector<16x16x128xf32> to vector<256x128xf32>
    %24 = arith.truncf %23 : vector<256x128xf32> to vector<256x128xbf16>
    %c0_28 = arith.constant 0 : index
    %c2 = arith.constant 2 : index
    %c0_29 = arith.constant 0 : index
    %25 = vector.load %arg11[%c0_28, %c2, %c0_29] : memref<18x18x128xf32, #tpu.memory_space<vmem>>, vector<16x16x128xf32>
    %26 = vector.shape_cast %25 : vector<16x16x128xf32> to vector<256x128xf32>
    %27 = arith.truncf %26 : vector<256x128xf32> to vector<256x128xbf16>
    %c1_30 = arith.constant 1 : index
    %c0_31 = arith.constant 0 : index
    %c0_32 = arith.constant 0 : index
    %28 = vector.load %arg11[%c1_30, %c0_31, %c0_32] : memref<18x18x128xf32, #tpu.memory_space<vmem>>, vector<16x16x128xf32>
    %29 = vector.shape_cast %28 : vector<16x16x128xf32> to vector<256x128xf32>
    %30 = arith.truncf %29 : vector<256x128xf32> to vector<256x128xbf16>
    %c1_33 = arith.constant 1 : index
    %c1_34 = arith.constant 1 : index
    %c0_35 = arith.constant 0 : index
    %31 = vector.load %arg11[%c1_33, %c1_34, %c0_35] : memref<18x18x128xf32, #tpu.memory_space<vmem>>, vector<16x16x128xf32>
    %32 = vector.shape_cast %31 : vector<16x16x128xf32> to vector<256x128xf32>
    %33 = arith.truncf %32 : vector<256x128xf32> to vector<256x128xbf16>
    %c1_36 = arith.constant 1 : index
    %c2_37 = arith.constant 2 : index
    %c0_38 = arith.constant 0 : index
    %34 = vector.load %arg11[%c1_36, %c2_37, %c0_38] : memref<18x18x128xf32, #tpu.memory_space<vmem>>, vector<16x16x128xf32>
    %35 = vector.shape_cast %34 : vector<16x16x128xf32> to vector<256x128xf32>
    %36 = arith.truncf %35 : vector<256x128xf32> to vector<256x128xbf16>
    %c2_39 = arith.constant 2 : index
    %c0_40 = arith.constant 0 : index
    %c0_41 = arith.constant 0 : index
    %37 = vector.load %arg11[%c2_39, %c0_40, %c0_41] : memref<18x18x128xf32, #tpu.memory_space<vmem>>, vector<16x16x128xf32>
    %38 = vector.shape_cast %37 : vector<16x16x128xf32> to vector<256x128xf32>
    %39 = arith.truncf %38 : vector<256x128xf32> to vector<256x128xbf16>
    %c2_42 = arith.constant 2 : index
    %c1_43 = arith.constant 1 : index
    %c0_44 = arith.constant 0 : index
    %40 = vector.load %arg11[%c2_42, %c1_43, %c0_44] : memref<18x18x128xf32, #tpu.memory_space<vmem>>, vector<16x16x128xf32>
    %41 = vector.shape_cast %40 : vector<16x16x128xf32> to vector<256x128xf32>
    %42 = arith.truncf %41 : vector<256x128xf32> to vector<256x128xbf16>
    %c2_45 = arith.constant 2 : index
    %c2_46 = arith.constant 2 : index
    %c0_47 = arith.constant 0 : index
    %43 = vector.load %arg11[%c2_45, %c2_46, %c0_47] : memref<18x18x128xf32, #tpu.memory_space<vmem>>, vector<16x16x128xf32>
    %44 = vector.shape_cast %43 : vector<16x16x128xf32> to vector<256x128xf32>
    %45 = arith.truncf %44 : vector<256x128xf32> to vector<256x128xbf16>
    %46 = tpu.concatenate %21, %24, %27, %30, %33, %36, %39, %42, %45 in 1 : vector<256x128xbf16>, vector<256x128xbf16>, vector<256x128xbf16>, vector<256x128xbf16>, vector<256x128xbf16>, vector<256x128xbf16>, vector<256x128xbf16>, vector<256x128xbf16>, vector<256x128xbf16> -> vector<256x1152xbf16>
    %c0_48 = arith.constant 0 : index
    %c0_49 = arith.constant 0 : index
    %47 = vector.load %arg4[%c0_48, %c0_49] : memref<1152x128xbf16, #tpu.memory_space<vmem>>, vector<1152x128xbf16>
    %cst_50 = arith.constant dense<0.000000e+00> : vector<256x128xf32>
    %48 = tpu.matmul %46, %47, %cst_50 {dimension_numbers = #tpu.dot_dimension_numbers<[1], [0], [0], [1], [0, 0, 1, 1], [], []>} : vector<256x1152xbf16>, vector<1152x128xbf16>, vector<256x128xf32> -> vector<256x128xf32>
    %c0_51 = arith.constant 0 : index
    %c0_52 = arith.constant 0 : index
    %49 = vector.load %arg5[%c0_51, %c0_52] : memref<1x128xf32, #tpu.memory_space<vmem>>, vector<1x128xf32>
    %50 = vector.broadcast %49 : vector<1x128xf32> to vector<256x128xf32>
    %51 = arith.mulf %48, %50 : vector<256x128xf32>
    %c0_53 = arith.constant 0 : index
    %c0_54 = arith.constant 0 : index
    %52 = vector.load %arg6[%c0_53, %c0_54] : memref<1x128xf32, #tpu.memory_space<vmem>>, vector<1x128xf32>
    %53 = vector.broadcast %52 : vector<1x128xf32> to vector<256x128xf32>
    %54 = arith.addf %51, %53 : vector<256x128xf32>
    %cst_55 = arith.constant 0.000000e+00 : f32
    %55 = vector.broadcast %cst_55 : f32 to vector<256x128xf32>
    %56 = arith.maximumf %54, %55 : vector<256x128xf32>
    %57 = vector.shape_cast %56 : vector<256x128xf32> to vector<16x16x128xf32>
    %cst_56 = arith.constant 0.000000e+00 : f32
    %58 = vector.broadcast %cst_56 : f32 to vector<1x18x128xf32>
    %cst_57 = arith.constant 0.000000e+00 : f32
    %59 = vector.broadcast %cst_57 : f32 to vector<16x1x128xf32>
    %c0_58 = arith.constant 0 : index
    %c0_59 = arith.constant 0 : index
    %c0_60 = arith.constant 0 : index
    %60 = vector.load %arg12[%c0_58, %c0_59, %c0_60] : memref<18x18x128xf32, #tpu.memory_space<vmem>>, vector<1x18x128xf32>
    tpu.vector_store %arg12[%c0_58, %c0_59, %c0_60], %58 {strides = array<i32>} : memref<18x18x128xf32, #tpu.memory_space<vmem>>, vector<1x18x128xf32>,
    %c17_61 = arith.constant 17 : index
    %c0_62 = arith.constant 0 : index
    %c0_63 = arith.constant 0 : index
    %61 = vector.load %arg12[%c17_61, %c0_62, %c0_63] : memref<18x18x128xf32, #tpu.memory_space<vmem>>, vector<1x18x128xf32>
    tpu.vector_store %arg12[%c17_61, %c0_62, %c0_63], %58 {strides = array<i32>} : memref<18x18x128xf32, #tpu.memory_space<vmem>>, vector<1x18x128xf32>,
    %c1_64 = arith.constant 1 : index
    %c0_65 = arith.constant 0 : index
    %c0_66 = arith.constant 0 : index
    %62 = vector.load %arg12[%c1_64, %c0_65, %c0_66] : memref<18x18x128xf32, #tpu.memory_space<vmem>>, vector<16x1x128xf32>
    tpu.vector_store %arg12[%c1_64, %c0_65, %c0_66], %59 {strides = array<i32>} : memref<18x18x128xf32, #tpu.memory_space<vmem>>, vector<16x1x128xf32>,
    %c1_67 = arith.constant 1 : index
    %c17_68 = arith.constant 17 : index
    %c0_69 = arith.constant 0 : index
    %63 = vector.load %arg12[%c1_67, %c17_68, %c0_69] : memref<18x18x128xf32, #tpu.memory_space<vmem>>, vector<16x1x128xf32>
    tpu.vector_store %arg12[%c1_67, %c17_68, %c0_69], %59 {strides = array<i32>} : memref<18x18x128xf32, #tpu.memory_space<vmem>>, vector<16x1x128xf32>,
    %c1_70 = arith.constant 1 : index
    %c1_71 = arith.constant 1 : index
    %c0_72 = arith.constant 0 : index
    %64 = vector.load %arg12[%c1_70, %c1_71, %c0_72] : memref<18x18x128xf32, #tpu.memory_space<vmem>>, vector<16x16x128xf32>
    tpu.vector_store %arg12[%c1_70, %c1_71, %c0_72], %57 {strides = array<i32>} : memref<18x18x128xf32, #tpu.memory_space<vmem>>, vector<16x16x128xf32>,
    %c0_73 = arith.constant 0 : index
    %c0_74 = arith.constant 0 : index
    %c0_75 = arith.constant 0 : index
    %65 = tpu.strided_load %arg12[%c0_73, %c0_74, %c0_75] {strides = array<i32: 2, 2, 1>} : memref<18x18x128xf32, #tpu.memory_space<vmem>>, vector<8x8x128xf32>
    %66 = vector.shape_cast %65 : vector<8x8x128xf32> to vector<64x128xf32>
    %67 = arith.truncf %66 : vector<64x128xf32> to vector<64x128xbf16>
    %c0_76 = arith.constant 0 : index
    %c1_77 = arith.constant 1 : index
    %c0_78 = arith.constant 0 : index
    %68 = tpu.strided_load %arg12[%c0_76, %c1_77, %c0_78] {strides = array<i32: 2, 2, 1>} : memref<18x18x128xf32, #tpu.memory_space<vmem>>, vector<8x8x128xf32>
    %69 = vector.shape_cast %68 : vector<8x8x128xf32> to vector<64x128xf32>
    %70 = arith.truncf %69 : vector<64x128xf32> to vector<64x128xbf16>
    %c0_79 = arith.constant 0 : index
    %c2_80 = arith.constant 2 : index
    %c0_81 = arith.constant 0 : index
    %71 = tpu.strided_load %arg12[%c0_79, %c2_80, %c0_81] {strides = array<i32: 2, 2, 1>} : memref<18x18x128xf32, #tpu.memory_space<vmem>>, vector<8x8x128xf32>
    %72 = vector.shape_cast %71 : vector<8x8x128xf32> to vector<64x128xf32>
    %73 = arith.truncf %72 : vector<64x128xf32> to vector<64x128xbf16>
    %c1_82 = arith.constant 1 : index
    %c0_83 = arith.constant 0 : index
    %c0_84 = arith.constant 0 : index
    %74 = tpu.strided_load %arg12[%c1_82, %c0_83, %c0_84] {strides = array<i32: 2, 2, 1>} : memref<18x18x128xf32, #tpu.memory_space<vmem>>, vector<8x8x128xf32>
    %75 = vector.shape_cast %74 : vector<8x8x128xf32> to vector<64x128xf32>
    %76 = arith.truncf %75 : vector<64x128xf32> to vector<64x128xbf16>
    %c1_85 = arith.constant 1 : index
    %c1_86 = arith.constant 1 : index
    %c0_87 = arith.constant 0 : index
    %77 = tpu.strided_load %arg12[%c1_85, %c1_86, %c0_87] {strides = array<i32: 2, 2, 1>} : memref<18x18x128xf32, #tpu.memory_space<vmem>>, vector<8x8x128xf32>
    %78 = vector.shape_cast %77 : vector<8x8x128xf32> to vector<64x128xf32>
    %79 = arith.truncf %78 : vector<64x128xf32> to vector<64x128xbf16>
    %c1_88 = arith.constant 1 : index
    %c2_89 = arith.constant 2 : index
    %c0_90 = arith.constant 0 : index
    %80 = tpu.strided_load %arg12[%c1_88, %c2_89, %c0_90] {strides = array<i32: 2, 2, 1>} : memref<18x18x128xf32, #tpu.memory_space<vmem>>, vector<8x8x128xf32>
    %81 = vector.shape_cast %80 : vector<8x8x128xf32> to vector<64x128xf32>
    %82 = arith.truncf %81 : vector<64x128xf32> to vector<64x128xbf16>
    %c2_91 = arith.constant 2 : index
    %c0_92 = arith.constant 0 : index
    %c0_93 = arith.constant 0 : index
    %83 = tpu.strided_load %arg12[%c2_91, %c0_92, %c0_93] {strides = array<i32: 2, 2, 1>} : memref<18x18x128xf32, #tpu.memory_space<vmem>>, vector<8x8x128xf32>
    %84 = vector.shape_cast %83 : vector<8x8x128xf32> to vector<64x128xf32>
    %85 = arith.truncf %84 : vector<64x128xf32> to vector<64x128xbf16>
    %c2_94 = arith.constant 2 : index
    %c1_95 = arith.constant 1 : index
    %c0_96 = arith.constant 0 : index
    %86 = tpu.strided_load %arg12[%c2_94, %c1_95, %c0_96] {strides = array<i32: 2, 2, 1>} : memref<18x18x128xf32, #tpu.memory_space<vmem>>, vector<8x8x128xf32>
    %87 = vector.shape_cast %86 : vector<8x8x128xf32> to vector<64x128xf32>
    %88 = arith.truncf %87 : vector<64x128xf32> to vector<64x128xbf16>
    %c2_97 = arith.constant 2 : index
    %c2_98 = arith.constant 2 : index
    %c0_99 = arith.constant 0 : index
    %89 = tpu.strided_load %arg12[%c2_97, %c2_98, %c0_99] {strides = array<i32: 2, 2, 1>} : memref<18x18x128xf32, #tpu.memory_space<vmem>>, vector<8x8x128xf32>
    %90 = vector.shape_cast %89 : vector<8x8x128xf32> to vector<64x128xf32>
    %91 = arith.truncf %90 : vector<64x128xf32> to vector<64x128xbf16>
    %92 = tpu.concatenate %67, %70, %73, %76, %79, %82, %85, %88, %91 in 1 : vector<64x128xbf16>, vector<64x128xbf16>, vector<64x128xbf16>, vector<64x128xbf16>, vector<64x128xbf16>, vector<64x128xbf16>, vector<64x128xbf16>, vector<64x128xbf16>, vector<64x128xbf16> -> vector<64x1152xbf16>
    %c0_100 = arith.constant 0 : index
    %c0_101 = arith.constant 0 : index
    %93 = vector.load %arg7[%c0_100, %c0_101] : memref<1152x128xbf16, #tpu.memory_space<vmem>>, vector<1152x128xbf16>
    %cst_102 = arith.constant dense<0.000000e+00> : vector<64x128xf32>
    %94 = tpu.matmul %92, %93, %cst_102 {dimension_numbers = #tpu.dot_dimension_numbers<[1], [0], [0], [1], [0, 0, 1, 1], [], []>} : vector<64x1152xbf16>, vector<1152x128xbf16>, vector<64x128xf32> -> vector<64x128xf32>
    %c0_103 = arith.constant 0 : index
    %c0_104 = arith.constant 0 : index
    %c0_105 = arith.constant 0 : index
    %c0_106 = arith.constant 0 : index
    %95 = tpu.strided_load %arg1[%c0_103, %c0_104, %c0_105, %c0_106] {strides = array<i32: 1, 2, 2, 1>} : memref<1x16x16x128xf32, #tpu.memory_space<vmem>>, vector<1x8x8x128xf32>
    %96 = vector.shape_cast %95 : vector<1x8x8x128xf32> to vector<64x128xf32>
    %97 = arith.truncf %96 : vector<64x128xf32> to vector<64x128xbf16>
    %c0_107 = arith.constant 0 : index
    %c0_108 = arith.constant 0 : index
    %98 = vector.load %arg9[%c0_107, %c0_108] : memref<128x128xbf16, #tpu.memory_space<vmem>>, vector<128x128xbf16>
    %cst_109 = arith.constant dense<0.000000e+00> : vector<64x128xf32>
    %99 = tpu.matmul %97, %98, %cst_109 {dimension_numbers = #tpu.dot_dimension_numbers<[1], [0], [0], [1], [0, 0, 1, 1], [], []>} : vector<64x128xbf16>, vector<128x128xbf16>, vector<64x128xf32> -> vector<64x128xf32>
    %100 = arith.addf %94, %99 : vector<64x128xf32>
    %c0_110 = arith.constant 0 : index
    %c0_111 = arith.constant 0 : index
    %101 = vector.load %arg8[%c0_110, %c0_111] : memref<1x128xf32, #tpu.memory_space<vmem>>, vector<1x128xf32>
    %102 = vector.broadcast %101 : vector<1x128xf32> to vector<64x128xf32>
    %103 = arith.addf %100, %102 : vector<64x128xf32>
    %104 = vector.shape_cast %103 : vector<64x128xf32> to vector<1x8x8x128xf32>
    %c0_112 = arith.constant 0 : index
    %c0_113 = arith.constant 0 : index
    %c0_114 = arith.constant 0 : index
    %c0_115 = arith.constant 0 : index
    %105 = vector.load %arg10[%c0_112, %c0_113, %c0_114, %c0_115] : memref<1x8x8x128xf32, #tpu.memory_space<vmem>>, vector<1x8x8x128xf32>
    tpu.vector_store %arg10[%c0_112, %c0_113, %c0_114, %c0_115], %104 {strides = array<i32>} : memref<1x8x8x128xf32, #tpu.memory_space<vmem>>, vector<1x8x8x128xf32>,
    return
  }
  func.func @transform_0(%arg0: i32) -> (i32, i32, i32, i32) {
    %c0_i32 = arith.constant 0 : i32
    %c0_i32_0 = arith.constant 0 : i32
    %c0_i32_1 = arith.constant 0 : i32
    %c0_i32_2 = arith.constant 0 : i32
    return %arg0, %c0_i32, %c0_i32_0, %c0_i32_1 : i32, i32, i32, i32
  }
  func.func @transform_1(%arg0: i32) -> (i32, i32) {
    %c0_i32 = arith.constant 0 : i32
    %c0_i32_0 = arith.constant 0 : i32
    %c0_i32_1 = arith.constant 0 : i32
    return %c0_i32, %c0_i32_0 : i32, i32
  }
  func.func @transform_2(%arg0: i32) -> (i32, i32) {
    %c0_i32 = arith.constant 0 : i32
    %c0_i32_0 = arith.constant 0 : i32
    %c0_i32_1 = arith.constant 0 : i32
    return %c0_i32, %c0_i32_0 : i32, i32
  }
  func.func @transform_3(%arg0: i32) -> (i32, i32) {
    %c0_i32 = arith.constant 0 : i32
    %c0_i32_0 = arith.constant 0 : i32
    %c0_i32_1 = arith.constant 0 : i32
    return %c0_i32, %c0_i32_0 : i32, i32
  }
  func.func @transform_4(%arg0: i32) -> (i32, i32) {
    %c0_i32 = arith.constant 0 : i32
    %c0_i32_0 = arith.constant 0 : i32
    %c0_i32_1 = arith.constant 0 : i32
    return %c0_i32, %c0_i32_0 : i32, i32
  }
  func.func @transform_5(%arg0: i32) -> (i32, i32) {
    %c0_i32 = arith.constant 0 : i32
    %c0_i32_0 = arith.constant 0 : i32
    %c0_i32_1 = arith.constant 0 : i32
    return %c0_i32, %c0_i32_0 : i32, i32
  }
  func.func @transform_6(%arg0: i32) -> (i32, i32) {
    %c0_i32 = arith.constant 0 : i32
    %c0_i32_0 = arith.constant 0 : i32
    %c0_i32_1 = arith.constant 0 : i32
    return %c0_i32, %c0_i32_0 : i32, i32
  }
  func.func @transform_7(%arg0: i32) -> (i32, i32) {
    %c0_i32 = arith.constant 0 : i32
    %c0_i32_0 = arith.constant 0 : i32
    %c0_i32_1 = arith.constant 0 : i32
    return %c0_i32, %c0_i32_0 : i32, i32
  }
  func.func @transform_8(%arg0: i32) -> (i32, i32) {
    %c0_i32 = arith.constant 0 : i32
    %c0_i32_0 = arith.constant 0 : i32
    %c0_i32_1 = arith.constant 0 : i32
    return %c0_i32, %c0_i32_0 : i32, i32
  }
  func.func @transform_9(%arg0: i32) -> (i32, i32, i32, i32) {
    %c0_i32 = arith.constant 0 : i32
    %c0_i32_0 = arith.constant 0 : i32
    %c0_i32_1 = arith.constant 0 : i32
    %c0_i32_2 = arith.constant 0 : i32
    return %arg0, %c0_i32, %c0_i32_0, %c0_i32_1 : i32, i32, i32, i32
  }
}

</mosaic_0001>

<bundles_post_ra>
// kernel: tpu_custom_call.1
= control target key start
LH: loop header
LB: loop body
LE: loop exit
PB: predicated region body
PF: predicated region fallthrough
CT: control target
= control target key end

     0   :  { %s6537_s0 = inlined_call_operand.hbm [shape: f32[2,16,16,128], index: 0, kind: input, shape index: {}]   ;;  %s6538_s1 = inlined_call_operand.vmem [shape: f32[1,128], index: 1, kind: input, shape index: {}]   ;;  %s6539_s2 = inlined_call_operand.vmem [shape: f32[1,128], index: 2, kind: input, shape index: {}]   ;;  %s6540_s3 = inlined_call_operand.hbm [shape: bf16[1152,128], index: 3, kind: input, shape index: {}]   ;;  %s6541_s4 = inlined_call_operand.vmem [shape: f32[1,128], index: 4, kind: input, shape index: {}]   ;;  %s6542_s5 = inlined_call_operand.vmem [shape: f32[1,128], index: 5, kind: input, shape index: {}]   ;;  %s6543_s6 = inlined_call_operand.hbm [shape: bf16[1152,128], index: 6, kind: input, shape index: {}]   ;;  %s6544_s7 = inlined_call_operand.vmem [shape: f32[1,128], index: 7, kind: input, shape index: {}]   ;;  %s6545_s8 = inlined_call_operand.hbm [shape: bf16[128,128], index: 8, kind: input, shape index: {}]   ;;  %s6546_s9 = inlined_call_operand.hbm [shape: f32[2,8,8,128], index: 9, kind: output, shape index: {}]  }
   0x1   :  { %6553 = sst [smem:[#allocation19_spill]] %s6546_s9 }
   0x2   :  { %14 = vsyncpa [#allocation5], 0 }
   0x3   :  { %16 = vsyncpa [#allocation5 + $0x1], 0 }
   0x4   :  { %17 = vsyncpa [#allocation8], 0 }
   0x5   :  { %18 = vsyncpa [#allocation11], 0 }
   0x6   :  { %19 = vsyncpa [#allocation6], 0 }
   0x7   :  { %21 = vsyncpa [#allocation6 + $0x1], 0  ;;  %s5486_s30 = smov 0   ;;  %s5488_s10 = smov 0  }
   0x8   :  { %s5490_s11 = smov 0   ;;  %s5492_s12 = smov 0  }
   0x9 LB: > { %6554 = sst [smem:[#allocation17_spill]] %s5409_s30  ;;  %s5507_s13 = sadd.s32 4294967295, %s5421_s12   ;;  %s5421_s12 = sphi %s5492_s12, %s6578_s12   ;;  %s5417_s11 = sphi %s5490_s11, %s6577_s11   ;;  %s5413_s10 = sphi %s5488_s10, %s6576_s10   ;;  %s5409_s30 = sphi %s5486_s30, %s6575_s30  }
   0xa   : > { %s4018_s14 = sadd.s32 4294967294, %s5421_s12   ;;  %p47_p0 = scmp.ne.s32.totalorder %s5413_s10, %s5409_s30 }
   0xb   : > { %p6547_p1 = scmp.eq.s32.totalorder %s5507_s13, 0  ;;  %p245_p3 = scmp.eq.s32.totalorder %s4018_s14, 1 }
   0xc   : > { %p4019_p5 = scmp.ge.s32.totalorder %s5421_s12, 1  ;;  %p252_p7 = scmp.lt.s32.totalorder %s5421_s12, 3 }
   0xd   : > { %p5516_p4 = por %p6547_p1, %p47_p0  ;;  %p5521_p6 = por %p245_p3, %p47_p0 }
   0xe   : > { %p5526_p8 = pnand %p4019_p5, %p252_p7  ;;  %s5423_s18 = smov [#allocation7]  }
   0xf   : > { %s6555_s15 = scalar_select %p5516_p4, 1, 0 }
  0x10   : > { %s6556_s16 = scalar_select %p5521_p6, 1, 0 }
  0x11   : > { %s6558_s17 = scalar_select %p5526_p8, 1, 0 }
  0x12   : > { %6557 = sst [smem:[#allocation18_spill]] %s6556_s16  ;;  %s270_s19 = sshll.u32 %s5423_s18, 4  ;;  %s5530_s19 = int_to_ptr.vmem [resolvable:$true] %s270_s19 }
  0x13   : > { %p5012_p9 = pneg %p5526_p8  ;;  %s5424_s21 = smov [#allocation9]  }
  0x14   : > { %s289_s22 = sshll.u32 %s5424_s21, 4  ;;  %s5425_s23 = smov [#allocation10]   ;;  %s5541_s22 = int_to_ptr.vmem [resolvable:$true] %s289_s22 }
  0x15   : > { %p5537_p11 = pnand %p5012_p9, %p6547_p1  ;;  %s5543_s24 = sshll.u32 %s5425_s23, 4  ;;  %s306_s24 = int_to_ptr.vmem [resolvable:$true] %s5543_s24 }
  0x16   : > { %s5233_s27 = scalar_lea.hbm %s6540_s3, 9216 }
  0x17   : > { %p5234_p12 = scmp.ne.s32.totalorder %s6540_s3, %s5233_s27  ;;  %p5553_p13 = pneg %p5537_p11 }
  0x18   : > { %p5240_p5 = scmp.lt.u32.totalorder %s5233_s27, %s6540_s3 }
  0x19   : > { %p5236_p0 = pnand %p5553_p13, %p5234_p12 }
  0x1b   : > { %p5237_p3 = pneg %p5236_p0 }
  0x1d   : > { %p5242_p7 = pnand %p5240_p5, %p5237_p3 }
  0x1f   : > { %5245 = shalt.err (!%p5242_p7)
}
  0x20   : > { %s5246_s23 = scalar_lea.vmem %s5530_s19, 9216  ;;  %p5254_p2 = scmp.lt.s32.totalorder %s5530_s19, %s5530_s19 }
  0x21   : > { %p5247_p9 = scmp.ne.s32.totalorder %s5530_s19, %s5246_s23  ;;  %p5255_p6 = scmp.lt.s32.totalorder %s5246_s23, %s5246_s23 }
  0x23   : > { %p5249_p10 = pnand %p5247_p9, %p5553_p13  ;;  %p5256_p12 = por %p5255_p6, %p5254_p2 }
  0x25   : > { %p5250_p1 = pneg %p5249_p10 }
  0x27   : > { %p5257_p0 = pnand %p5256_p12, %p5250_p1 }
  0x29   : > { %5260 = shalt.err (!%p5257_p0)
}
  0x2a   : > { %s5426_s25 = smov 64   ;;  %s5427_s26 = smov 4  }
  0x2b   : > { %5015 = dma.hbm_to_vmem [thread:$0]  (!%p5537_p11), %s6540_s3, 9216, %s5530_s19, [#allocation8], %s5426_s25, %s5426_s25, %s5427_s26  }
  0x2c   : > { %s5261_s21 = scalar_lea.hbm %s6543_s6, 9216 }
  0x2d   : > { %p5262_p1 = scmp.ne.s32.totalorder %s6543_s6, %s5261_s21  ;;  %p5268_p10 = scmp.lt.u32.totalorder %s5261_s21, %s6543_s6 }
  0x2f   : > { %p5264_p2 = pnand %p5262_p1, %p5553_p13 }
  0x31   : > { %p5265_p6 = pneg %p5264_p2 }
  0x33   : > { %p5270_p3 = pnand %p5268_p10, %p5265_p6 }
  0x35   : > { %5273 = shalt.err (!%p5270_p3)
}
  0x36   : > { %s5274_s19 = scalar_lea.vmem %s5541_s22, 9216  ;;  %p5282_p12 = scmp.lt.s32.totalorder %s5541_s22, %s5541_s22 }
  0x37   : > { %p5275_p5 = scmp.ne.s32.totalorder %s5541_s22, %s5274_s19  ;;  %p5283_p0 = scmp.lt.s32.totalorder %s5274_s19, %s5274_s19 }
  0x39   : > { %p5277_p7 = pnand %p5275_p5, %p5553_p13  ;;  %p5284_p1 = por %p5283_p0, %p5282_p12 }
  0x3b   : > { %p5278_p9 = pneg %p5277_p7 }
  0x3d   : > { %p5285_p2 = pnand %p5284_p1, %p5278_p9 }
  0x3f   : > { %5288 = shalt.err (!%p5285_p2)
}
  0x40   : > { %5018 = dma.hbm_to_vmem [thread:$0]  (!%p5537_p11), %s6543_s6, 9216, %s5541_s22, [#allocation8], %s5426_s25, %s5426_s25, %s5427_s26  }
  0x41   : > { %s5289_s28 = scalar_lea.hbm %s6545_s8, 1024 }
  0x42   : > { %p5290_p6 = scmp.ne.s32.totalorder %s6545_s8, %s5289_s28  ;;  %p5296_p5 = scmp.lt.u32.totalorder %s5289_s28, %s6545_s8 }
  0x44   : > { %p5292_p10 = pnand %p5290_p6, %p5553_p13 }
  0x46   : > { %p5293_p3 = pneg %p5292_p10 }
  0x48   : > { %p5298_p7 = pnand %p5296_p5, %p5293_p3 }
  0x4a   : > { %5301 = shalt.err (!%p5298_p7)
}
  0x4b   : > { %s5302_s19 = scalar_lea.vmem %s306_s24, 1024  ;;  %p5310_p1 = scmp.lt.s32.totalorder %s306_s24, %s306_s24 }
  0x4c   : > { %p5303_p9 = scmp.ne.s32.totalorder %s306_s24, %s5302_s19  ;;  %p5311_p2 = scmp.lt.s32.totalorder %s5302_s19, %s5302_s19 }
  0x4e   : > { %p5305_p12 = pnand %p5303_p9, %p5553_p13  ;;  %p5312_p4 = por %p5311_p2, %p5310_p1 }
  0x50   : > { %p5306_p0 = pneg %p5305_p12 }
  0x52   : > { %p5313_p8 = pnand %p5312_p4, %p5306_p0 }
  0x54   : > { %5316 = shalt.err (!%p5313_p8)
}
  0x55   : > { %5021 = dma.hbm_to_vmem [thread:$0]  (!%p5537_p11), %s6545_s8, 1024, %s306_s24, [#allocation11], %s5426_s25, %s5426_s25, %s5427_s26  }
  0x56   : > { %s5626_s14 = sadd.s32 1, %s5421_s12   ;;  %s34_s30 = sadd.s32 1, %s5417_s11 }
  0x57   : > { %s31_s20 = ssub.s32 %s5421_s12, %s5626_s14  ;;  %p41_p8 = scmp.ne.s32.totalorder %s5417_s11, %s5413_s10 }
  0x58   : > { %p32_p4 = scmp.eq.s32.totalorder %s31_s20, 0  ;;  %p42_p13 = scmp.eq.s32.totalorder %s5421_s12, 0 }
  0x59   : > { %p5033_p6 = scmp.lt.s32.totalorder %s5421_s12, 2  ;;  %p6561_p3 = scmp.eq.s32.totalorder %s5507_s13, 1 }
  0x5a   : > { %s5636_s16 = scalar_select %p32_p4, %s5417_s11, %s34_s30  }
  0x5b   : > { %p43_p10 = por %p42_p13, %p41_p8  ;;  %p5640_p5 = por %p6561_p3, %p41_p8 }
  0x5c   : > { %s319_s28 = sand.u32 1, %s5417_s11   ;;  %s4202_s29 = sshll.u32 %s5421_s12, 12 }
  0x5d   : > { %s4024_s24 = sshll.u32 %s319_s28, 8  ;;  %s5649_s18 = scalar_lea.hbm %s6537_s0, %s4202_s29 }
  0x5e   : > { %s323_s21 = scalar_lea.vmem [#allocation4], %s4024_s24  ;;  %p5651_p11 = pnand %p5033_p6, %p43_p10 }
  0x5f   : > { %s330_s23 = sshll.u32 %s323_s21, 4  ;;  %s5657_s22 = scalar_lea.sflag [#allocation5], %s319_s28  ;;  %s5655_s23 = int_to_ptr.vmem [resolvable:$true] %s330_s23 }
  0x60   : > { %s5317_s9 = scalar_lea.hbm %s5649_s18, 4096  ;;  %p5319_p9 = pneg %p5651_p11 }
  0x61   : > { %p5318_p7 = scmp.ne.s32.totalorder %s5649_s18, %s5317_s9  ;;  %s5322_s29 = scalar_lea.hbm %s6537_s0, 8192 }
  0x62   : > { %p5323_p1 = scmp.lt.u32.totalorder %s5649_s18, %s6537_s0  ;;  %p5324_p2 = scmp.lt.u32.totalorder %s5322_s29, %s5317_s9 }
  0x63   : > { %p5320_p12 = pnand %p5319_p9, %p5318_p7  ;;  %p5326_p8 = scmp.lt.u32.totalorder %s5317_s9, %s5649_s18 }
  0x64   : > { %p5325_p4 = por %p5324_p2, %p5323_p1 }
  0x65   : > { %p5321_p0 = pneg %p5320_p12 }
  0x66   : > { %p5327_p13 = por %p5326_p8, %p5325_p4 }
  0x68   : > { %p5328_p6 = pnand %p5327_p13, %p5321_p0 }
  0x6a   : > { %5331 = shalt.err (!%p5328_p6)
}
  0x6b   : > { %s5332_s28 = scalar_lea.vmem %s5655_s23, 4096  ;;  %s5428_s26 = smov [#allocation4]  }
  0x6c   : > { %p5333_p10 = scmp.ne.s32.totalorder %s5655_s23, %s5332_s28  ;;  %s5337_s21 = sshll.u32 %s5428_s26, 4  ;;  %s5338_s21 = int_to_ptr.vmem [resolvable:$false] %s5337_s21 }
  0x6d   : > { %s5339_s20 = scalar_lea.vmem %s5338_s21, 8192  ;;  %p5340_p12 = scmp.lt.s32.totalorder %s5655_s23, %s5338_s21 }
  0x6e   : > { %p5335_p3 = pnand %p5333_p10, %p5319_p9  ;;  %p5341_p1 = scmp.lt.s32.totalorder %s5339_s20, %s5332_s28 }
  0x70   : > { %p5336_p7 = pneg %p5335_p3  ;;  %p5342_p2 = por %p5341_p1, %p5340_p12 }
  0x72   : > { %p5343_p4 = pnand %p5342_p2, %p5336_p7 }
  0x74   : > { %5346 = shalt.err (!%p5343_p4)
}
  0x75   : > { %s5429_s9 = smov 128   ;;  %s5430_s30 = smov 8  }
  0x76   : > { %5025 = dma.hbm_to_vmem [thread:$0]  (!%p5651_p11), %s5649_s18, 4096, %s5655_s23, %s5657_s22, %s5429_s9, %s5429_s9, %s5430_s30  }
  0x77   : > { %p6564_p9 = scmp.ne.s32.totalorder %s6558_s17, 0 }
  0x78   : > { %s5688_s29 = sand.u32 (!%p6564_p9), 1, %s5413_s10   ;;  %p6565_p0 = scmp.ne.s32.totalorder (!%p6564_p9), %s6555_s15, 0 }
  0x79   : > { %342 = sbr.rel (%p6564_p9) target bundleno = 990 (0x3de), region = 56  ;;  %s4028_s24 = sshll.u32 (!%p6564_p9), %s5688_s29, 8 }
  0x7a   : > { %s345_s25 = scalar_lea.sflag (!%p6564_p9), [#allocation5], %s5688_s29  ;;  %s5692_s28 = scalar_lea.vmem (!%p6564_p9), [#allocation4], %s4028_s24 }
  0x80   : > { %5392 = dma.done.wait (%p6565_p0), %s345_s25, 4096  }
  0x81   : > { %5394 = vsyncadd (%p6565_p0), %s345_s25, 4294963200  ;;  %p6566_p11 = scmp.eq.s32.totalorder %s5507_s13, 0 }
  0x83   : > { %5396 = dma.done.wait (%p6566_p11), [#allocation8], 18432   ;;  %p6567_p8 = pmov %p6566_p11 }
  0x85   : > { %5398 = vsyncadd (%p6567_p8), [#allocation8], 4294948864  ;;  %p6568_p13 = pmov %p6567_p8 }
  0x86   : > { %p6569_p6 = pmov %p6567_p8 }
  0x87   : > { %5400 = dma.done.wait (%p6568_p13), [#allocation11], 1024  }
  0x88   : > { %5402 = vsyncadd (%p6569_p6), [#allocation11], 4294966272  ;;  %v5431_v0 = vmov 0.0   ;;  %v5080_v1 = vld [vmem:[#allocation7 + $0x40] sm:$0xff]   ;;  %v5084_v5 = vld [vmem:[#allocation7 + $0x48] sm:$0xff]   ;;  %v5432_v45 = vmov 0.0|0.0  }
  0x89   : > { %2538 = vst [vmem:[#allocation3 + $0x198] sm:$0xff] %v5431_v0  ;;  %538 = vst [vmem:[#allocation2] sm:$0xff] %v5431_v0  ;;  %v5081_v2 = vld [vmem:[#allocation7 + $0xc0] sm:$0xff]   ;;  %4204 = vmatprep.subr.bf16.mxu0 %v5080_v1  ;;  %v5085_v6 = vld [vmem:[#allocation7 + $0xc8] sm:$0xff]   ;;  %s4032_s20 = sshll.u32 %s5688_s29, 6  ;;  %s6570_s18 = sld [smem:[#allocation19_spill]] }
  0x8a   : > { %539 = vst [vmem:[#allocation2 + $0x8] sm:$0xff] %v5431_v0  ;;  %540 = vst [vmem:[#allocation2 + $0x10] sm:$0x3] %v5431_v0  ;;  %v5082_v3 = vld [vmem:[#allocation7] sm:$0xff]   ;;  %4316 = vmatprep.subr.bf16.mxu1 %v5081_v2  ;;  %v5086_v7 = vld [vmem:[#allocation7 + $0x8] sm:$0xff]   ;;  %s394_s24 = scalar_lea.vmem [#allocation12], %s4032_s20 }
  0x8b   : > { %542 = vst [vmem:[#allocation2 + $0x198] sm:$0xff] %v5431_v0  ;;  %543 = vst [vmem:[#allocation2 + $0x1a0] sm:$0xff] %v5431_v0  ;;  %v5083_v4 = vld [vmem:[#allocation7 + $0x80] sm:$0xff]   ;;  %4205 = vmatpush3.bf16.msra.mxu0 %v5082_v3  ;;  %v5087_v8 = vld [vmem:[#allocation7 + $0x88] sm:$0xff]   ;;  %s3870_s25 = sshll.u32 %s394_s24, 4  ;;  %s5433_s22 = smov [#allocation12]   ;;  %s6488_s25 = int_to_ptr.vmem [resolvable:$true] %s3870_s25 }
  0x8c   : > { %544 = vst [vmem:[#allocation2 + $0x1a8] sm:$0x3] %v5431_v0  ;;  %546 = vst [vmem:[#allocation2 + $0x18] sm:$0x1] %v5431_v0  ;;  %4317 = vmatpush3.bf16.msra.mxu1 %v5083_v4  ;;  %4206 = vmatprep.subr.bf16.mxu0 %v5084_v5  ;;  %v5088_v9 = vld [vmem:[#allocation7 + $0x50] sm:$0xff]   ;;  %v5092_v13 = vld [vmem:[#allocation7 + $0x58] sm:$0xff]  }
  0x8d   : > { %547 = vst [vmem:[#allocation2 + $0x30] sm:$0x1] %v5431_v0  ;;  %548 = vst [vmem:[#allocation2 + $0x48] sm:$0x1] %v5431_v0  ;;  %4318 = vmatprep.subr.bf16.mxu1 %v5085_v6  ;;  %v5089_v10 = vld [vmem:[#allocation7 + $0xd0] sm:$0xff]   ;;  %v5093_v14 = vld [vmem:[#allocation7 + $0xd8] sm:$0xff]  }
  0x8e   : > { %549 = vst [vmem:[#allocation2 + $0x60] sm:$0x1] %v5431_v0  ;;  %550 = vst [vmem:[#allocation2 + $0x78] sm:$0x1] %v5431_v0  ;;  %v5090_v11 = vld [vmem:[#allocation7 + $0x10] sm:$0xff]   ;;  %v5094_v15 = vld [vmem:[#allocation7 + $0x18] sm:$0xff]  }
  0x8f   : > { %551 = vst [vmem:[#allocation2 + $0x90] sm:$0x1] %v5431_v0  ;;  %552 = vst [vmem:[#allocation2 + $0xa8] sm:$0x1] %v5431_v0  ;;  %4207 = vmatpush3.bf16.msra.mxu0 %v5086_v7  ;;  %v5091_v12 = vld [vmem:[#allocation7 + $0x90] sm:$0xff]   ;;  %v5095_v16 = vld [vmem:[#allocation7 + $0x98] sm:$0xff]  }
  0x90   : > { %553 = vst [vmem:[#allocation2 + $0xc0] sm:$0x1] %v5431_v0  ;;  %554 = vst [vmem:[#allocation2 + $0xd8] sm:$0x1] %v5431_v0  ;;  %4319 = vmatpush3.bf16.msra.mxu1 %v5087_v8  ;;  %4208 = vmatprep.subr.bf16.mxu0 %v5088_v9  ;;  %v5096_v17 = vld [vmem:[#allocation7 + $0x60] sm:$0xff]   ;;  %v5100_v21 = vld [vmem:[#allocation7 + $0x68] sm:$0xff]  }
  0x91   : > { %555 = vst [vmem:[#allocation2 + $0xf0] sm:$0x1] %v5431_v0  ;;  %556 = vst [vmem:[#allocation2 + $0x108] sm:$0x1] %v5431_v0  ;;  %4320 = vmatprep.subr.bf16.mxu1 %v5089_v10  ;;  %v5097_v18 = vld [vmem:[#allocation7 + $0xe0] sm:$0xff]   ;;  %v5101_v22 = vld [vmem:[#allocation7 + $0xe8] sm:$0xff]  }
  0x92   : > { %557 = vst [vmem:[#allocation2 + $0x120] sm:$0x1] %v5431_v0  ;;  %558 = vst [vmem:[#allocation2 + $0x138] sm:$0x1] %v5431_v0  ;;  %v5098_v19 = vld [vmem:[#allocation7 + $0x20] sm:$0xff]   ;;  %v5102_v23 = vld [vmem:[#allocation7 + $0x28] sm:$0xff]  }
  0x93   : > { %559 = vst [vmem:[#allocation2 + $0x150] sm:$0x1] %v5431_v0  ;;  %560 = vst [vmem:[#allocation2 + $0x168] sm:$0x1] %v5431_v0  ;;  %4209 = vmatpush3.bf16.msra.mxu0 %v5090_v11  ;;  %v5099_v20 = vld [vmem:[#allocation7 + $0xa0] sm:$0xff]   ;;  %v5103_v24 = vld [vmem:[#allocation7 + $0xa8] sm:$0xff]  }
  0x94   : > { %561 = vst [vmem:[#allocation2 + $0x180] sm:$0x1] %v5431_v0  ;;  %562 = vst [vmem:[#allocation2 + $0x29] sm:$0x1] %v5431_v0  ;;  %4321 = vmatpush3.bf16.msra.mxu1 %v5091_v12  ;;  %4210 = vmatprep.subr.bf16.mxu0 %v5092_v13  ;;  %v5104_v25 = vld [vmem:[#allocation7 + $0x70] sm:$0xff]   ;;  %v5108_v29 = vld [vmem:[#allocation7 + $0x78] sm:$0xff]  }
  0x95   : > { %563 = vst [vmem:[#allocation2 + $0x41] sm:$0x1] %v5431_v0  ;;  %564 = vst [vmem:[#allocation2 + $0x59] sm:$0x1] %v5431_v0  ;;  %4322 = vmatprep.subr.bf16.mxu1 %v5093_v14  ;;  %v5105_v26 = vld [vmem:[#allocation7 + $0xf0] sm:$0xff]   ;;  %v5109_v30 = vld [vmem:[#allocation7 + $0xf8] sm:$0xff]  }
  0x96   : > { %565 = vst [vmem:[#allocation2 + $0x71] sm:$0x1] %v5431_v0  ;;  %566 = vst [vmem:[#allocation2 + $0x89] sm:$0x1] %v5431_v0  ;;  %v5106_v27 = vld [vmem:[#allocation7 + $0x30] sm:$0xff]   ;;  %v5110_v31 = vld [vmem:[#allocation7 + $0x38] sm:$0xff]  }
  0x97   : > { %567 = vst [vmem:[#allocation2 + $0xa1] sm:$0x1] %v5431_v0  ;;  %568 = vst [vmem:[#allocation2 + $0xb9] sm:$0x1] %v5431_v0  ;;  %4211 = vmatpush3.bf16.msra.mxu0 %v5094_v15  ;;  %v5107_v28 = vld [vmem:[#allocation7 + $0xb0] sm:$0xff]   ;;  %v5111_v32 = vld [vmem:[#allocation7 + $0xb8] sm:$0xff]  }
  0x98   : > { %569 = vst [vmem:[#allocation2 + $0xd1] sm:$0x1] %v5431_v0  ;;  %570 = vst [vmem:[#allocation2 + $0xe9] sm:$0x1] %v5431_v0  ;;  %4323 = vmatpush3.bf16.msra.mxu1 %v5095_v16  ;;  %4212 = vmatprep.subr.bf16.mxu0 %v5096_v17  ;;  %v658_v33 = vld [vmem:[#allocation2 + $0x1] sm:$0xff]  ;;  %v659_v34 = vld [vmem:[#allocation2 + $0x9] sm:$0xff] }
  0x99   : > { %571 = vst [vmem:[#allocation2 + $0x101] sm:$0x1] %v5431_v0  ;;  %572 = vst [vmem:[#allocation2 + $0x119] sm:$0x1] %v5431_v0  ;;  %4324 = vmatprep.subr.bf16.mxu1 %v5097_v18  ;;  %v396_v35 = vld [vmem:[%s5692_s28] sm:$0xff]  ;;  %v690_v36 = vpack.c.bf16 %v659_v34, %v658_v33  ;;  %v397_v37 = vld [vmem:[%s5692_s28 + $0x8] sm:$0xff] }
  0x9a   : > { %573 = vst [vmem:[#allocation2 + $0x131] sm:$0x1] %v5431_v0  ;;  %574 = vst [vmem:[#allocation2 + $0x149] sm:$0x1] %v5431_v0  ;;  %v5711_v38 = vld [vmem:[%s6538_s1] ss:$0 sm:$0xff] }
  0x9b   : > { %575 = vst [vmem:[#allocation2 + $0x161] sm:$0x1] %v5431_v0  ;;  %576 = vst [vmem:[#allocation2 + $0x179] sm:$0x1] %v5431_v0  ;;  %4213 = vmatpush3.bf16.msra.mxu0 %v5098_v19  ;;  %v5716_v39 = vld [vmem:[%s6539_s2] ss:$0 sm:$0xff]  ;;  %v435_v40 = vmul.f32 %v5711_v38, %v396_v35  ;;  %v436_v41 = vmul.f32 %v5711_v38, %v397_v37  ;;  %1651 = vmatprep.mubr.bf16.mxu0 %v690_v36 }
  0x9c   : > { %577 = vst [vmem:[#allocation2 + $0x191] sm:$0x1] %v5431_v0  ;;  %2534 = vst [vmem:[#allocation3] sm:$0xff] %v5431_v0  ;;  %4325 = vmatpush3.bf16.msra.mxu1 %v5099_v20  ;;  %4214 = vmatprep.subr.bf16.mxu0 %v5100_v21  ;;  %v5112_v42 = vld [vmem:[#allocation7 + $0x140] sm:$0xff]   ;;  %v398_v47 = vld [vmem:[%s5692_s28 + $0x10] sm:$0xff]  ;;  %s5347_s19 = scalar_lea.vmem %s6488_s25, 1024 }
  0x9d   : > { %2535 = vst [vmem:[#allocation3 + $0x8] sm:$0xff] %v5431_v0  ;;  %2536 = vst [vmem:[#allocation3 + $0x10] sm:$0x3] %v5431_v0  ;;  %4326 = vmatprep.subr.bf16.mxu1 %v5101_v22  ;;  %v474_v43 = vadd.f32 %v5716_v39, %v435_v40  ;;  %v475_v44 = vadd.f32 %v5716_v39, %v436_v41  ;;  %v5113_v46 = vld [vmem:[#allocation7 + $0x100] sm:$0xff]   ;;  %v399_v48 = vld [vmem:[%s5692_s28 + $0x18] sm:$0xff]  ;;  %v437_v49 = vmul.f32 %v5711_v38, %v398_v47  ;;  %p5348_p10 = scmp.ne.s32.totalorder %s6488_s25, %s5347_s19  ;;  %s5351_s26 = sshll.u32 %s5433_s22, 4  ;;  %s5352_s26 = int_to_ptr.vmem [resolvable:$false] %s5351_s26 }
  0x9e   : > { %2542 = vst [vmem:[#allocation3 + $0x18] sm:$0x1] %v5431_v0  ;;  %2543 = vst [vmem:[#allocation3 + $0x30] sm:$0x1] %v5431_v0  ;;  %v400_v50 = vld [vmem:[%s5692_s28 + $0x20] sm:$0xff]  ;;  %v401_v51 = vld [vmem:[%s5692_s28 + $0x28] sm:$0xff]  ;;  %v438_v54 = vmul.f32 %v5711_v38, %v399_v48  ;;  %p5354_p12 = scmp.lt.s32.totalorder %s6488_s25, %s5352_s26 }
  0x9f   : > { %2544 = vst [vmem:[#allocation3 + $0x48] sm:$0x1] %v5431_v0  ;;  %2545 = vst [vmem:[#allocation3 + $0x60] sm:$0x1] %v5431_v0  ;;  %4215 = vmatpush3.bf16.msra.mxu0 %v5102_v23  ;;  %v506_v52 = vmax.f32 %v474_v43, 0.0  ;;  %v507_v53 = vmax.f32 %v475_v44, 0.0  ;;  %v439_v55 = vmul.f32 %v5711_v38, %v400_v50  ;;  %v476_v56 = vadd.f32 %v5716_v39, %v437_v49  ;;  %p5349_p3 = pnand %p5348_p10, %p5640_p5 }
  0xa0   : > { %2546 = vst [vmem:[#allocation3 + $0x78] sm:$0x1] %v5431_v0  ;;  %2547 = vst [vmem:[#allocation3 + $0x90] sm:$0x1] %v5431_v0  ;;  %4327 = vmatpush3.bf16.msra.mxu1 %v5103_v24  ;;  %4216 = vmatprep.subr.bf16.mxu0 %v5104_v25  ;;  %v440_v57 = vmul.f32 %v5711_v38, %v401_v51  ;;  %v5114_v58 = vld [vmem:[#allocation7 + $0x148] sm:$0xff]   ;;  %v477_v60 = vadd.f32 %v5716_v39, %v438_v54  ;;  %v402_v63 = vld [vmem:[%s5692_s28 + $0x30] sm:$0xff] }
  0xa1   : > { %2548 = vst [vmem:[#allocation3 + $0xa8] sm:$0x1] %v5431_v0  ;;  %2549 = vst [vmem:[#allocation3 + $0xc0] sm:$0x1] %v5431_v0  ;;  %4328 = vmatprep.subr.bf16.mxu1 %v5105_v26  ;;  %v691_v59 = vpack.c.bf16 %v507_v53, %v506_v52  ;;  %v5733_v61 = vadd.f32 %v5716_v39, %v439_v55  ;;  %v5115_v62 = vld [vmem:[#allocation7 + $0x108] sm:$0xff]   ;;  %v508_v1 = vmax.f32 %v476_v56, 0.0  ;;  %p5350_p7 = pneg %p5349_p3 }
  0xa2   : > { %2550 = vst [vmem:[#allocation3 + $0xd8] sm:$0x1] %v5431_v0  ;;  %2551 = vst [vmem:[#allocation3 + $0xf0] sm:$0x1] %v5431_v0  ;;  %v5738_v2 = vadd.f32 %v5716_v39, %v440_v57  ;;  %v441_v3 = vmul.f32 %v5711_v38, %v402_v63  ;;  %v404_v5 = vld [vmem:[%s5692_s28 + $0x40] sm:$0xff]  ;;  %v405_v6 = vld [vmem:[%s5692_s28 + $0x48] sm:$0xff] }
  0xa3   : > { %2552 = vst [vmem:[#allocation3 + $0x108] sm:$0x1] %v5431_v0  ;;  %2553 = vst [vmem:[#allocation3 + $0x120] sm:$0x1] %v5431_v0  ;;  %4217 = vmatpush3.bf16.msra.mxu0 %v5106_v27  ;;  %v5744_v7 = vld [vmem:[#allocation2 + $0x2] sm:$0xff]  ;;  %v5746_v8 = vld [vmem:[#allocation2 + $0xa] sm:$0xff]  ;;  %v443_v11 = vmul.f32 %v5711_v38, %v404_v5  ;;  %v444_v12 = vmul.f32 %v5711_v38, %v405_v6 }
  0xa4   : > { %2554 = vst [vmem:[#allocation3 + $0x138] sm:$0x1] %v5431_v0  ;;  %2555 = vst [vmem:[#allocation3 + $0x150] sm:$0x1] %v5431_v0  ;;  %4329 = vmatpush3.bf16.msra.mxu1 %v5107_v28  ;;  %4218 = vmatprep.subr.bf16.mxu0 %v5108_v29  ;;  %v509_v9 = vmax.f32 %v477_v60, 0.0  ;;  %v510_v10 = vmax.f32 %v5733_v61, 0.0  ;;  %v5753_v16 = vadd.f32 %v5716_v39, %v441_v3 }
  0xa5   : > { %2556 = vst [vmem:[#allocation3 + $0x168] sm:$0x1] %v5431_v0  ;;  %2557 = vst [vmem:[#allocation3 + $0x180] sm:$0x1] %v5431_v0  ;;  %4330 = vmatprep.subr.bf16.mxu1 %v5109_v30  ;;  %v403_v0 = vld [vmem:[%s5692_s28 + $0x38] sm:$0xff]  ;;  %v5116_v13 = vld [vmem:[#allocation7 + $0x150] sm:$0xff]   ;;  %v5762_v19 = vadd.f32 %v5716_v39, %v443_v11  ;;  %v5765_v20 = vadd.f32 %v5716_v39, %v444_v12  ;;  %v738_v35 = vpack.c.bf16 %v5746_v8, %v5744_v7 }
  0xa6   : > { %578 = vst [vmem:[#allocation2 + $0x19] sm:$0xff] %v506_v52  ;;  %579 = vst [vmem:[#allocation2 + $0x21] sm:$0xff] %v507_v53  ;;  %v442_v4 = vmul.f32 %v5711_v38, %v403_v0  ;;  %v5117_v14 = vld [vmem:[#allocation7 + $0x110] sm:$0xff]   ;;  %v511_v15 = vmax.f32 %v5738_v2, 0.0  ;;  %v407_v21 = vld [vmem:[%s5692_s28 + $0x58] sm:$0xff]  ;;  %v512_v25 = vmax.f32 %v5753_v16, 0.0  ;;  %v5784_v36 = vpack.c.bf16 %v509_v9, %v508_v1 }
  0xa7   : > { %4219 = vmatpush3.bf16.msra.mxu0 %v5110_v31  ;;  %580 = vst [vmem:[#allocation2 + $0x31] sm:$0xff] %v508_v1  ;;  %v406_v18 = vld [vmem:[%s5692_s28 + $0x50] sm:$0xff]  ;;  %581 = vst [vmem:[#allocation2 + $0x39] sm:$0xff] %v509_v9  ;;  %v408_v23 = vld [vmem:[%s5692_s28 + $0x60] sm:$0xff]  ;;  %v446_v27 = vmul.f32 %v5711_v38, %v407_v21  ;;  %v514_v28 = vmax.f32 %v5762_v19, 0.0  ;;  %v515_v29 = vmax.f32 %v5765_v20, 0.0 }
  0xa8   : > { %4331 = vmatpush3.bf16.msra.mxu1 %v5111_v32  ;;  %4428 = vmatprep.subr.bf16.mxu0 %v5112_v42  ;;  %v5756_v17 = vadd.f32 %v5716_v39, %v442_v4  ;;  %582 = vst [vmem:[#allocation2 + $0x49] sm:$0xff] %v510_v10  ;;  %v445_v22 = vmul.f32 %v5711_v38, %v406_v18  ;;  %v409_v24 = vld [vmem:[%s5692_s28 + $0x68] sm:$0xff]  ;;  %583 = vst [vmem:[#allocation2 + $0x51] sm:$0xff] %v511_v15  ;;  %v5118_v32 = vld [vmem:[#allocation7 + $0x158] sm:$0xff]   ;;  %s5353_s21 = scalar_lea.vmem %s5352_s26, 2048 }
  0xa9   : > { %v447_v31 = vmul.f32 %v5711_v38, %v408_v23  ;;  %584 = vst [vmem:[#allocation2 + $0x61] sm:$0xff] %v512_v25  ;;  %v5791_v37 = vadd.f32 %v5716_v39, %v446_v27  ;;  %v448_v40 = vmul.f32 %v5711_v38, %v409_v24  ;;  %586 = vst [vmem:[#allocation2 + $0x79] sm:$0xff] %v514_v28  ;;  %v5119_v44 = vld [vmem:[#allocation7 + $0x118] sm:$0xff]   ;;  %v412_v50 = vld [vmem:[%s5692_s28 + $0x80] sm:$0xff]  ;;  %p5355_p1 = scmp.lt.s32.totalorder %s5353_s21, %s5347_s19 }
  0xaa   : > { %1652 = vmatmul.mubr.bf16.vlgmr.msra.gmra.mrb[0].mxu0 %v5432_v45  ;;  %v513_v26 = vmax.f32 %v5756_v17, 0.0  ;;  %v5779_v30 = vadd.f32 %v5716_v39, %v445_v22  ;;  %587 = vst [vmem:[#allocation2 + $0x81] sm:$0xff] %v515_v29  ;;  %v410_v45 = vld [vmem:[%s5692_s28 + $0x70] sm:$0xff]  ;;  %v411_v48 = vld [vmem:[%s5692_s28 + $0x78] sm:$0xff]  ;;  %v413_v51 = vld [vmem:[%s5692_s28 + $0x88] sm:$0xff]  ;;  %v451_v55 = vmul.f32 %v5711_v38, %v412_v50 }
  0xab   : > { %4429 = vmatpush3.bf16.msra.mxu0 %v5113_v46  ;;  %1659 = vmatprep.mubr.bf16.mxu0 %v691_v59  ;;  %v5800_v43 = vadd.f32 %v5716_v39, %v447_v31  ;;  %v517_v46 = vmax.f32 %v5791_v37, 0.0  ;;  %v5805_v47 = vadd.f32 %v5716_v39, %v448_v40  ;;  %v449_v49 = vmul.f32 %v5711_v38, %v410_v45  ;;  %v5120_v7 = vld [vmem:[#allocation7 + $0x160] sm:$0xff]   ;;  %v414_v23 = vld [vmem:[%s5692_s28 + $0x90] sm:$0xff]  ;;  %v415_v24 = vld [vmem:[%s5692_s28 + $0x98] sm:$0xff]  ;;  %p5356_p2 = por %p5355_p1, %p5354_p12 }
  0xac   : > { %4430 = vmatprep.subr.bf16.mxu0 %v5114_v58  ;;  %585 = vst [vmem:[#allocation2 + $0x69] sm:$0xff] %v513_v26  ;;  %v516_v42 = vmax.f32 %v5779_v30, 0.0  ;;  %v450_v54 = vmul.f32 %v5711_v38, %v411_v48  ;;  %v452_v56 = vmul.f32 %v5711_v38, %v413_v51  ;;  %v5830_v3 = vadd.f32 %v5716_v39, %v451_v55  ;;  %v5121_v61 = vld [vmem:[#allocation7 + $0x120] sm:$0xff]   ;;  %v5124_v45 = vld [vmem:[#allocation7 + $0x168] sm:$0xff]   ;;  %v5133_v30 = vld [vmem:[#allocation7 + $0x198] sm:$0xff]  }
  0xad   : > { %v754_v33 = vld [vmem:[#allocation2 + $0x18] sm:$0xff]  ;;  %v755_v34 = vld [vmem:[#allocation2 + $0x20] sm:$0xff]  ;;  %v518_v53 = vmax.f32 %v5800_v43, 0.0  ;;  %589 = vst [vmem:[#allocation2 + $0x99] sm:$0xff] %v517_v46  ;;  %v519_v58 = vmax.f32 %v5805_v47, 0.0  ;;  %v5822_v59 = vadd.f32 %v5716_v39, %v449_v49  ;;  %v5870_v31 = vpack.c.bf16 %v513_v26, %v512_v25  ;;  %v5125_v55 = vld [vmem:[#allocation7 + $0x128] sm:$0xff]   ;;  %p5357_p4 = pnand %p5356_p2, %p5350_p7 }
  0xae   : > { %v786_v41 = vpack.c.bf16 %v755_v34, %v754_v33  ;;  %v756_v52 = vld [vmem:[#allocation2 + $0x30] sm:$0xff]  ;;  %588 = vst [vmem:[#allocation2 + $0x91] sm:$0xff] %v516_v42  ;;  %v757_v57 = vld [vmem:[#allocation2 + $0x38] sm:$0xff]  ;;  %v709_v63 = vld [vmem:[#allocation2 + $0x22] sm:$0xff]  ;;  %v5827_v1 = vadd.f32 %v5716_v39, %v450_v54  ;;  %v5833_v4 = vadd.f32 %v5716_v39, %v452_v56  ;;  %v522_v9 = vmax.f32 %v5830_v3, 0.0 }
  0xaf   : > { %4431 = vmatpush3.bf16.msra.mxu0 %v5115_v62  ;;  %v787_v60 = vpack.c.bf16 %v757_v57, %v756_v52  ;;  %v708_v62 = vld [vmem:[#allocation2 + $0x1a] sm:$0xff]  ;;  %v758_v0 = vld [vmem:[#allocation2 + $0x48] sm:$0xff]  ;;  %590 = vst [vmem:[#allocation2 + $0xa9] sm:$0xff] %v518_v53  ;;  %v759_v5 = vld [vmem:[#allocation2 + $0x50] sm:$0xff]  ;;  %v520_v6 = vmax.f32 %v5822_v59, 0.0  ;;  %v454_v33 = vmul.f32 %v5711_v38, %v415_v24 }
  0xb0   : > { %4432 = vmatprep.subr.bf16.mxu0 %v5116_v13  ;;  %1812 = vmatprep.mubr.bf16.mxu1 %v786_v41  ;;  %591 = vst [vmem:[#allocation2 + $0xb1] sm:$0xff] %v519_v58  ;;  %v521_v8 = vmax.f32 %v5827_v1, 0.0  ;;  %v523_v11 = vmax.f32 %v5833_v4, 0.0  ;;  %v5841_v12 = vpack.c.bf16 %v709_v63, %v708_v62  ;;  %v5847_v13 = vpack.c.bf16 %v511_v15, %v510_v10  ;;  %v710_v2 = vld [vmem:[#allocation2 + $0x32] sm:$0xff]  ;;  %v5122_v10 = vld [vmem:[#allocation7 + $0x1c0] sm:$0xff]   ;;  %v712_v16 = vld [vmem:[#allocation2 + $0x4a] sm:$0xff] }
  0xb1   : > { %1813 = vmatmul.mubr.bf16.vlgmr.msra.gmra.mrb[0].mxu1 %v738_v35  ;;  %592 = vst [vmem:[#allocation2 + $0xc1] sm:$0xff] %v520_v6  ;;  %594 = vst [vmem:[#allocation2 + $0xd9] sm:$0xff] %v522_v9  ;;  %v711_v15 = vld [vmem:[#allocation2 + $0x3a] sm:$0xff]  ;;  %4540 = vmatprep.subr.bf16.mxu1 %v5122_v10  ;;  %v5880_v40 = vadd.f32 %v5716_v39, %v454_v33  ;;  %v713_v17 = vld [vmem:[#allocation2 + $0x52] sm:$0xff] }
  0xb2   : > { %1660 = vmatmul.mubr.bf16.gmra.mrb[4].mxu0 %v786_v41  ;;  %1820 = vmatprep.mubr.bf16.mxu1 %v787_v60  ;;  %593 = vst [vmem:[#allocation2 + $0xc9] sm:$0xff] %v521_v8  ;;  %595 = vst [vmem:[#allocation2 + $0xe1] sm:$0xff] %v523_v11  ;;  %v760_v18 = vld [vmem:[#allocation2 + $0x60] sm:$0xff]  ;;  %v5864_v27 = vpack.c.bf16 %v711_v15, %v710_v2  ;;  %v762_v48 = vld [vmem:[#allocation2 + $0x78] sm:$0xff] }
  0xb3   : > { %4433 = vmatpush3.bf16.msra.mxu0 %v5117_v14  ;;  %1667 = vmatprep.mubr.bf16.mxu0 %v5784_v36  ;;  %v5851_v14 = vpack.c.bf16 %v759_v5, %v758_v0  ;;  %v761_v21 = vld [vmem:[#allocation2 + $0x68] sm:$0xff]  ;;  %v5123_v22 = vld [vmem:[#allocation7 + $0x180] sm:$0xff]   ;;  %v525_v51 = vmax.f32 %v5880_v40, 0.0  ;;  %v418_v63 = vld [vmem:[%s5692_s28 + $0xb0] sm:$0xff]  ;;  %v5906_v5 = vpack.c.bf16 %v713_v17, %v712_v16 }
  0xb4   : > { %4434 = vmatprep.subr.bf16.mxu0 %v5118_v32  ;;  %4541 = vmatpush3.bf16.msra.mxu1 %v5123_v22  ;;  %v453_v32 = vmul.f32 %v5711_v38, %v414_v23  ;;  %v5874_v34 = vpack.c.bf16 %v761_v21, %v760_v18  ;;  %v416_v41 = vld [vmem:[%s5692_s28 + $0xa0] sm:$0xff]  ;;  %v5126_v56 = vld [vmem:[#allocation7 + $0x1c8] sm:$0xff]   ;;  %v419_v0 = vld [vmem:[%s5692_s28 + $0xb8] sm:$0xff] }
  0xb5   : > { %v455_v25 = vmul.f32 %v5711_v38, %v416_v41  ;;  %v763_v49 = vld [vmem:[#allocation2 + $0x80] sm:$0xff]  ;;  %597 = vst [vmem:[#allocation2 + $0xf9] sm:$0xff] %v525_v51  ;;  %v5127_v62 = vld [vmem:[#allocation7 + $0x188] sm:$0xff]   ;;  %4542 = vmatprep.subr.bf16.mxu1 %v5126_v56  ;;  %v458_v2 = vmul.f32 %v5711_v38, %v419_v0  ;;  %v5129_v22 = vld [vmem:[#allocation7 + $0x130] sm:$0xff]  }
  0xb6   : > { %v5877_v35 = vadd.f32 %v5716_v39, %v453_v32  ;;  %v420_v10 = vld [vmem:[%s5692_s28 + $0xc0] sm:$0xff]  ;;  %v421_v15 = vld [vmem:[%s5692_s28 + $0xc8] sm:$0xff]  ;;  %v5918_v18 = vpack.c.bf16 %v763_v49, %v762_v48  ;;  %v5130_v32 = vld [vmem:[#allocation7 + $0x1d0] sm:$0xff]  }
  0xb7   : > { %4435 = vmatpush3.bf16.msra.mxu0 %v5119_v44  ;;  %v417_v44 = vld [vmem:[%s5692_s28 + $0xa8] sm:$0xff]  ;;  %v5893_v52 = vadd.f32 %v5716_v39, %v455_v25  ;;  %v459_v19 = vmul.f32 %v5711_v38, %v420_v10  ;;  %v460_v20 = vmul.f32 %v5711_v38, %v421_v15  ;;  %v5930_v21 = vadd.f32 %v5716_v39, %v458_v2  ;;  %v422_v16 = vld [vmem:[%s5692_s28 + $0xd0] sm:$0xff]  ;;  %v423_v56 = vld [vmem:[%s5692_s28 + $0xd8] sm:$0xff] }
  0xb8   : > { %4436 = vmatprep.subr.bf16.mxu0 %v5120_v7  ;;  %v456_v26 = vmul.f32 %v5711_v38, %v417_v44  ;;  %v524_v50 = vmax.f32 %v5877_v35, 0.0  ;;  %v5912_v7 = vpack.c.bf16 %v515_v29, %v514_v28  ;;  %4543 = vmatpush3.bf16.msra.mxu1 %v5127_v62  ;;  %v5128_v28 = vld [vmem:[#allocation7 + $0x170] sm:$0xff]   ;;  %v714_v17 = vld [vmem:[#allocation2 + $0x62] sm:$0xff]  ;;  %v461_v49 = vmul.f32 %v5711_v38, %v422_v16  ;;  %v5132_v0 = vld [vmem:[#allocation7 + $0x1d8] sm:$0xff]  }
  0xb9   : > { %1821 = vmatmul.mubr.bf16.gmra.mrb[4].mxu1 %v5841_v12  ;;  %v526_v57 = vmax.f32 %v5893_v52, 0.0  ;;  %v5934_v23 = vadd.f32 %v5716_v39, %v459_v19  ;;  %v5937_v24 = vadd.f32 %v5716_v39, %v460_v20  ;;  %v529_v41 = vmax.f32 %v5930_v21, 0.0  ;;  %v5131_v44 = vld [vmem:[#allocation7 + $0x190] sm:$0xff]   ;;  %4544 = vmatprep.subr.bf16.mxu1 %v5130_v32  ;;  %v5143_v59 = vld [vmem:[#allocation7 + $0x1b8] sm:$0xff]   ;;  %v6035_v1 = vld [vmem:[#allocation7 + $0x200] sm:$0xff]  }
  0xba   : > { %1668 = vmatmul.mubr.bf16.gmra.mrb[8].mxu0 %v787_v60  ;;  %1828 = vmatprep.mubr.bf16.mxu1 %v5851_v14  ;;  %v5896_v54 = vadd.f32 %v5716_v39, %v456_v26  ;;  %596 = vst [vmem:[#allocation2 + $0xf1] sm:$0xff] %v524_v50  ;;  %v715_v25 = vld [vmem:[#allocation2 + $0x6a] sm:$0xff]  ;;  %v462_v62 = vmul.f32 %v5711_v38, %v423_v56  ;;  %v718_v47 = vld [vmem:[#allocation2 + $0x92] sm:$0xff] }
  0xbb   : > { %1675 = vmatprep.mubr.bf16.mxu0 %v5847_v13  ;;  %4437 = vmatpush3.bf16.msra.mxu0 %v5121_v61  ;;  %v457_v61 = vmul.f32 %v5711_v38, %v418_v63  ;;  %598 = vst [vmem:[#allocation2 + $0x109] sm:$0xff] %v526_v57  ;;  %v764_v26 = vld [vmem:[#allocation2 + $0x90] sm:$0xff]  ;;  %v531_v48 = vmax.f32 %v5937_v24, 0.0  ;;  %601 = vst [vmem:[#allocation2 + $0x129] sm:$0xff] %v529_v41  ;;  %v5959_v63 = vadd.f32 %v5716_v39, %v461_v49  ;;  %v766_v49 = vld [vmem:[#allocation2 + $0xa8] sm:$0xff] }
  0xbc   : > { %4438 = vmatprep.subr.bf16.mxu0 %v5124_v45  ;;  %v527_v60 = vmax.f32 %v5896_v54, 0.0  ;;  %v530_v45 = vmax.f32 %v5934_v23, 0.0  ;;  %4545 = vmatpush3.bf16.msra.mxu1 %v5131_v44  ;;  %v5962_v2 = vpack.c.bf16 %v715_v25, %v714_v17  ;;  %v5968_v10 = vpack.c.bf16 %v517_v46, %v516_v42  ;;  %v5134_v42 = vld [vmem:[#allocation7 + $0x178] sm:$0xff]  }
  0xbd   : > { %v5927_v29 = vadd.f32 %v5716_v39, %v457_v61  ;;  %603 = vst [vmem:[#allocation2 + $0x141] sm:$0xff] %v531_v48  ;;  %v424_v61 = vld [vmem:[%s5692_s28 + $0xe0] sm:$0xff]  ;;  %v5974_v20 = vadd.f32 %v5716_v39, %v462_v62  ;;  %4546 = vmatprep.subr.bf16.mxu1 %v5132_v0  ;;  %v5135_v17 = vld [vmem:[#allocation7 + $0x138] sm:$0xff]   ;;  %v5996_v0 = vpack.c.bf16 %v519_v58, %v518_v53 }
  0xbe   : > { %599 = vst [vmem:[#allocation2 + $0x111] sm:$0xff] %v527_v60  ;;  %602 = vst [vmem:[#allocation2 + $0x139] sm:$0xff] %v530_v45  ;;  %v463_v15 = vmul.f32 %v5711_v38, %v424_v61  ;;  %v716_v25 = vld [vmem:[#allocation2 + $0x7a] sm:$0xff]  ;;  %v6059_v3 = vpack.c.bf16 %v525_v51, %v524_v50  ;;  %v6073_v35 = vpack.c.bf16 %v527_v60, %v526_v57 }
  0xbf   : > { %4439 = vmatpush3.bf16.msra.mxu0 %v5125_v55  ;;  %v528_v33 = vmax.f32 %v5927_v29, 0.0  ;;  %v765_v55 = vld [vmem:[#allocation2 + $0x98] sm:$0xff]  ;;  %v533_v37 = vmax.f32 %v5974_v20, 0.0  ;;  %v5136_v61 = vld [vmem:[#allocation7 + $0x1e0] sm:$0xff]   ;;  %v6101_v29 = vpack.c.bf16 %v531_v48, %v530_v45 }
  0xc0   : > { %4440 = vmatprep.subr.bf16.mxu0 %v5128_v28  ;;  %v5971_v19 = vpack.c.bf16 %v765_v55, %v764_v26  ;;  %v532_v28 = vmax.f32 %v5959_v63, 0.0  ;;  %v502_v44 = vadd.f32 %v5716_v39, %v463_v15  ;;  %v717_v26 = vld [vmem:[#allocation2 + $0x82] sm:$0xff]  ;;  %4547 = vmatpush3.bf16.msra.mxu1 %v5133_v30  ;;  %v767_v55 = vld [vmem:[#allocation2 + $0xb0] sm:$0xff]  ;;  %v719_v53 = vld [vmem:[#allocation2 + $0x9a] sm:$0xff] }
  0xc1   : > { %1829 = vmatmul.mubr.bf16.gmra.mrb[8].mxu1 %v5864_v27  ;;  %600 = vst [vmem:[#allocation2 + $0x121] sm:$0xff] %v528_v33  ;;  %605 = vst [vmem:[#allocation2 + $0x159] sm:$0xff] %v533_v37  ;;  %v5990_v62 = vpack.c.bf16 %v717_v26, %v716_v25  ;;  %4548 = vmatprep.subr.bf16.mxu1 %v5136_v61  ;;  %v426_v30 = vld [vmem:[%s5692_s28 + $0xf0] sm:$0xff]  ;;  %v768_v58 = vld [vmem:[#allocation2 + $0xc0] sm:$0xff]  ;;  %v6087_v52 = vpack.c.bf16 %v529_v41, %v528_v33 }
  0xc2   : > { %1676 = vmatmul.mubr.bf16.gmra.mrb[12].mxu0 %v5851_v14  ;;  %1836 = vmatprep.mubr.bf16.mxu1 %v5874_v34  ;;  %604 = vst [vmem:[#allocation2 + $0x151] sm:$0xff] %v532_v28  ;;  %v534_v16 = vmax.f32 %v502_v44, 0.0  ;;  %v5138_v44 = vld [vmem:[#allocation7 + $0x1e8] sm:$0xff]   ;;  %v465_v43 = vmul.f32 %v5711_v38, %v426_v30  ;;  %v770_v30 = vld [vmem:[#allocation2 + $0xd8] sm:$0xff]  ;;  %v6115_v23 = vpack.c.bf16 %v533_v37, %v532_v28 }
  0xc3   : > { %1683 = vmatprep.mubr.bf16.mxu0 %v5870_v31  ;;  %4441 = vmatpush3.bf16.msra.mxu0 %v5129_v22  ;;  %v425_v22 = vld [vmem:[%s5692_s28 + $0xe8] sm:$0xff]  ;;  %v726_v50 = vld [vmem:[#allocation2 + $0xf2] sm:$0xff]  ;;  %v727_v51 = vld [vmem:[#allocation2 + $0xfa] sm:$0xff] }
  0xc4   : > { %v464_v32 = vmul.f32 %v5711_v38, %v425_v22  ;;  %606 = vst [vmem:[#allocation2 + $0x169] sm:$0xff] %v534_v16  ;;  %4442 = vmatprep.subr.bf16.mxu0 %v5134_v42  ;;  %v6000_v22 = vpack.c.bf16 %v767_v55, %v766_v49  ;;  %v427_v42 = vld [vmem:[%s5692_s28 + $0xf8] sm:$0xff]  ;;  %v5139_v25 = vld [vmem:[#allocation7 + $0x1a8] sm:$0xff]   ;;  %v5140_v49 = vld [vmem:[#allocation7 + $0x1f0] sm:$0xff]  }
  0xc5   : > { %v728_v57 = vld [vmem:[#allocation2 + $0x10a] sm:$0xff]  ;;  %v729_v60 = vld [vmem:[#allocation2 + $0x112] sm:$0xff]  ;;  %v732_v45 = vld [vmem:[#allocation2 + $0x13a] sm:$0xff] }
  0xc6   : > { %v503_v46 = vadd.f32 %v5716_v39, %v464_v32  ;;  %v5137_v32 = vld [vmem:[#allocation7 + $0x1a0] sm:$0xff]   ;;  %v731_v41 = vld [vmem:[#allocation2 + $0x12a] sm:$0xff] }
  0xc7   : > { %4443 = vmatpush3.bf16.msra.mxu0 %v5135_v17  ;;  %4549 = vmatpush3.bf16.msra.mxu1 %v5137_v32  ;;  %v6011_v17 = vadd.f32 %v5716_v39, %v465_v43  ;;  %v5141_v32 = vld [vmem:[#allocation7 + $0x1b0] sm:$0xff]   ;;  %v733_v48 = vld [vmem:[#allocation2 + $0x142] sm:$0xff] }
  0xc8   : > { %v535_v56 = vmax.f32 %v503_v46, 0.0  ;;  %v466_v46 = vmul.f32 %v5711_v38, %v427_v42  ;;  %4550 = vmatprep.subr.bf16.mxu1 %v5138_v44  ;;  %v6023_v38 = vpack.c.bf16 %v521_v8, %v520_v6  ;;  %v720_v6 = vld [vmem:[#allocation2 + $0xaa] sm:$0xff]  ;;  %v721_v8 = vld [vmem:[#allocation2 + $0xb2] sm:$0xff]  ;;  %v771_v42 = vld [vmem:[#allocation2 + $0xe0] sm:$0xff]  ;;  %4860 = vmatprep.subr.bf16.mxu0 %v6035_v1 }
  0xc9   : > { %1837 = vmatmul.mubr.bf16.gmra.mrb[12].mxu1 %v5906_v5  ;;  %v536_v55 = vmax.f32 %v6011_v17, 0.0  ;;  %v6039_v43 = vpack.c.bf16 %v721_v8, %v720_v6  ;;  %v776_v6 = vld [vmem:[#allocation2 + $0x120] sm:$0xff]  ;;  %v777_v8 = vld [vmem:[#allocation2 + $0x128] sm:$0xff]  ;;  %v734_v20 = vld [vmem:[#allocation2 + $0x152] sm:$0xff] }
  0xca   : > { %1684 = vmatmul.mubr.bf16.gmra.mrb[16].mxu0 %v5874_v34  ;;  %1844 = vmatprep.mubr.bf16.mxu1 %v5918_v18  ;;  %607 = vst [vmem:[#allocation2 + $0x171] sm:$0xff] %v535_v56  ;;  %v5998_v15 = vpack.c.bf16 %v535_v56, %v534_v16  ;;  %v769_v16 = vld [vmem:[#allocation2 + $0xc8] sm:$0xff]  ;;  %v6014_v26 = vadd.f32 %v5716_v39, %v466_v46  ;;  %v5142_v39 = vld [vmem:[#allocation7 + $0x1f8] sm:$0xff]  }
  0xcb   : > { %1691 = vmatprep.mubr.bf16.mxu0 %v5912_v7  ;;  %4551 = vmatpush3.bf16.msra.mxu1 %v5139_v25  ;;  %v6017_v56 = vpack.c.bf16 %v719_v53, %v718_v47  ;;  %v6026_v44 = vpack.c.bf16 %v769_v16, %v768_v58  ;;  %608 = vst [vmem:[#allocation2 + $0x181] sm:$0xff] %v536_v55  ;;  %v722_v58 = vld [vmem:[#allocation2 + $0xc2] sm:$0xff]  ;;  %v723_v46 = vld [vmem:[#allocation2 + $0xca] sm:$0xff]  ;;  %v773_v25 = vld [vmem:[#allocation2 + $0xf8] sm:$0xff] }
  0xcc   : > { %v537_v61 = vmax.f32 %v6014_v26, 0.0  ;;  %4552 = vmatprep.subr.bf16.mxu1 %v5140_v49  ;;  %v6045_v47 = vpack.c.bf16 %v523_v11, %v522_v9  ;;  %v6047_v53 = vpack.c.bf16 %v771_v42, %v770_v30  ;;  %v772_v16 = vld [vmem:[#allocation2 + $0xf0] sm:$0xff]  ;;  %v6053_v49 = vpack.c.bf16 %v723_v46, %v722_v58  ;;  %v724_v9 = vld [vmem:[#allocation2 + $0xda] sm:$0xff]  ;;  %v725_v11 = vld [vmem:[#allocation2 + $0xe2] sm:$0xff] }
  0xcd   : > { %v6061_v4 = vpack.c.bf16 %v773_v25, %v772_v16  ;;  %v6081_v30 = vpack.c.bf16 %v727_v51, %v726_v50  ;;  %v6089_v54 = vpack.c.bf16 %v777_v8, %v776_v6  ;;  %v778_v42 = vld [vmem:[#allocation2 + $0x138] sm:$0xff]  ;;  %v779_v58 = vld [vmem:[#allocation2 + $0x140] sm:$0xff]  ;;  %v6095_v46 = vpack.c.bf16 %v729_v60, %v728_v57  ;;  %v780_v16 = vld [vmem:[#allocation2 + $0x150] sm:$0xff] }
  0xce   : > { %609 = vst [vmem:[#allocation2 + $0x189] sm:$0xff] %v537_v61  ;;  %v6103_v21 = vpack.c.bf16 %v779_v58, %v778_v42  ;;  %v730_v33 = vld [vmem:[#allocation2 + $0x122] sm:$0xff]  ;;  %v781_v25 = vld [vmem:[#allocation2 + $0x158] sm:$0xff] }
  0xcf   : > { %4553 = vmatpush3.bf16.msra.mxu1 %v5141_v32  ;;  %v774_v32 = vld [vmem:[#allocation2 + $0x108] sm:$0xff]  ;;  %v6117_v24 = vpack.c.bf16 %v781_v25, %v780_v16  ;;  %v735_v28 = vld [vmem:[#allocation2 + $0x15a] sm:$0xff]  ;;  %v804_v16 = vld [vmem:[#allocation2 + $0x31] sm:$0xff] }
  0xd0   : > { %4554 = vmatprep.subr.bf16.mxu1 %v5142_v39  ;;  %v775_v39 = vld [vmem:[#allocation2 + $0x110] sm:$0xff]  ;;  %v6131_v51 = vpack.c.bf16 %v735_v28, %v734_v20  ;;  %v802_v8 = vld [vmem:[#allocation2 + $0x19] sm:$0xff]  ;;  %v803_v57 = vld [vmem:[#allocation2 + $0x21] sm:$0xff] }
  0xd1   : > { %1845 = vmatmul.mubr.bf16.gmra.mrb[16].mxu1 %v5962_v2  ;;  %v6075_v40 = vpack.c.bf16 %v775_v39, %v774_v32  ;;  %v783_v32 = vld [vmem:[#allocation2 + $0x170] sm:$0xff]  ;;  %v6123_v39 = vpack.c.bf16 %v733_v48, %v732_v45  ;;  %v834_v58 = vpack.c.bf16 %v803_v57, %v802_v8  ;;  %v805_v25 = vld [vmem:[#allocation2 + $0x39] sm:$0xff]  ;;  %v978_v26 = vld [vmem:[#allocation2 + $0x1a1] sm:$0xff] }
  0xd2   : > { %1692 = vmatmul.mubr.bf16.gmra.mrb[20].mxu0 %v5918_v18  ;;  %1852 = vmatprep.mubr.bf16.mxu1 %v5971_v19  ;;  %v784_v37 = vld [vmem:[#allocation2 + $0x180] sm:$0xff]  ;;  %v736_v60 = vld [vmem:[#allocation2 + $0x16a] sm:$0xff]  ;;  %v737_v42 = vld [vmem:[#allocation2 + $0x172] sm:$0xff] }
  0xd3   : > { %1699 = vmatprep.mubr.bf16.mxu0 %v5968_v10  ;;  %4555 = vmatpush3.bf16.msra.mxu1 %v5143_v59  ;;  %v6067_v59 = vpack.c.bf16 %v725_v11, %v724_v9  ;;  %v6109_v9 = vpack.c.bf16 %v731_v41, %v730_v33  ;;  %v782_v11 = vld [vmem:[#allocation2 + $0x168] sm:$0xff]  ;;  %v6139_v33 = vpack.c.bf16 %v737_v42, %v736_v60  ;;  %v900_v45 = vld [vmem:[#allocation2 + $0x38] sm:$0xff]  ;;  %v5146_v48 = vld [vmem:[#allocation7 + $0x210] sm:$0xff]  }
  0xd4   : > { %v6125_v63 = vpack.c.bf16 %v783_v32, %v782_v11  ;;  %v5145_v41 = vld [vmem:[#allocation7 + $0x208] sm:$0xff]   ;;  %v835_v11 = vpack.c.bf16 %v805_v25, %v804_v16  ;;  %v5147_v20 = vld [vmem:[#allocation7 + $0x218] sm:$0xff]  }
  0xd5   : > { %v785_v50 = vld [vmem:[#allocation2 + $0x188] sm:$0xff]  ;;  %v807_v28 = vld [vmem:[#allocation2 + $0x51] sm:$0xff] }
  0xd6   : > { %v6133_v6 = vpack.c.bf16 %v785_v50, %v784_v37  ;;  %v880_v60 = vld [vmem:[#allocation2 + $0x182] sm:$0xff]  ;;  %v881_v42 = vld [vmem:[#allocation2 + $0x18a] sm:$0xff] }
  0xd9   : > { %1853 = vmatmul.mubr.bf16.gmra.mrb[20].mxu1 %v5990_v62 }
  0xda   : > { %1700 = vmatmul.mubr.bf16.gmra.mrb[24].mxu0 %v5971_v19  ;;  %1860 = vmatprep.mubr.bf16.mxu1 %v6000_v22 }
  0xdb   : > { %1707 = vmatprep.mubr.bf16.mxu0 %v5996_v0 }
  0xe1   : > { %1861 = vmatmul.mubr.bf16.gmra.mrb[24].mxu1 %v6017_v56 }
  0xe2   : > { %1708 = vmatmul.mubr.bf16.gmra.mrb[28].mxu0 %v6000_v22  ;;  %1868 = vmatprep.mubr.bf16.mxu1 %v6026_v44 }
  0xe3   : > { %1715 = vmatprep.mubr.bf16.mxu0 %v6023_v38 }
  0xe9   : > { %1869 = vmatmul.mubr.bf16.gmra.mrb[28].mxu1 %v6039_v43 }
  0xea   : > { %1716 = vmatmul.mubr.bf16.gmra.mrb[32].mxu0 %v6026_v44  ;;  %1876 = vmatprep.mubr.bf16.mxu1 %v6047_v53 }
  0xeb   : > { %1723 = vmatprep.mubr.bf16.mxu0 %v6045_v47 }
  0xf1   : > { %1877 = vmatmul.mubr.bf16.gmra.mrb[32].mxu1 %v6053_v49 }
  0xf2   : > { %1724 = vmatmul.mubr.bf16.gmra.mrb[36].mxu0 %v6047_v53  ;;  %1884 = vmatprep.mubr.bf16.mxu1 %v6061_v4 }
  0xf3   : > { %1731 = vmatprep.mubr.bf16.mxu0 %v6059_v3 }
  0xf9   : > { %1885 = vmatmul.mubr.bf16.gmra.mrb[36].mxu1 %v6067_v59 }
  0xfa   : > { %1732 = vmatmul.mubr.bf16.gmra.mrb[40].mxu0 %v6061_v4  ;;  %1892 = vmatprep.mubr.bf16.mxu1 %v6075_v40 }
  0xfb   : > { %1739 = vmatprep.mubr.bf16.mxu0 %v6073_v35 }
 0x101   : > { %1893 = vmatmul.mubr.bf16.gmra.mrb[40].mxu1 %v6081_v30 }
 0x102   : > { %1740 = vmatmul.mubr.bf16.gmra.mrb[44].mxu0 %v6075_v40  ;;  %1900 = vmatprep.mubr.bf16.mxu1 %v6089_v54 }
 0x103   : > { %1747 = vmatprep.mubr.bf16.mxu0 %v6087_v52 }
 0x109   : > { %1901 = vmatmul.mubr.bf16.gmra.mrb[44].mxu1 %v6095_v46 }
 0x10a   : > { %1748 = vmatmul.mubr.bf16.gmra.mrb[48].mxu0 %v6089_v54  ;;  %1908 = vmatprep.mubr.bf16.mxu1 %v6103_v21 }
 0x10b   : > { %1755 = vmatprep.mubr.bf16.mxu0 %v6101_v29 }
 0x111   : > { %1909 = vmatmul.mubr.bf16.gmra.mrb[48].mxu1 %v6109_v9 }
 0x112   : > { %1756 = vmatmul.mubr.bf16.gmra.mrb[52].mxu0 %v6103_v21  ;;  %1916 = vmatprep.mubr.bf16.mxu1 %v6117_v24 }
 0x113   : > { %1763 = vmatprep.mubr.bf16.mxu0 %v6115_v23 }
 0x119   : > { %1917 = vmatmul.mubr.bf16.gmra.mrb[52].mxu1 %v6123_v39 }
 0x11a   : > { %1764 = vmatmul.mubr.bf16.gmra.mrb[56].mxu0 %v6117_v24  ;;  %1924 = vmatprep.mubr.bf16.mxu1 %v6125_v63 }
 0x11b   : > { %1771 = vmatprep.mubr.bf16.mxu0 %v5998_v15 }
 0x121   : > { %1925 = vmatmul.mubr.bf16.gmra.mrb[56].mxu1 %v6131_v51 }
 0x122   : > { %1772 = vmatmul.mubr.bf16.gmra.mrb[60].mxu0 %v6125_v63  ;;  %1932 = vmatprep.mubr.bf16.mxu1 %v6133_v6 }
 0x123   : > { %1973 = vmatprep.mubr.bf16.mxu0 %v5841_v12  ;;  %v899_v12 = vld [vmem:[#allocation2 + $0x30] sm:$0xff] }
 0x124   : > { %v931_v32 = vpack.c.bf16 %v900_v45, %v899_v12 }
 0x129   : > { %1933 = vmatmul.mubr.bf16.gmra.mrb[60].mxu1 %v6139_v33 }
 0x12a   : > { %1974 = vmatmul.mubr.bf16.vlgmr.msra.gmra.mrb[64].mxu0 %v834_v58  ;;  %2134 = vmatprep.mubr.bf16.mxu1 %v5784_v36  ;;  %v5148_v36 = vld [vmem:[#allocation7 + $0x220] sm:$0xff]  }
 0x12b   : > { %4861 = vmatpush3.bf16.msra.mxu0 %v6035_v1  ;;  %1981 = vmatprep.mubr.bf16.mxu0 %v5864_v27  ;;  %v806_v1 = vld [vmem:[#allocation2 + $0x49] sm:$0xff] }
 0x12c   : > { %4862 = vmatprep.subr.bf16.mxu0 %v5145_v41  ;;  %v836_v37 = vpack.c.bf16 %v807_v28, %v806_v1  ;;  %v5149_v27 = vld [vmem:[#allocation7 + $0x228] sm:$0xff]  }
 0x12f   : > { %4863 = vmatpush3.bf16.msra.mxu0 %v5145_v41 }
 0x130   : > { %4864 = vmatprep.subr.bf16.mxu0 %v5146_v48 }
 0x131   : > { %2135 = vmatmul.mubr.bf16.vlgmr.msra.gmra.mrb[64].mxu1 %v931_v32 }
 0x132   : > { %1982 = vmatmul.mubr.bf16.gmra.mrb[68].mxu0 %v835_v11  ;;  %2142 = vmatprep.mubr.bf16.mxu1 %v5847_v13  ;;  %v5151_v13 = vld [vmem:[#allocation7 + $0x238] sm:$0xff]  }
 0x133   : > { %1989 = vmatprep.mubr.bf16.mxu0 %v5906_v5  ;;  %4865 = vmatpush3.bf16.msra.mxu0 %v5146_v48  ;;  %v5150_v5 = vld [vmem:[#allocation7 + $0x230] sm:$0xff]  }
 0x134   : > { %4866 = vmatprep.subr.bf16.mxu0 %v5147_v20 }
 0x137   : > { %4867 = vmatpush3.bf16.msra.mxu0 %v5147_v20 }
 0x138   : > { %4868 = vmatprep.subr.bf16.mxu0 %v5148_v36 }
 0x139   : > { %2143 = vmatmul.mubr.bf16.gmra.mrb[68].mxu1 %v5851_v14 }
 0x13a   : > { %1990 = vmatmul.mubr.bf16.gmra.mrb[72].mxu0 %v836_v37  ;;  %2150 = vmatprep.mubr.bf16.mxu1 %v5870_v31  ;;  %v995_v37 = vld [vmem:[#allocation2 + $0x32] sm:$0xff] }
 0x13b   : > { %1997 = vmatprep.mubr.bf16.mxu0 %v5962_v2  ;;  %4869 = vmatpush3.bf16.msra.mxu0 %v5148_v36 }
 0x13c   : > { %4870 = vmatprep.subr.bf16.mxu0 %v5149_v27 }
 0x13f   : > { %4871 = vmatpush3.bf16.msra.mxu0 %v5149_v27  ;;  %v996_v27 = vld [vmem:[#allocation2 + $0x3a] sm:$0xff] }
 0x140   : > { %4872 = vmatprep.subr.bf16.mxu0 %v5150_v5 }
 0x141   : > { %2151 = vmatmul.mubr.bf16.gmra.mrb[72].mxu1 %v5874_v34 }
 0x142   : > { %1998 = vmatmul.mubr.bf16.gmra.mrb[76].mxu0 %v5870_v31  ;;  %2158 = vmatprep.mubr.bf16.mxu1 %v5912_v7 }
 0x143   : > { %2005 = vmatprep.mubr.bf16.mxu0 %v5990_v62  ;;  %4873 = vmatpush3.bf16.msra.mxu0 %v5150_v5  ;;  %v977_v5 = vld [vmem:[#allocation2 + $0x199] sm:$0xff] }
 0x144   : > { %4874 = vmatprep.subr.bf16.mxu0 %v5151_v13 }
 0x147   : > { %4875 = vmatpush3.bf16.msra.mxu0 %v5151_v13 }
 0x149   : > { %2159 = vmatmul.mubr.bf16.gmra.mrb[76].mxu1 %v5918_v18 }
 0x14a   : > { %2006 = vmatmul.mubr.bf16.gmra.mrb[80].mxu0 %v5912_v7  ;;  %2166 = vmatprep.mubr.bf16.mxu1 %v5968_v10 }
 0x14b   : > { %2013 = vmatprep.mubr.bf16.mxu0 %v6017_v56 }
 0x151   : > { %2167 = vmatmul.mubr.bf16.gmra.mrb[80].mxu1 %v5971_v19 }
 0x152   : > { %2014 = vmatmul.mubr.bf16.gmra.mrb[84].mxu0 %v5968_v10  ;;  %2174 = vmatprep.mubr.bf16.mxu1 %v5996_v0 }
 0x153   : > { %2021 = vmatprep.mubr.bf16.mxu0 %v6039_v43 }
 0x159   : > { %2175 = vmatmul.mubr.bf16.gmra.mrb[84].mxu1 %v6000_v22 }
 0x15a   : > { %2022 = vmatmul.mubr.bf16.gmra.mrb[88].mxu0 %v5996_v0  ;;  %2182 = vmatprep.mubr.bf16.mxu1 %v6023_v38 }
 0x15b   : > { %2029 = vmatprep.mubr.bf16.mxu0 %v6053_v49 }
 0x161   : > { %2183 = vmatmul.mubr.bf16.gmra.mrb[88].mxu1 %v6026_v44 }
 0x162   : > { %2030 = vmatmul.mubr.bf16.gmra.mrb[92].mxu0 %v6023_v38  ;;  %2190 = vmatprep.mubr.bf16.mxu1 %v6045_v47 }
 0x163   : > { %2037 = vmatprep.mubr.bf16.mxu0 %v6067_v59 }
 0x169   : > { %2191 = vmatmul.mubr.bf16.gmra.mrb[92].mxu1 %v6047_v53 }
 0x16a   : > { %2038 = vmatmul.mubr.bf16.gmra.mrb[96].mxu0 %v6045_v47  ;;  %2198 = vmatprep.mubr.bf16.mxu1 %v6059_v3 }
 0x16b   : > { %2045 = vmatprep.mubr.bf16.mxu0 %v6081_v30 }
 0x171   : > { %2199 = vmatmul.mubr.bf16.gmra.mrb[96].mxu1 %v6061_v4 }
 0x172   : > { %2046 = vmatmul.mubr.bf16.gmra.mrb[100].mxu0 %v6059_v3  ;;  %2206 = vmatprep.mubr.bf16.mxu1 %v6073_v35 }
 0x173   : > { %2053 = vmatprep.mubr.bf16.mxu0 %v6095_v46 }
 0x179   : > { %2207 = vmatmul.mubr.bf16.gmra.mrb[100].mxu1 %v6075_v40 }
 0x17a   : > { %2054 = vmatmul.mubr.bf16.gmra.mrb[104].mxu0 %v6073_v35  ;;  %2214 = vmatprep.mubr.bf16.mxu1 %v6087_v52 }
 0x17b   : > { %2061 = vmatprep.mubr.bf16.mxu0 %v6109_v9 }
 0x17d   : > { %v4220_v14 = vpop.f32.mrb[0].mxu0 }
 0x17e   : > { %v4221_v31 = vpop.f32.mrb[1].mxu0 }
 0x17f   : > { %v4222_v34 = vadd.f32 %v4221_v31, %v4220_v14  ;;  %v4223_v7 = vpop.f32.mrb[2].mxu0 }
 0x180   : > { %v4224_v18 = vpop.f32.mrb[3].mxu0 }
 0x181   : > { %v4225_v2 = vadd.f32 %v4224_v18, %v4223_v7  ;;  %2215 = vmatmul.mubr.bf16.gmra.mrb[104].mxu1 %v6089_v54 }
 0x182   : > { %2062 = vmatmul.mubr.bf16.gmra.mrb[108].mxu0 %v6087_v52  ;;  %2222 = vmatprep.mubr.bf16.mxu1 %v6101_v29 }
 0x183   : > { %2069 = vmatprep.mubr.bf16.mxu0 %v6123_v39 }
 0x184   : > { %v4332_v19 = vpop.f32.mrb[0].mxu1 }
 0x185   : > { %v4226_v10 = vpop.f32.mrb[4].mxu0  ;;  %v4333_v0 = vpop.f32.mrb[1].mxu1 }
 0x186   : > { %v4227_v62 = vpop.f32.mrb[5].mxu0  ;;  %v4334_v38 = vadd.f32 %v4333_v0, %v4332_v19  ;;  %v4335_v44 = vpop.f32.mrb[2].mxu1  ;;  %v5153_v0 = vld [vmem:[#allocation10 + $0x8] sm:$0xff]  }
 0x187   : > { %v4228_v22 = vadd.f32 %v4227_v62, %v4226_v10  ;;  %v4229_v56 = vpop.f32.mrb[6].mxu0  ;;  %v4336_v47 = vpop.f32.mrb[3].mxu1 }
 0x188   : > { %v4230_v43 = vpop.f32.mrb[7].mxu0  ;;  %v6186_v49 = vadd.f32 %v4334_v38, %v4222_v34  ;;  %v4337_v3 = vadd.f32 %v4336_v47, %v4335_v44  ;;  %v1027_v34 = vpack.c.bf16 %v996_v27, %v995_v37  ;;  %v999_v44 = vld [vmem:[#allocation2 + $0x62] sm:$0xff] }
 0x189   : > { %v4231_v53 = vadd.f32 %v4230_v43, %v4229_v56  ;;  %2223 = vmatmul.mubr.bf16.gmra.mrb[108].mxu1 %v6103_v21  ;;  %v998_v56 = vld [vmem:[#allocation2 + $0x52] sm:$0xff]  ;;  %v1000_v43 = vld [vmem:[#allocation2 + $0x6a] sm:$0xff] }
 0x18a   : > { %2070 = vmatmul.mubr.bf16.gmra.mrb[112].mxu0 %v6101_v29  ;;  %v6191_v4 = vadd.f32 %v4337_v3, %v4225_v2  ;;  %2230 = vmatprep.mubr.bf16.mxu1 %v6115_v23 }
 0x18b   : > { %2077 = vmatprep.mubr.bf16.mxu0 %v6131_v51  ;;  %v5152_v51 = vld [vmem:[#allocation10] sm:$0xff]  }
 0x18c   : > { %v4338_v35 = vpop.f32.mrb[4].mxu1  ;;  %4908 = vmatprep.subr.bf16.mxu1 %v5152_v51 }
 0x18d   : > { %v4232_v59 = vpop.f32.mrb[8].mxu0  ;;  %v4339_v30 = vpop.f32.mrb[5].mxu1  ;;  %4909 = vmatpush3.bf16.msra.mxu1 %v5152_v51 }
 0x18e   : > { %v4233_v40 = vpop.f32.mrb[9].mxu0  ;;  %v4340_v46 = vadd.f32 %v4339_v30, %v4338_v35  ;;  %v4341_v9 = vpop.f32.mrb[6].mxu1  ;;  %4910 = vmatprep.subr.bf16.mxu1 %v5153_v0 }
 0x18f   : > { %v4234_v52 = vadd.f32 %v4233_v40, %v4232_v59  ;;  %v4235_v54 = vpop.f32.mrb[10].mxu0  ;;  %v4342_v50 = vpop.f32.mrb[7].mxu1  ;;  %v5232_v40 = vld [vmem:[#allocation3 + $0x198] sm:$0xff] }
 0x190   : > { %v4236_v39 = vpop.f32.mrb[11].mxu0  ;;  %v6194_v29 = vadd.f32 %v4340_v46, %v4228_v22  ;;  %v4343_v21 = vadd.f32 %v4342_v50, %v4341_v9  ;;  %v997_v22 = vld [vmem:[#allocation2 + $0x4a] sm:$0xff]  ;;  %v946_v30 = vpack.c.bf16 %v5232_v40, %v5232_v40 }
 0x191   : > { %v4237_v8 = vadd.f32 %v4236_v39, %v4235_v54  ;;  %2231 = vmatmul.mubr.bf16.gmra.mrb[112].mxu1 %v6117_v24  ;;  %v1028_v59 = vpack.c.bf16 %v998_v56, %v997_v22 }
 0x192   : > { %2078 = vmatmul.mubr.bf16.gmra.mrb[116].mxu0 %v6115_v23  ;;  %v6199_v57 = vadd.f32 %v4343_v21, %v4231_v53  ;;  %2238 = vmatprep.mubr.bf16.mxu1 %v5998_v15  ;;  %v6202_v23 = vpack.c.bf16 %v881_v42, %v880_v60  ;;  %v1001_v60 = vld [vmem:[#allocation2 + $0x7a] sm:$0xff]  ;;  %v1002_v42 = vld [vmem:[#allocation2 + $0x82] sm:$0xff] }
 0x193   : > { %2085 = vmatprep.mubr.bf16.mxu0 %v6139_v33  ;;  %v993_v33 = vpack.c.bf16 %v537_v61, %v536_v55  ;;  %4911 = vmatpush3.bf16.msra.mxu1 %v5153_v0 }
 0x194   : > { %v4344_v41 = vpop.f32.mrb[8].mxu1 }
 0x195   : > { %v4238_v58 = vpop.f32.mrb[12].mxu0  ;;  %v4345_v25 = vpop.f32.mrb[9].mxu1 }
 0x196   : > { %v4239_v16 = vpop.f32.mrb[13].mxu0  ;;  %v4346_v48 = vadd.f32 %v4345_v25, %v4344_v41  ;;  %v4347_v24 = vpop.f32.mrb[10].mxu1  ;;  %v1003_v41 = vld [vmem:[#allocation2 + $0x92] sm:$0xff] }
 0x197   : > { %v4240_v12 = vadd.f32 %v4239_v16, %v4238_v58  ;;  %v4241_v45 = vpop.f32.mrb[14].mxu0  ;;  %v4348_v32 = vpop.f32.mrb[11].mxu1  ;;  %v1004_v16 = vld [vmem:[#allocation2 + $0x9a] sm:$0xff] }
 0x198   : > { %v4242_v11 = vpop.f32.mrb[15].mxu0  ;;  %v6208_v1 = vadd.f32 %v4346_v48, %v4234_v52  ;;  %v4349_v28 = vadd.f32 %v4348_v32, %v4347_v24  ;;  %v1030_v48 = vpack.c.bf16 %v1002_v42, %v1001_v60  ;;  %v1031_v32 = vpack.c.bf16 %v1004_v16, %v1003_v41 }
 0x199   : > { %v4243_v20 = vadd.f32 %v4242_v11, %v4241_v45  ;;  %2239 = vmatmul.mubr.bf16.gmra.mrb[116].mxu1 %v6125_v63  ;;  %v994_v63 = vpack.c.bf16 %v978_v26, %v977_v5 }
 0x19a   : > { %2086 = vmatmul.mubr.bf16.gmra.mrb[120].mxu0 %v5998_v15  ;;  %v6213_v36 = vadd.f32 %v4349_v28, %v4237_v8  ;;  %2246 = vmatprep.mubr.bf16.mxu1 %v993_v33 }
 0x19b   : > { %2093 = vmatprep.mubr.bf16.mxu0 %v6202_v23 }
 0x19c   : > { %v4350_v55 = vpop.f32.mrb[12].mxu1 }
 0x19d   : > { %v4244_v17 = vpop.f32.mrb[16].mxu0  ;;  %v4351_v13 = vpop.f32.mrb[13].mxu1 }
 0x19e   : > { %v4245_v61 = vpop.f32.mrb[17].mxu0  ;;  %v4352_v7 = vadd.f32 %v4351_v13, %v4350_v55  ;;  %v4353_v15 = vpop.f32.mrb[14].mxu1  ;;  %v5154_v55 = vld [vmem:[#allocation10 + $0x10] sm:$0xff]  }
 0x19f   : > { %v4246_v14 = vadd.f32 %v4245_v61, %v4244_v17  ;;  %v4247_v31 = vpop.f32.mrb[18].mxu0  ;;  %v4354_v2 = vpop.f32.mrb[15].mxu1  ;;  %v1005_v61 = vld [vmem:[#allocation2 + $0xaa] sm:$0xff]  ;;  %v1006_v13 = vld [vmem:[#allocation2 + $0xb2] sm:$0xff]  ;;  %4912 = vmatprep.subr.bf16.mxu1 %v5154_v55 }
 0x1a0   : > { %v4248_v18 = vpop.f32.mrb[19].mxu0  ;;  %v6215_v19 = vadd.f32 %v4352_v7, %v4240_v12  ;;  %v4355_v62 = vadd.f32 %v4354_v2, %v4353_v15  ;;  %4913 = vmatpush3.bf16.msra.mxu1 %v5154_v55 }
 0x1a1   : > { %v4249_v10 = vadd.f32 %v4248_v18, %v4247_v31  ;;  %2247 = vmatmul.mubr.bf16.gmra.mrb[120].mxu1 %v6133_v6  ;;  %v1029_v6 = vpack.c.bf16 %v1000_v43, %v999_v44  ;;  %v1007_v31 = vld [vmem:[#allocation2 + $0xc2] sm:$0xff] }
 0x1a2   : > { %2094 = vmatmul.mubr.bf16.gmra.mrb[124].mxu0 %v993_v33  ;;  %v6218_v38 = vadd.f32 %v4355_v62, %v4243_v20  ;;  %2254 = vmatprep.mubr.bf16.mxu1 %v994_v63  ;;  %v1032_v63 = vpack.c.bf16 %v1006_v13, %v1005_v61 }
 0x1a3   : > { %4876 = vmatprep.mubr.bf16.mxu0 %v1027_v34  ;;  %v1008_v34 = vld [vmem:[#allocation2 + $0xca] sm:$0xff] }
 0x1a4   : > { %v4356_v53 = vpop.f32.mrb[16].mxu1  ;;  %v1033_v0 = vpack.c.bf16 %v1008_v34, %v1007_v31 }
 0x1a5   : > { %v4250_v47 = vpop.f32.mrb[20].mxu0  ;;  %v4357_v35 = vpop.f32.mrb[17].mxu1 }
 0x1a6   : > { %v4251_v3 = vpop.f32.mrb[21].mxu0  ;;  %v4358_v46 = vadd.f32 %v4357_v35, %v4356_v53  ;;  %v4359_v9 = vpop.f32.mrb[18].mxu1  ;;  %v1010_v35 = vld [vmem:[#allocation2 + $0xe2] sm:$0xff] }
 0x1a7   : > { %v4252_v52 = vadd.f32 %v4251_v3, %v4250_v47  ;;  %v4253_v54 = vpop.f32.mrb[22].mxu0  ;;  %v4360_v50 = vpop.f32.mrb[19].mxu1 }
 0x1a8   : > { %v4254_v39 = vpop.f32.mrb[23].mxu0  ;;  %v6220_v21 = vadd.f32 %v4358_v46, %v4246_v14  ;;  %v4361_v51 = vadd.f32 %v4360_v50, %v4359_v9 }
 0x1a9   : > { %v4255_v8 = vadd.f32 %v4254_v39, %v4253_v54  ;;  %2255 = vmatmul.mubr.bf16.gmra.mrb[124].mxu1 %v946_v30  ;;  %v1011_v30 = vld [vmem:[#allocation2 + $0xf2] sm:$0xff] }
 0x1aa   : > { %4877 = vmatmul.mubr.bf16.vlgmr.msra.gmra.mrb[128].mxu0 %v1028_v59  ;;  %v6222_v58 = vadd.f32 %v4361_v51, %v4249_v10  ;;  %v1009_v59 = vld [vmem:[#allocation2 + $0xda] sm:$0xff] }
 0x1ab   : > { %4880 = vmatprep.mubr.bf16.mxu0 %v1029_v6  ;;  %v1034_v9 = vpack.c.bf16 %v1010_v35, %v1009_v59 }
 0x1ac   : > { %v4362_v12 = vpop.f32.mrb[20].mxu1 }
 0x1ad   : > { %v4256_v25 = vpop.f32.mrb[24].mxu0  ;;  %v4363_v24 = vpop.f32.mrb[21].mxu1 }
 0x1ae   : > { %v4257_v45 = vpop.f32.mrb[25].mxu0  ;;  %v4364_v20 = vadd.f32 %v4363_v24, %v4362_v12  ;;  %v4365_v28 = vpop.f32.mrb[22].mxu1  ;;  %v1013_v24 = vld [vmem:[#allocation2 + $0x10a] sm:$0xff] }
 0x1af   : > { %v4258_v11 = vadd.f32 %v4257_v45, %v4256_v25  ;;  %v4259_v33 = vpop.f32.mrb[26].mxu0  ;;  %v4366_v27 = vpop.f32.mrb[23].mxu1 }
 0x1b0   : > { %v4260_v37 = vpop.f32.mrb[27].mxu0  ;;  %v6224_v5 = vadd.f32 %v4364_v20, %v4252_v52  ;;  %v4367_v26 = vadd.f32 %v4366_v27, %v4365_v28  ;;  %v1012_v52 = vld [vmem:[#allocation2 + $0xfa] sm:$0xff]  ;;  %v1016_v20 = vld [vmem:[#allocation2 + $0x12a] sm:$0xff] }
 0x1b1   : > { %v4261_v17 = vadd.f32 %v4260_v37, %v4259_v33  ;;  %v1035_v51 = vpack.c.bf16 %v1012_v52, %v1011_v30 }
 0x1b2   : > { %4881 = vmatmul.mubr.bf16.gmra.mrb[132].mxu0 %v1030_v48  ;;  %v6226_v14 = vadd.f32 %v4367_v26, %v4255_v8  ;;  %v5155_v48 = vld [vmem:[#allocation10 + $0x18] sm:$0xff]  }
 0x1b3   : > { %4884 = vmatprep.mubr.bf16.mxu0 %v1031_v32  ;;  %v1015_v32 = vld [vmem:[#allocation2 + $0x122] sm:$0xff]  ;;  %4914 = vmatprep.subr.bf16.mxu1 %v5155_v48 }
 0x1b4   : > { %v4368_v15 = vpop.f32.mrb[24].mxu1  ;;  %4915 = vmatpush3.bf16.msra.mxu1 %v5155_v48  ;;  %v1037_v13 = vpack.c.bf16 %v1016_v20, %v1015_v32 }
 0x1b5   : > { %v4262_v7 = vpop.f32.mrb[28].mxu0  ;;  %v4369_v2 = vpop.f32.mrb[25].mxu1 }
 0x1b6   : > { %v4263_v18 = vpop.f32.mrb[29].mxu0  ;;  %v4370_v22 = vadd.f32 %v4369_v2, %v4368_v15  ;;  %v4371_v56 = vpop.f32.mrb[26].mxu1 }
 0x1b7   : > { %v4264_v10 = vadd.f32 %v4263_v18, %v4262_v7  ;;  %v4265_v62 = vpop.f32.mrb[30].mxu0  ;;  %v4372_v43 = vpop.f32.mrb[27].mxu1 }
 0x1b8   : > { %v4266_v44 = vpop.f32.mrb[31].mxu0  ;;  %v6228_v53 = vadd.f32 %v4370_v22, %v4258_v11  ;;  %v4373_v3 = vadd.f32 %v4372_v43, %v4371_v56  ;;  %v1014_v11 = vld [vmem:[#allocation2 + $0x112] sm:$0xff]  ;;  %v1020_v56 = vld [vmem:[#allocation2 + $0x15a] sm:$0xff] }
 0x1b9   : > { %v4267_v47 = vadd.f32 %v4266_v44, %v4265_v62  ;;  %v1018_v62 = vld [vmem:[#allocation2 + $0x142] sm:$0xff]  ;;  %v1019_v22 = vld [vmem:[#allocation2 + $0x152] sm:$0xff] }
 0x1ba   : > { %4885 = vmatmul.mubr.bf16.gmra.mrb[136].mxu0 %v1032_v63  ;;  %v6230_v40 = vadd.f32 %v4373_v3, %v4261_v17  ;;  %v1036_v17 = vpack.c.bf16 %v1014_v11, %v1013_v24  ;;  %v1039_v52 = vpack.c.bf16 %v1020_v56, %v1019_v22 }
 0x1bb   : > { %4888 = vmatprep.mubr.bf16.mxu0 %v1033_v0 }
 0x1bc   : > { %v4374_v6 = vpop.f32.mrb[28].mxu1 }
 0x1bd   : > { %v4268_v54 = vpop.f32.mrb[32].mxu0  ;;  %v4375_v39 = vpop.f32.mrb[29].mxu1 }
 0x1be   : > { %v4269_v46 = vpop.f32.mrb[33].mxu0  ;;  %v4376_v60 = vadd.f32 %v4375_v39, %v4374_v6  ;;  %v4377_v42 = vpop.f32.mrb[30].mxu1 }
 0x1bf   : > { %v4270_v50 = vadd.f32 %v4269_v46, %v4268_v54  ;;  %v4271_v8 = vpop.f32.mrb[34].mxu0  ;;  %v4378_v16 = vpop.f32.mrb[31].mxu1 }
 0x1c0   : > { %v4272_v41 = vpop.f32.mrb[35].mxu0  ;;  %v6232_v12 = vadd.f32 %v4376_v60, %v4264_v10  ;;  %v4379_v45 = vadd.f32 %v4378_v16, %v4377_v42  ;;  %v1017_v10 = vld [vmem:[#allocation2 + $0x13a] sm:$0xff]  ;;  %v1021_v60 = vld [vmem:[#allocation2 + $0x16a] sm:$0xff]  ;;  %v1022_v42 = vld [vmem:[#allocation2 + $0x172] sm:$0xff] }
 0x1c1   : > { %v4273_v25 = vadd.f32 %v4272_v41, %v4271_v8  ;;  %v1038_v3 = vpack.c.bf16 %v1018_v62, %v1017_v10  ;;  %v1040_v48 = vpack.c.bf16 %v1022_v42, %v1021_v60 }
 0x1c2   : > { %4889 = vmatmul.mubr.bf16.gmra.mrb[140].mxu0 %v1034_v9  ;;  %v6234_v33 = vadd.f32 %v4379_v45, %v4267_v47 }
 0x1c3   : > { %4892 = vmatprep.mubr.bf16.mxu0 %v1035_v51  ;;  %v5156_v51 = vld [vmem:[#allocation10 + $0x20] sm:$0xff]  }
 0x1c4   : > { %v4380_v37 = vpop.f32.mrb[32].mxu1  ;;  %4916 = vmatprep.subr.bf16.mxu1 %v5156_v51 }
 0x1c5   : > { %v4274_v28 = vpop.f32.mrb[36].mxu0  ;;  %v4381_v26 = vpop.f32.mrb[33].mxu1  ;;  %4917 = vmatpush3.bf16.msra.mxu1 %v5156_v51 }
 0x1c6   : > { %v4275_v27 = vpop.f32.mrb[37].mxu0  ;;  %v4382_v31 = vadd.f32 %v4381_v26, %v4380_v37  ;;  %v4383_v34 = vpop.f32.mrb[34].mxu1 }
 0x1c7   : > { %v4276_v55 = vadd.f32 %v4275_v27, %v4274_v28  ;;  %v4277_v61 = vpop.f32.mrb[38].mxu0  ;;  %v4384_v15 = vpop.f32.mrb[35].mxu1 }
 0x1c8   : > { %v4278_v7 = vpop.f32.mrb[39].mxu0  ;;  %v6236_v63 = vadd.f32 %v4382_v31, %v4270_v50  ;;  %v4385_v2 = vadd.f32 %v4384_v15, %v4383_v34 }
 0x1c9   : > { %v4279_v18 = vadd.f32 %v4278_v7, %v4277_v61  ;;  %v1025_v61 = vld [vmem:[#allocation2 + $0x19a] sm:$0xff] }
 0x1ca   : > { %4893 = vmatmul.mubr.bf16.gmra.mrb[144].mxu0 %v1036_v17  ;;  %v6238_v0 = vadd.f32 %v4385_v2, %v4273_v25 }
 0x1cb   : > { %4896 = vmatprep.mubr.bf16.mxu0 %v1037_v13  ;;  %v1026_v13 = vld [vmem:[#allocation2 + $0x1a2] sm:$0xff] }
 0x1cc   : > { %v4386_v43 = vpop.f32.mrb[36].mxu1 }
 0x1cd   : > { %v4280_v44 = vpop.f32.mrb[40].mxu0  ;;  %v4387_v59 = vpop.f32.mrb[37].mxu1 }
 0x1ce   : > { %v4281_v47 = vpop.f32.mrb[41].mxu0  ;;  %v4388_v54 = vadd.f32 %v4387_v59, %v4386_v43  ;;  %v4389_v6 = vpop.f32.mrb[38].mxu1 }
 0x1cf   : > { %v4282_v35 = vadd.f32 %v4281_v47, %v4280_v44  ;;  %v4283_v30 = vpop.f32.mrb[42].mxu0  ;;  %v4390_v9 = vpop.f32.mrb[39].mxu1 }
 0x1d0   : > { %v4284_v46 = vpop.f32.mrb[43].mxu0  ;;  %v6240_v50 = vadd.f32 %v4388_v54, %v4276_v55  ;;  %v4391_v8 = vadd.f32 %v4390_v9, %v4389_v6 }
 0x1d1   : > { %v4285_v39 = vadd.f32 %v4284_v46, %v4283_v30 }
 0x1d2   : > { %4897 = vmatmul.mubr.bf16.gmra.mrb[148].mxu0 %v1038_v3  ;;  %v6242_v41 = vadd.f32 %v4391_v8, %v4279_v18  ;;  %v1042_v18 = vpack.c.bf16 %v1026_v13, %v1025_v61 }
 0x1d3   : > { %4900 = vmatprep.mubr.bf16.mxu0 %v1039_v52 }
 0x1d4   : > { %v4392_v25 = vpop.f32.mrb[40].mxu1 }
 0x1d5   : > { %v4286_v16 = vpop.f32.mrb[44].mxu0  ;;  %v4393_v24 = vpop.f32.mrb[41].mxu1 }
 0x1d6   : > { %v4287_v45 = vpop.f32.mrb[45].mxu0  ;;  %v4394_v20 = vadd.f32 %v4393_v24, %v4392_v25  ;;  %v4395_v28 = vpop.f32.mrb[42].mxu1 }
 0x1d7   : > { %v4288_v11 = vadd.f32 %v4287_v45, %v4286_v16  ;;  %v4289_v32 = vpop.f32.mrb[46].mxu0  ;;  %v4396_v27 = vpop.f32.mrb[43].mxu1 }
 0x1d8   : > { %v4290_v37 = vpop.f32.mrb[47].mxu0  ;;  %v6244_v26 = vadd.f32 %v4394_v20, %v4282_v35  ;;  %v4397_v55 = vadd.f32 %v4396_v27, %v4395_v28 }
 0x1d9   : > { %v4291_v17 = vadd.f32 %v4290_v37, %v4289_v32 }
 0x1da   : > { %4901 = vmatmul.mubr.bf16.gmra.mrb[152].mxu0 %v1040_v48  ;;  %v6247_v31 = vadd.f32 %v4397_v55, %v4285_v39 }
 0x1db   : > { %4904 = vmatprep.mubr.bf16.mxu0 %v6202_v23  ;;  %v5157_v23 = vld [vmem:[#allocation10 + $0x28] sm:$0xff]  }
 0x1dc   : > { %v4398_v7 = vpop.f32.mrb[44].mxu1  ;;  %4918 = vmatprep.subr.bf16.mxu1 %v5157_v23 }
 0x1dd   : > { %v4292_v34 = vpop.f32.mrb[48].mxu0  ;;  %v4399_v2 = vpop.f32.mrb[45].mxu1  ;;  %4919 = vmatpush3.bf16.msra.mxu1 %v5157_v23 }
 0x1de   : > { %v4293_v15 = vpop.f32.mrb[49].mxu0  ;;  %v4400_v22 = vadd.f32 %v4399_v2, %v4398_v7  ;;  %v4401_v56 = vpop.f32.mrb[46].mxu1  ;;  %v5158_v7 = vld [vmem:[#allocation10 + $0x30] sm:$0xff]  }
 0x1df   : > { %v4294_v10 = vadd.f32 %v4293_v15, %v4292_v34  ;;  %v4295_v62 = vpop.f32.mrb[50].mxu0  ;;  %v4402_v43 = vpop.f32.mrb[47].mxu1  ;;  %4920 = vmatprep.subr.bf16.mxu1 %v5158_v7 }
 0x1e0   : > { %v4296_v44 = vpop.f32.mrb[51].mxu0  ;;  %v6249_v3 = vadd.f32 %v4400_v22, %v4288_v11  ;;  %v4403_v59 = vadd.f32 %v4402_v43, %v4401_v56 }
 0x1e1   : > { %v4297_v47 = vadd.f32 %v4296_v44, %v4295_v62  ;;  %4921 = vmatpush3.bf16.msra.mxu1 %v5158_v7  ;;  %v5159_v62 = vld [vmem:[#allocation10 + $0x38] sm:$0xff]  }
 0x1e2   : > { %4905 = vmatmul.mubr.bf16.gmra.mrb[156].mxu0 %v1042_v18  ;;  %v6251_v35 = vadd.f32 %v4403_v59, %v4291_v17  ;;  %4922 = vmatprep.subr.bf16.mxu1 %v5159_v62 }
 0x1e4   : > { %v4404_v52 = vpop.f32.mrb[48].mxu1 }
 0x1e5   : > { %v4298_v30 = vpop.f32.mrb[52].mxu0  ;;  %v4405_v6 = vpop.f32.mrb[49].mxu1  ;;  %4923 = vmatpush3.bf16.msra.mxu1 %v5159_v62 }
 0x1e6   : > { %v4299_v54 = vpop.f32.mrb[53].mxu0  ;;  %v4406_v39 = vadd.f32 %v4405_v6, %v4404_v52  ;;  %v4407_v8 = vpop.f32.mrb[50].mxu1  ;;  %v2928_v52 = vld [vmem:[%s5692_s28] ss:$2 sm:$0xff] }
 0x1e7   : > { %v4300_v46 = vadd.f32 %v4299_v54, %v4298_v30  ;;  %v4301_v9 = vpop.f32.mrb[54].mxu0  ;;  %v4408_v60 = vpop.f32.mrb[51].mxu1  ;;  %v4109_v54 = vld [vmem:[%s5692_s28 + $0x20] ss:$2 sm:$0xff] }
 0x1e8   : > { %v4302_v51 = vpop.f32.mrb[55].mxu0  ;;  %v6253_v16 = vadd.f32 %v4406_v39, %v4294_v10  ;;  %v4409_v25 = vadd.f32 %v4408_v60, %v4407_v8  ;;  %v5160_v39 = vld [vmem:[#allocation9 + $0x40] sm:$0xff]  }
 0x1e9   : > { %v4303_v42 = vadd.f32 %v4302_v51, %v4301_v9  ;;  %v2943_v9 = vpack.c.bf16 %v4109_v54, %v2928_v52  ;;  %v4110_v8 = vld [vmem:[%s5692_s28 + $0x40] ss:$2 sm:$0xff]  ;;  %4688 = vmatprep.subr.bf16.mxu1 %v5160_v39 }
 0x1ea   : > { %v6255_v45 = vadd.f32 %v4409_v25, %v4297_v47  ;;  %v4111_v51 = vld [vmem:[%s5692_s28 + $0x60] ss:$2 sm:$0xff] }
 0x1eb   : > { %v2944_v60 = vpack.c.bf16 %v4111_v51, %v4110_v8  ;;  %4924 = vmatprep.mubr.bf16.mxu1 %v2943_v9  ;;  %v5170_v8 = vld [vmem:[#allocation9 + $0x18] sm:$0xff]  }
 0x1ec   : > { %v4410_v24 = vpop.f32.mrb[52].mxu1 }
 0x1ed   : > { %v4304_v48 = vpop.f32.mrb[56].mxu0  ;;  %v4411_v32 = vpop.f32.mrb[53].mxu1  ;;  %4925 = vmatmul.mubr.bf16.vlgmr.msra.gmra.mrb[128].mxu1 %v2944_v60 }
 0x1ee   : > { %v4305_v11 = vpop.f32.mrb[57].mxu0  ;;  %v4412_v37 = vadd.f32 %v4411_v32, %v4410_v24  ;;  %v4413_v27 = vpop.f32.mrb[54].mxu1  ;;  %v5162_v32 = vld [vmem:[#allocation9 + $0x48] sm:$0xff]  }
 0x1ef   : > { %v4306_v20 = vadd.f32 %v4305_v11, %v4304_v48  ;;  %v4307_v28 = vpop.f32.mrb[58].mxu0  ;;  %v4414_v55 = vpop.f32.mrb[55].mxu1 }
 0x1f0   : > { %v4308_v17 = vpop.f32.mrb[59].mxu0  ;;  %v6257_v13 = vadd.f32 %v4412_v37, %v4300_v46  ;;  %v4415_v34 = vadd.f32 %v4414_v55, %v4413_v27 }
 0x1f1   : > { %v4309_v61 = vadd.f32 %v4308_v17, %v4307_v28  ;;  %v5163_v28 = vld [vmem:[#allocation9 + $0xc0] sm:$0xff]   ;;  %v5164_v17 = vld [vmem:[#allocation9 + $0x8] sm:$0xff]  }
 0x1f2   : > { %v6259_v15 = vadd.f32 %v4415_v34, %v4303_v42  ;;  %v5161_v42 = vld [vmem:[#allocation9] sm:$0xff]   ;;  %4728 = vmatprep.subr.bf16.mxu0 %v5163_v28 }
 0x1f3   : > { %4689 = vmatpush3.bf16.msra.mxu1 %v5161_v42 }
 0x1f4   : > { %v4416_v2 = vpop.f32.mrb[56].mxu1  ;;  %4690 = vmatprep.subr.bf16.mxu1 %v5162_v32  ;;  %v5174_v32 = vld [vmem:[#allocation9 + $0xd0] sm:$0xff]  }
 0x1f5   : > { %v4310_v18 = vpop.f32.mrb[60].mxu0  ;;  %v4417_v22 = vpop.f32.mrb[57].mxu1 }
 0x1f6   : > { %v4311_v10 = vpop.f32.mrb[61].mxu0  ;;  %v4418_v43 = vadd.f32 %v4417_v22, %v4416_v2  ;;  %v4419_v47 = vpop.f32.mrb[58].mxu1 }
 0x1f7   : > { %v4312_v56 = vadd.f32 %v4311_v10, %v4310_v18  ;;  %v4313_v44 = vpop.f32.mrb[62].mxu0  ;;  %v4420_v23 = vpop.f32.mrb[59].mxu1  ;;  %4691 = vmatpush3.bf16.msra.mxu1 %v5164_v17 }
 0x1f8   : > { %v4314_v59 = vpop.f32.mrb[63].mxu0  ;;  %v6263_v6 = vadd.f32 %v4418_v43, %v4306_v20  ;;  %v4421_v46 = vadd.f32 %v4420_v23, %v4419_v47  ;;  %v5167_v43 = vld [vmem:[#allocation9 + $0x10] sm:$0xff]  }
 0x1f9   : > { %v4315_v30 = vadd.f32 %v4314_v59, %v4313_v44  ;;  %v5166_v44 = vld [vmem:[#allocation9 + $0x50] sm:$0xff]  }
 0x1fa   : > { %v6267_v25 = vadd.f32 %v4421_v46, %v4309_v61  ;;  %v5165_v61 = vld [vmem:[#allocation9 + $0x80] sm:$0xff]   ;;  %4692 = vmatprep.subr.bf16.mxu1 %v5166_v44  ;;  %v5168_v46 = vld [vmem:[#allocation9 + $0x58] sm:$0xff]  }
 0x1fb   : > { %4729 = vmatpush3.bf16.msra.mxu0 %v5165_v61  ;;  %4693 = vmatpush3.bf16.msra.mxu1 %v5167_v43  ;;  %v5176_v61 = vld [vmem:[#allocation9 + $0x68] sm:$0xff]   ;;  %v5178_v44 = vld [vmem:[#allocation9 + $0xd8] sm:$0xff]  }
 0x1fc   : > { %v4422_v24 = vpop.f32.mrb[60].mxu1  ;;  %4694 = vmatprep.subr.bf16.mxu1 %v5168_v46 }
 0x1fd   : > { %v4444_v48 = vpop.f32.mrb[64].mxu0  ;;  %v4423_v20 = vpop.f32.mrb[61].mxu1 }
 0x1fe   : > { %v4445_v11 = vpop.f32.mrb[65].mxu0  ;;  %v4424_v55 = vadd.f32 %v4423_v20, %v4422_v24  ;;  %v4425_v34 = vpop.f32.mrb[62].mxu1 }
 0x1ff   : > { %v4446_v37 = vadd.f32 %v4445_v11, %v4444_v48  ;;  %v4447_v27 = vpop.f32.mrb[66].mxu0  ;;  %v4426_v18 = vpop.f32.mrb[63].mxu1  ;;  %v5171_v48 = vld [vmem:[#allocation9 + $0x88] sm:$0xff]   ;;  %v5172_v11 = vld [vmem:[#allocation9 + $0x60] sm:$0xff]   ;;  %4695 = vmatpush3.bf16.msra.mxu1 %v5170_v8 }
 0x200   : > { %v4448_v7 = vpop.f32.mrb[67].mxu0  ;;  %v6270_v62 = vadd.f32 %v4424_v55, %v4312_v56  ;;  %v4427_v22 = vadd.f32 %v4426_v18, %v4425_v34  ;;  %v5169_v56 = vld [vmem:[#allocation9 + $0xc8] sm:$0xff]   ;;  %4696 = vmatprep.subr.bf16.mxu1 %v5172_v11  ;;  %v5175_v55 = vld [vmem:[#allocation9 + $0x90] sm:$0xff]  }
 0x201   : > { %v1976_v2 = vadd.f32 %v4446_v37, %v6186_v49  ;;  %v4449_v10 = vadd.f32 %v4448_v7, %v4447_v27  ;;  %4730 = vmatprep.subr.bf16.mxu0 %v5169_v56  ;;  %v5173_v37 = vld [vmem:[#allocation9 + $0x20] sm:$0xff]   ;;  %v5180_v56 = vld [vmem:[#allocation9 + $0x70] sm:$0xff]  }
 0x202   : > { %v6273_v59 = vadd.f32 %v4427_v22, %v4315_v30  ;;  %4731 = vmatpush3.bf16.msra.mxu0 %v5171_v48  ;;  %v5177_v22 = vld [vmem:[#allocation9 + $0x28] sm:$0xff]   ;;  %v5181_v48 = vld [vmem:[#allocation9 + $0x30] sm:$0xff]  }
 0x203   : > { %v1979_v47 = vadd.f32 %v4449_v10, %v6191_v4  ;;  %4732 = vmatprep.subr.bf16.mxu0 %v5174_v32  ;;  %4697 = vmatpush3.bf16.msra.mxu1 %v5173_v37 }
 0x204   : > { %v4556_v52 = vpop.f32.mrb[64].mxu1  ;;  %4698 = vmatprep.subr.bf16.mxu1 %v5176_v61  ;;  %v5185_v61 = vld [vmem:[#allocation9 + $0x38] sm:$0xff]  }
 0x205   : > { %v4450_v23 = vpop.f32.mrb[68].mxu0  ;;  %v4557_v9 = vpop.f32.mrb[65].mxu1 }
 0x206   : > { %v4451_v54 = vpop.f32.mrb[69].mxu0  ;;  %v4558_v51 = vadd.f32 %v4557_v9, %v4556_v52  ;;  %v4559_v60 = vpop.f32.mrb[66].mxu1  ;;  %4733 = vmatpush3.bf16.msra.mxu0 %v5175_v55  ;;  %v4112_v52 = vld [vmem:[%s5692_s28 + $0x80] ss:$2 sm:$0xff]  ;;  %v5184_v55 = vld [vmem:[#allocation9 + $0x78] sm:$0xff]  }
 0x207   : > { %v4452_v49 = vadd.f32 %v4451_v54, %v4450_v23  ;;  %v4453_v39 = vpop.f32.mrb[70].mxu0  ;;  %v4560_v24 = vpop.f32.mrb[67].mxu1  ;;  %4734 = vmatprep.subr.bf16.mxu0 %v5178_v44  ;;  %4699 = vmatpush3.bf16.msra.mxu1 %v5177_v22 }
 0x208   : > { %v4454_v42 = vpop.f32.mrb[71].mxu0  ;;  %v4561_v28 = vadd.f32 %v4560_v24, %v4559_v60  ;;  %v6276_v20 = vadd.f32 %v4558_v51, %v1976_v2  ;;  %v5182_v24 = vld [vmem:[#allocation9 + $0xe0] sm:$0xff]   ;;  %4700 = vmatprep.subr.bf16.mxu1 %v5180_v56 }
 0x209   : > { %v1984_v4 = vadd.f32 %v4452_v49, %v6194_v29  ;;  %v4455_v30 = vadd.f32 %v4454_v42, %v4453_v39  ;;  %v4113_v49 = vld [vmem:[%s5692_s28 + $0xa0] ss:$2 sm:$0xff] }
 0x20a   : > { %v6279_v17 = vadd.f32 %v4561_v28, %v1979_v47  ;;  %v5179_v47 = vld [vmem:[#allocation9 + $0x98] sm:$0xff]   ;;  %v4114_v39 = vld [vmem:[%s5692_s28 + $0xc0] ss:$2 sm:$0xff]  ;;  %v2945_v60 = vpack.c.bf16 %v4113_v49, %v4112_v52 }
 0x20b   : > { %v1987_v27 = vadd.f32 %v4455_v30, %v6199_v57  ;;  %4735 = vmatpush3.bf16.msra.mxu0 %v5179_v47  ;;  %v4115_v42 = vld [vmem:[%s5692_s28 + $0xe0] ss:$2 sm:$0xff]  ;;  %4701 = vmatpush3.bf16.msra.mxu1 %v5181_v48  ;;  %s4203_s28 = sshll.u32 %s5507_s13, 10  ;;  %s3857_s13 = scalar_lea.sflag [#allocation6], %s5688_s29 }
 0x20c   : > { %v4562_v29 = vpop.f32.mrb[68].mxu1  ;;  %v2946_v11 = vpack.c.bf16 %v4115_v42, %v4114_v39  ;;  %4928 = vmatprep.mubr.bf16.mxu1 %v2945_v60  ;;  %4736 = vmatprep.subr.bf16.mxu0 %v5182_v24  ;;  %v5190_v42 = vld [vmem:[#allocation9 + $0xf8] sm:$0xff]   ;;  %s6493_s23 = scalar_lea.hbm %s6570_s18, %s4203_s28 }
 0x20d   : > { %v4456_v34 = vpop.f32.mrb[72].mxu0  ;;  %v4563_v18 = vpop.f32.mrb[69].mxu1  ;;  %4702 = vmatprep.subr.bf16.mxu1 %v5184_v55 }
 0x20e   : > { %v4457_v7 = vpop.f32.mrb[73].mxu0  ;;  %v4564_v57 = vadd.f32 %v4563_v18, %v4562_v29  ;;  %v4565_v43 = vpop.f32.mrb[70].mxu1  ;;  %4929 = vmatmul.mubr.bf16.gmra.mrb[132].mxu1 %v2946_v11  ;;  %v5186_v18 = vld [vmem:[#allocation9 + $0xe8] sm:$0xff]   ;;  %v5191_v11 = vld [vmem:[#allocation9 + $0xb8] sm:$0xff]  }
 0x20f   : > { %v4458_v2 = vadd.f32 %v4457_v7, %v4456_v34  ;;  %v4459_v10 = vpop.f32.mrb[74].mxu0  ;;  %v4566_v54 = vpop.f32.mrb[71].mxu1  ;;  %4703 = vmatpush3.bf16.msra.mxu1 %v5185_v61 }
 0x210   : > { %v4460_v23 = vpop.f32.mrb[75].mxu0  ;;  %v4567_v8 = vadd.f32 %v4566_v54, %v4565_v43  ;;  %v6285_v51 = vadd.f32 %v4564_v57, %v1984_v4  ;;  %v5188_v43 = vld [vmem:[#allocation9 + $0xf0] sm:$0xff]  }
 0x211   : > { %v1992_v46 = vadd.f32 %v4458_v2, %v6208_v1  ;;  %v4461_v9 = vadd.f32 %v4460_v23, %v4459_v10  ;;  %v5183_v1 = vld [vmem:[#allocation9 + $0xa0] sm:$0xff]  }
 0x212   : > { %v6289_v32 = vadd.f32 %v4567_v8, %v1987_v27  ;;  %4737 = vmatpush3.bf16.msra.mxu0 %v5183_v1  ;;  %v5187_v27 = vld [vmem:[#allocation9 + $0xa8] sm:$0xff]  }
 0x213   : > { %v1995_v30 = vadd.f32 %v4461_v9, %v6213_v36  ;;  %4738 = vmatprep.subr.bf16.mxu0 %v5186_v18  ;;  %v5189_v9 = vld [vmem:[#allocation9 + $0xb0] sm:$0xff]  }
 0x214   : > { %v4568_v37 = vpop.f32.mrb[72].mxu1 }
 0x215   : > { %v4462_v28 = vpop.f32.mrb[76].mxu0  ;;  %v4569_v34 = vpop.f32.mrb[73].mxu1 }
 0x216   : > { %v4463_v4 = vpop.f32.mrb[77].mxu0  ;;  %v4570_v36 = vadd.f32 %v4569_v34, %v4568_v37  ;;  %v4571_v2 = vpop.f32.mrb[74].mxu1  ;;  %4739 = vmatpush3.bf16.msra.mxu0 %v5187_v27 }
 0x217   : > { %v4464_v29 = vadd.f32 %v4463_v4, %v4462_v28  ;;  %v4465_v7 = vpop.f32.mrb[78].mxu0  ;;  %v4572_v22 = vpop.f32.mrb[75].mxu1  ;;  %4740 = vmatprep.subr.bf16.mxu0 %v5188_v43 }
 0x218   : > { %v4466_v10 = vpop.f32.mrb[79].mxu0  ;;  %v4573_v23 = vadd.f32 %v4572_v22, %v4571_v2  ;;  %v6292_v47 = vadd.f32 %v4570_v36, %v1992_v46 }
 0x219   : > { %v2000_v44 = vadd.f32 %v4464_v29, %v6215_v19  ;;  %v4467_v57 = vadd.f32 %v4466_v10, %v4465_v7 }
 0x21a   : > { %v6295_v54 = vadd.f32 %v4573_v23, %v1995_v30  ;;  %4741 = vmatpush3.bf16.msra.mxu0 %v5189_v9 }
 0x21b   : > { %v2003_v52 = vadd.f32 %v4467_v57, %v6218_v38  ;;  %4742 = vmatprep.subr.bf16.mxu0 %v5190_v42 }
 0x21c   : > { %v4574_v39 = vpop.f32.mrb[76].mxu1 }
 0x21d   : > { %v4468_v49 = vpop.f32.mrb[80].mxu0  ;;  %v4575_v8 = vpop.f32.mrb[77].mxu1 }
 0x21e   : > { %v4469_v56 = vpop.f32.mrb[81].mxu0  ;;  %v4576_v48 = vadd.f32 %v4575_v8, %v4574_v39  ;;  %v4577_v24 = vpop.f32.mrb[78].mxu1  ;;  %4743 = vmatpush3.bf16.msra.mxu0 %v5191_v11 }
 0x21f   : > { %v4470_v19 = vadd.f32 %v4469_v56, %v4468_v49  ;;  %v4471_v60 = vpop.f32.mrb[82].mxu0  ;;  %v4578_v1 = vpop.f32.mrb[79].mxu1 }
 0x220   : > { %v4472_v46 = vpop.f32.mrb[83].mxu0  ;;  %v4579_v30 = vadd.f32 %v4578_v1, %v4577_v24  ;;  %v6298_v37 = vadd.f32 %v4576_v48, %v2000_v44 }
 0x221   : > { %v2008_v28 = vadd.f32 %v4470_v19, %v6220_v21  ;;  %v4473_v38 = vadd.f32 %v4472_v46, %v4471_v60  ;;  %v5192_v46 = vld [vmem:[#allocation9 + $0x140] sm:$0xff]  }
 0x222   : > { %v6301_v55 = vadd.f32 %v4579_v30, %v2003_v52  ;;  %4768 = vmatprep.subr.bf16.mxu1 %v5192_v46 }
 0x223   : > { %v2011_v4 = vadd.f32 %v4473_v38, %v6222_v58 }
 0x224   : > { %v4580_v29 = vpop.f32.mrb[80].mxu1 }
 0x225   : > { %v4474_v34 = vpop.f32.mrb[84].mxu0  ;;  %v4581_v61 = vpop.f32.mrb[81].mxu1 }
 0x226   : > { %v4475_v7 = vpop.f32.mrb[85].mxu0  ;;  %v4582_v2 = vadd.f32 %v4581_v61, %v4580_v29  ;;  %v4583_v10 = vpop.f32.mrb[82].mxu1 }
 0x227   : > { %v4476_v18 = vadd.f32 %v4475_v7, %v4474_v34  ;;  %v4477_v36 = vpop.f32.mrb[86].mxu0  ;;  %v4584_v21 = vpop.f32.mrb[83].mxu1 }
 0x228   : > { %v4478_v27 = vpop.f32.mrb[87].mxu0  ;;  %v4585_v44 = vadd.f32 %v4584_v21, %v4583_v10  ;;  %v6304_v43 = vadd.f32 %v4582_v2, %v2008_v28 }
 0x229   : > { %v2016_v22 = vadd.f32 %v4476_v18, %v6224_v5  ;;  %v4479_v57 = vadd.f32 %v4478_v27, %v4477_v36  ;;  %v5198_v27 = vld [vmem:[#allocation9 + $0x1c0] sm:$0xff]  }
 0x22a   : > { %v6307_v23 = vadd.f32 %v4585_v44, %v2011_v4  ;;  %4808 = vmatprep.subr.bf16.mxu0 %v5198_v27 }
 0x22b   : > { %v2019_v58 = vadd.f32 %v4479_v57, %v6226_v14 }
 0x22c   : > { %v4586_v9 = vpop.f32.mrb[84].mxu1 }
 0x22d   : > { %v4480_v52 = vpop.f32.mrb[88].mxu0  ;;  %v4587_v39 = vpop.f32.mrb[85].mxu1 }
 0x22e   : > { %v4481_v49 = vpop.f32.mrb[89].mxu0  ;;  %v4588_v19 = vadd.f32 %v4587_v39, %v4586_v9  ;;  %v4589_v60 = vpop.f32.mrb[86].mxu1 }
 0x22f   : > { %v4482_v56 = vadd.f32 %v4481_v49, %v4480_v52  ;;  %v4483_v8 = vpop.f32.mrb[90].mxu0  ;;  %v4590_v48 = vpop.f32.mrb[87].mxu1 }
 0x230   : > { %v4484_v42 = vpop.f32.mrb[91].mxu0  ;;  %v4591_v11 = vadd.f32 %v4590_v48, %v4589_v60  ;;  %v6310_v1 = vadd.f32 %v4588_v19, %v2016_v22 }
 0x231   : > { %v2024_v5 = vadd.f32 %v4482_v56, %v6228_v53  ;;  %v4485_v24 = vadd.f32 %v4484_v42, %v4483_v8 }
 0x232   : > { %v6313_v28 = vadd.f32 %v4591_v11, %v2019_v58 }
 0x233   : > { %v2027_v14 = vadd.f32 %v4485_v24, %v6230_v40 }
 0x234   : > { %v4592_v30 = vpop.f32.mrb[88].mxu1 }
 0x235   : > { %v4486_v38 = vpop.f32.mrb[92].mxu0  ;;  %v4593_v34 = vpop.f32.mrb[89].mxu1 }
 0x236   : > { %v4487_v4 = vpop.f32.mrb[93].mxu0  ;;  %v4594_v61 = vadd.f32 %v4593_v34, %v4592_v30  ;;  %v4595_v18 = vpop.f32.mrb[90].mxu1 }
 0x237   : > { %v4488_v29 = vadd.f32 %v4487_v4, %v4486_v38  ;;  %v4489_v7 = vpop.f32.mrb[94].mxu0  ;;  %v4596_v53 = vpop.f32.mrb[91].mxu1 }
 0x238   : > { %v4490_v36 = vpop.f32.mrb[95].mxu0  ;;  %v4597_v21 = vadd.f32 %v4596_v53, %v4595_v18  ;;  %v6316_v22 = vadd.f32 %v4594_v61, %v2024_v5 }
 0x239   : > { %v2032_v2 = vadd.f32 %v4488_v29, %v6232_v12  ;;  %v4491_v10 = vadd.f32 %v4490_v36, %v4489_v7 }
 0x23a   : > { %v6319_v57 = vadd.f32 %v4597_v21, %v2027_v14 }
 0x23b   : > { %v2035_v40 = vadd.f32 %v4491_v10, %v6234_v33 }
 0x23c   : > { %v4598_v58 = vpop.f32.mrb[92].mxu1 }
 0x23d   : > { %v4492_v44 = vpop.f32.mrb[96].mxu0  ;;  %v4599_v9 = vpop.f32.mrb[93].mxu1 }
 0x23e   : > { %v4493_v52 = vpop.f32.mrb[97].mxu0  ;;  %v4600_v56 = vadd.f32 %v4599_v9, %v4598_v58  ;;  %v4601_v8 = vpop.f32.mrb[94].mxu1 }
 0x23f   : > { %v4494_v49 = vadd.f32 %v4493_v52, %v4492_v44  ;;  %v4495_v39 = vpop.f32.mrb[98].mxu0  ;;  %v4602_v12 = vpop.f32.mrb[95].mxu1 }
 0x240   : > { %v4496_v19 = vpop.f32.mrb[99].mxu0  ;;  %v4603_v48 = vadd.f32 %v4602_v12, %v4601_v8  ;;  %v6322_v5 = vadd.f32 %v4600_v56, %v2032_v2 }
 0x241   : > { %v2040_v60 = vadd.f32 %v4494_v49, %v6236_v63  ;;  %v4497_v42 = vadd.f32 %v4496_v19, %v4495_v39 }
 0x242   : > { %v6325_v24 = vadd.f32 %v4603_v48, %v2035_v40 }
 0x243   : > { %v2043_v33 = vadd.f32 %v4497_v42, %v6238_v0 }
 0x244   : > { %v4604_v11 = vpop.f32.mrb[96].mxu1 }
 0x245   : > { %v4498_v46 = vpop.f32.mrb[100].mxu0  ;;  %v4605_v38 = vpop.f32.mrb[97].mxu1 }
 0x246   : > { %v4499_v14 = vpop.f32.mrb[101].mxu0  ;;  %v4606_v34 = vadd.f32 %v4605_v38, %v4604_v11  ;;  %v4607_v29 = vpop.f32.mrb[98].mxu1 }
 0x247   : > { %v4500_v30 = vadd.f32 %v4499_v14, %v4498_v46  ;;  %v4501_v4 = vpop.f32.mrb[102].mxu0  ;;  %v4608_v61 = vpop.f32.mrb[99].mxu1 }
 0x248   : > { %v4502_v7 = vpop.f32.mrb[103].mxu0  ;;  %v4609_v36 = vadd.f32 %v4608_v61, %v4607_v29  ;;  %v6328_v53 = vadd.f32 %v4606_v34, %v2040_v60 }
 0x249   : > { %v2048_v63 = vadd.f32 %v4500_v30, %v6240_v50  ;;  %v4503_v18 = vadd.f32 %v4502_v7, %v4501_v4 }
 0x24a   : > { %v6331_v2 = vadd.f32 %v4609_v36, %v2043_v33 }
 0x24b   : > { %v2051_v0 = vadd.f32 %v4503_v18, %v6242_v41 }
 0x24c   : > { %v4610_v27 = vpop.f32.mrb[100].mxu1 }
 0x24d   : > { %v4504_v10 = vpop.f32.mrb[104].mxu0  ;;  %v4611_v40 = vpop.f32.mrb[101].mxu1 }
 0x24e   : > { %v4505_v21 = vpop.f32.mrb[105].mxu0  ;;  %v4612_v52 = vadd.f32 %v4611_v40, %v4610_v27  ;;  %v4613_v9 = vpop.f32.mrb[102].mxu1 }
 0x24f   : > { %v4506_v44 = vadd.f32 %v4505_v21, %v4504_v10  ;;  %v4507_v58 = vpop.f32.mrb[106].mxu0  ;;  %v4614_v39 = vpop.f32.mrb[103].mxu1 }
 0x250   : > { %v4508_v49 = vpop.f32.mrb[107].mxu0  ;;  %v4615_v8 = vadd.f32 %v4614_v39, %v4613_v9  ;;  %v6334_v19 = vadd.f32 %v4612_v52, %v2048_v63 }
 0x251   : > { %v2056_v50 = vadd.f32 %v4506_v44, %v6244_v26  ;;  %v4509_v56 = vadd.f32 %v4508_v49, %v4507_v58 }
 0x252   : > { %v6337_v12 = vadd.f32 %v4615_v8, %v2051_v0 }
 0x253   : > { %v2059_v41 = vadd.f32 %v4509_v56, %v6247_v31 }
 0x254   : > { %v4616_v42 = vpop.f32.mrb[104].mxu1 }
 0x255   : > { %v4510_v60 = vpop.f32.mrb[108].mxu0  ;;  %v4617_v33 = vpop.f32.mrb[105].mxu1 }
 0x256   : > { %v4511_v48 = vpop.f32.mrb[109].mxu0  ;;  %v4618_v14 = vadd.f32 %v4617_v33, %v4616_v42  ;;  %v4619_v38 = vpop.f32.mrb[106].mxu1 }
 0x257   : > { %v4512_v46 = vadd.f32 %v4511_v48, %v4510_v60  ;;  %v4513_v11 = vpop.f32.mrb[110].mxu0  ;;  %v4620_v4 = vpop.f32.mrb[107].mxu1 }
 0x258   : > { %v4514_v30 = vpop.f32.mrb[111].mxu0  ;;  %v4621_v29 = vadd.f32 %v4620_v4, %v4619_v38  ;;  %v6340_v7 = vadd.f32 %v4618_v14, %v2056_v50 }
 0x259   : > { %v2064_v26 = vadd.f32 %v4512_v46, %v6249_v3  ;;  %v4515_v34 = vadd.f32 %v4514_v30, %v4513_v11 }
 0x25a   : > { %v6343_v61 = vadd.f32 %v4621_v29, %v2059_v41 }
 0x25b   : > { %v2067_v31 = vadd.f32 %v4515_v34, %v6251_v35 }
 0x25c   : > { %v4622_v18 = vpop.f32.mrb[108].mxu1 }
 0x25d   : > { %v4516_v63 = vpop.f32.mrb[112].mxu0  ;;  %v4623_v0 = vpop.f32.mrb[109].mxu1 }
 0x25e   : > { %v4517_v36 = vpop.f32.mrb[113].mxu0  ;;  %v4624_v21 = vadd.f32 %v4623_v0, %v4622_v18  ;;  %v4625_v40 = vpop.f32.mrb[110].mxu1 }
 0x25f   : > { %v4518_v10 = vadd.f32 %v4517_v36, %v4516_v63  ;;  %v4519_v27 = vpop.f32.mrb[114].mxu0  ;;  %v4626_v58 = vpop.f32.mrb[111].mxu1 }
 0x260   : > { %v4520_v44 = vpop.f32.mrb[115].mxu0  ;;  %v4627_v9 = vadd.f32 %v4626_v58, %v4625_v40  ;;  %v6346_v49 = vadd.f32 %v4624_v21, %v2064_v26 }
 0x261   : > { %v2072_v3 = vadd.f32 %v4518_v10, %v6253_v16  ;;  %v4521_v52 = vadd.f32 %v4520_v44, %v4519_v27 }
 0x262   : > { %v6349_v39 = vadd.f32 %v4627_v9, %v2067_v31 }
 0x263   : > { %v2075_v35 = vadd.f32 %v4521_v52, %v6255_v45 }
 0x264   : > { %v4628_v56 = vpop.f32.mrb[112].mxu1 }
 0x265   : > { %v4522_v50 = vpop.f32.mrb[116].mxu0  ;;  %v4629_v41 = vpop.f32.mrb[113].mxu1 }
 0x266   : > { %v4523_v8 = vpop.f32.mrb[117].mxu0  ;;  %v4630_v48 = vadd.f32 %v4629_v41, %v4628_v56  ;;  %v4631_v33 = vpop.f32.mrb[114].mxu1 }
 0x267   : > { %v4524_v60 = vadd.f32 %v4523_v8, %v4522_v50  ;;  %v4525_v42 = vpop.f32.mrb[118].mxu0  ;;  %v4632_v11 = vpop.f32.mrb[115].mxu1 }
 0x268   : > { %v4526_v46 = vpop.f32.mrb[119].mxu0  ;;  %v4633_v38 = vadd.f32 %v4632_v11, %v4631_v33  ;;  %v6352_v30 = vadd.f32 %v4630_v48, %v2072_v3 }
 0x269   : > { %v2080_v16 = vadd.f32 %v4524_v60, %v6257_v13  ;;  %v4527_v14 = vadd.f32 %v4526_v46, %v4525_v42 }
 0x26a   : > { %v6355_v4 = vadd.f32 %v4633_v38, %v2075_v35 }
 0x26b   : > { %v2083_v45 = vadd.f32 %v4527_v14, %v6259_v15  ;;  %v6372_v14 = vld [vmem:[%s6541_s4] ss:$0 sm:$0xff] }
 0x26c   : > { %v4634_v34 = vpop.f32.mrb[116].mxu1 }
 0x26d   : > { %v4528_v26 = vpop.f32.mrb[120].mxu0  ;;  %v4635_v31 = vpop.f32.mrb[117].mxu1 }
 0x26e   : > { %v4529_v29 = vpop.f32.mrb[121].mxu0  ;;  %v4636_v36 = vadd.f32 %v4635_v31, %v4634_v34  ;;  %v4637_v0 = vpop.f32.mrb[118].mxu1 }
 0x26f   : > { %v4530_v63 = vadd.f32 %v4529_v29, %v4528_v26  ;;  %v4531_v18 = vpop.f32.mrb[122].mxu0  ;;  %v4638_v27 = vpop.f32.mrb[119].mxu1 }
 0x270   : > { %v4532_v10 = vpop.f32.mrb[123].mxu0  ;;  %v4639_v40 = vadd.f32 %v4638_v27, %v4637_v0  ;;  %v6358_v44 = vadd.f32 %v4636_v36, %v2080_v16 }
 0x271   : > { %v2088_v13 = vadd.f32 %v4530_v63, %v6263_v6  ;;  %v4533_v21 = vadd.f32 %v4532_v10, %v4531_v18 }
 0x272   : > { %v6361_v58 = vadd.f32 %v4639_v40, %v2083_v45 }
 0x273   : > { %v2091_v15 = vadd.f32 %v4533_v21, %v6267_v25 }
 0x274   : > { %v4640_v52 = vpop.f32.mrb[120].mxu1 }
 0x275   : > { %v4534_v3 = vpop.f32.mrb[124].mxu0  ;;  %v4641_v35 = vpop.f32.mrb[121].mxu1 }
 0x276   : > { %v4535_v9 = vpop.f32.mrb[125].mxu0  ;;  %v4642_v8 = vadd.f32 %v4641_v35, %v4640_v52  ;;  %v4643_v41 = vpop.f32.mrb[122].mxu1 }
 0x277   : > { %v4536_v50 = vadd.f32 %v4535_v9, %v4534_v3  ;;  %v4537_v56 = vpop.f32.mrb[126].mxu0  ;;  %v4644_v42 = vpop.f32.mrb[123].mxu1 }
 0x278   : > { %v4538_v60 = vpop.f32.mrb[127].mxu0  ;;  %v4645_v33 = vadd.f32 %v4644_v42, %v4643_v41  ;;  %v6364_v46 = vadd.f32 %v4642_v8, %v2088_v13 }
 0x279   : > { %v2096_v6 = vadd.f32 %v4536_v50, %v6270_v62  ;;  %v4539_v48 = vadd.f32 %v4538_v60, %v4537_v56  ;;  %v6378_v62 = vld [vmem:[%s6542_s5] ss:$0 sm:$0xff] }
 0x27a   : > { %v6367_v11 = vadd.f32 %v4645_v33, %v2091_v15 }
 0x27b   : > { %v2099_v25 = vadd.f32 %v4539_v48, %v6273_v59 }
 0x27c   : > { %v4646_v38 = vpop.f32.mrb[124].mxu1 }
 0x27d   : > { %v4878_v16 = vpop.f32.mrb[128].mxu0  ;;  %v4647_v34 = vpop.f32.mrb[125].mxu1 }
 0x27e   : > { %v2306_v45 = vadd.f32 %v4878_v16, %v6285_v51  ;;  %v2297_v26 = vpop.f32.mrb[129].mxu0  ;;  %v4648_v31 = vadd.f32 %v4647_v34, %v4646_v38  ;;  %v4649_v63 = vpop.f32.mrb[126].mxu1 }
 0x27f   : > { %v2298_v59 = vadd.f32 %v2297_v26, %v6276_v20  ;;  %v4879_v29 = vpop.f32.mrb[130].mxu0  ;;  %v4650_v10 = vpop.f32.mrb[127].mxu1 }
 0x280   : > { %v2433_v18 = vmul.f32 %v6372_v14, %v2306_v45  ;;  %v2309_v36 = vadd.f32 %v4879_v29, %v6289_v32  ;;  %v2300_v0 = vpop.f32.mrb[131].mxu0  ;;  %v4651_v13 = vadd.f32 %v4650_v10, %v4649_v63  ;;  %v6387_v15 = vadd.f32 %v4648_v31, %v2096_v6  ;;  %v2626_v63 = vld [vmem:[#allocation3 + $0x1] ss:$2 sm:$0xff] }
 0x281   : > { %v2431_v51 = vmul.f32 %v6372_v14, %v2298_v59  ;;  %v2301_v27 = vadd.f32 %v2300_v0, %v6279_v17 }
 0x282   : > { %v2472_v21 = vadd.f32 %v6378_v62, %v2433_v18  ;;  %v2434_v40 = vmul.f32 %v6372_v14, %v2309_v36  ;;  %v6392_v9 = vadd.f32 %v4651_v13, %v2099_v25  ;;  %v2606_v18 = vld [vmem:[#allocation3] ss:$2 sm:$0xff] }
 0x283   : > { %v2470_v20 = vadd.f32 %v6378_v62, %v2431_v51  ;;  %v2432_v3 = vmul.f32 %v6372_v14, %v2301_v27 }
 0x284   : > { %v2504_v52 = vmax.f32 %v2472_v21, 0.0  ;;  %v2473_v32 = vadd.f32 %v6378_v62, %v2434_v40 }
 0x285   : > { %v2502_v35 = vmax.f32 %v2470_v20, 0.0  ;;  %v2471_v50 = vadd.f32 %v6378_v62, %v2432_v3  ;;  %v4882_v17 = vpop.f32.mrb[132].mxu0 }
 0x286   : > { %2576 = vst [vmem:[#allocation3 + $0x31] sm:$0xff] %v2504_v52  ;;  %v2505_v56 = vmax.f32 %v2473_v32, 0.0  ;;  %v2322_v8 = vadd.f32 %v4882_v17, %v6298_v37  ;;  %v2313_v41 = vpop.f32.mrb[133].mxu0  ;;  %v5194_v17 = vld [vmem:[#allocation9 + $0x148] sm:$0xff]  }
 0x287   : > { %2574 = vst [vmem:[#allocation3 + $0x19] sm:$0xff] %v2502_v35  ;;  %v2503_v60 = vmax.f32 %v2471_v50, 0.0  ;;  %v2314_v42 = vadd.f32 %v2313_v41, %v6292_v47  ;;  %v4883_v6 = vpop.f32.mrb[134].mxu0  ;;  %v5193_v35 = vld [vmem:[#allocation9 + $0x100] sm:$0xff]  }
 0x288   : > { %2577 = vst [vmem:[#allocation3 + $0x39] sm:$0xff] %v2505_v56  ;;  %v2437_v48 = vmul.f32 %v6372_v14, %v2322_v8  ;;  %v2325_v33 = vadd.f32 %v4883_v6, %v6301_v55  ;;  %v2316_v25 = vpop.f32.mrb[135].mxu0 }
 0x289   : > { %2575 = vst [vmem:[#allocation3 + $0x21] sm:$0xff] %v2503_v60  ;;  %v2435_v16 = vmul.f32 %v6372_v14, %v2314_v42  ;;  %v2317_v38 = vadd.f32 %v2316_v25, %v6295_v54  ;;  %v5195_v42 = vld [vmem:[#allocation9 + $0x108] sm:$0xff]  }
 0x28a   : > { %v2476_v45 = vadd.f32 %v6378_v62, %v2437_v48  ;;  %v2438_v37 = vmul.f32 %v6372_v14, %v2325_v33  ;;  %v5196_v33 = vld [vmem:[#allocation9 + $0x150] sm:$0xff]  }
 0x28b   : > { %v2474_v26 = vadd.f32 %v6378_v62, %v2435_v16  ;;  %v2436_v47 = vmul.f32 %v6372_v14, %v2317_v38 }
 0x28c   : > { %v2508_v34 = vmax.f32 %v2476_v45, 0.0  ;;  %v2477_v59 = vadd.f32 %v6378_v62, %v2438_v37 }
 0x28d   : > { %v2506_v29 = vmax.f32 %v2474_v26, 0.0  ;;  %v2475_v55 = vadd.f32 %v6378_v62, %v2436_v47  ;;  %v4886_v31 = vpop.f32.mrb[136].mxu0  ;;  %v2646_v47 = vld [vmem:[#allocation3 + $0x2] ss:$2 sm:$0xff] }
 0x28e   : > { %2580 = vst [vmem:[#allocation3 + $0x61] sm:$0xff] %v2508_v34  ;;  %v2509_v36 = vmax.f32 %v2477_v59, 0.0  ;;  %v2338_v54 = vadd.f32 %v4886_v31, %v6310_v1  ;;  %v2329_v0 = vpop.f32.mrb[137].mxu0 }
 0x28f   : > { %2578 = vst [vmem:[#allocation3 + $0x49] sm:$0xff] %v2506_v29  ;;  %v2507_v10 = vmax.f32 %v2475_v55, 0.0  ;;  %v2330_v51 = vadd.f32 %v2329_v0, %v6304_v43  ;;  %v4887_v27 = vpop.f32.mrb[138].mxu0  ;;  %v2628_v13 = vld [vmem:[#allocation3 + $0x31] ss:$2 sm:$0xff]  ;;  %v5200_v0 = vld [vmem:[#allocation9 + $0x158] sm:$0xff]  }
 0x290   : > { %v2608_v21 = vld [vmem:[#allocation3 + $0x30] ss:$2 sm:$0xff]  ;;  %2581 = vst [vmem:[#allocation3 + $0x69] sm:$0xff] %v2509_v36  ;;  %v2441_v40 = vmul.f32 %v6372_v14, %v2338_v54  ;;  %v2341_v20 = vadd.f32 %v4887_v27, %v6313_v28  ;;  %v2332_v3 = vpop.f32.mrb[139].mxu0  ;;  %v2641_v52 = vpack.c.bf16 %v2628_v13, %v2626_v63 }
 0x291   : > { %v2621_v32 = vpack.c.bf16 %v2608_v21, %v2606_v18  ;;  %2579 = vst [vmem:[#allocation3 + $0x51] sm:$0xff] %v2507_v10  ;;  %v2439_v1 = vmul.f32 %v6372_v14, %v2330_v51  ;;  %v2333_v50 = vadd.f32 %v2332_v3, %v6307_v23  ;;  %v2648_v34 = vld [vmem:[#allocation3 + $0x32] ss:$2 sm:$0xff] }
 0x292   : > { %v2480_v43 = vadd.f32 %v6378_v62, %v2441_v40  ;;  %v2442_v56 = vmul.f32 %v6372_v14, %v2341_v20  ;;  %3540 = vmatprep.mubr.bf16.mxu1 %v2641_v52  ;;  %v2665_v31 = vld [vmem:[#allocation3 + $0x18] ss:$2 sm:$0xff]  ;;  %v2661_v27 = vpack.c.bf16 %v2648_v34, %v2646_v47 }
 0x293   : > { %v2478_v8 = vadd.f32 %v6378_v62, %v2439_v1  ;;  %v2440_v41 = vmul.f32 %v6372_v14, %v2333_v50  ;;  %3541 = vmatmul.mubr.bf16.vlgmr.msra.gmra.mrb[136].mxu1 %v2621_v32  ;;  %v5197_v18 = vld [vmem:[#allocation9 + $0x110] sm:$0xff]   ;;  %v5204_v1 = vld [vmem:[#allocation9 + $0x160] sm:$0xff]  }
 0x294   : > { %v2512_v28 = vmax.f32 %v2480_v43, 0.0  ;;  %v2481_v60 = vadd.f32 %v6378_v62, %v2442_v56  ;;  %4769 = vmatpush3.bf16.msra.mxu1 %v5193_v35  ;;  %v5203_v35 = vld [vmem:[#allocation9 + $0x188] sm:$0xff]   ;;  %v5206_v50 = vld [vmem:[#allocation9 + $0x1d0] sm:$0xff]  }
 0x295   : > { %v2510_v6 = vmax.f32 %v2478_v8, 0.0  ;;  %v2479_v48 = vadd.f32 %v6378_v62, %v2440_v41  ;;  %v4890_v23 = vpop.f32.mrb[140].mxu0  ;;  %4770 = vmatprep.subr.bf16.mxu1 %v5194_v17 }
 0x296   : > { %2584 = vst [vmem:[#allocation3 + $0x91] sm:$0xff] %v2512_v28  ;;  %v2513_v25 = vmax.f32 %v2481_v60, 0.0  ;;  %v2354_v16 = vadd.f32 %v4890_v23, %v6322_v5  ;;  %v2345_v38 = vpop.f32.mrb[141].mxu0 }
 0x297   : > { %2582 = vst [vmem:[#allocation3 + $0x79] sm:$0xff] %v2510_v6  ;;  %v2511_v45 = vmax.f32 %v2479_v48, 0.0  ;;  %v2346_v37 = vadd.f32 %v2345_v38, %v6316_v22  ;;  %v4891_v26 = vpop.f32.mrb[142].mxu0  ;;  %v5199_v22 = vld [vmem:[#allocation9 + $0x180] sm:$0xff]   ;;  %v2630_v8 = vld [vmem:[#allocation3 + $0x61] ss:$2 sm:$0xff] }
 0x298   : > { %2585 = vst [vmem:[#allocation3 + $0x99] sm:$0xff] %v2513_v25  ;;  %v2445_v59 = vmul.f32 %v6372_v14, %v2354_v16  ;;  %v2357_v29 = vadd.f32 %v4891_v26, %v6325_v24  ;;  %v2348_v55 = vpop.f32.mrb[143].mxu0  ;;  %v2667_v63 = vld [vmem:[#allocation3 + $0x48] ss:$2 sm:$0xff]  ;;  %4771 = vmatpush3.bf16.msra.mxu1 %v5195_v42  ;;  %v5202_v24 = vld [vmem:[#allocation9 + $0x1c8] sm:$0xff]  }
 0x299   : > { %2583 = vst [vmem:[#allocation3 + $0x81] sm:$0xff] %v2511_v45  ;;  %v2443_v5 = vmul.f32 %v6372_v14, %v2346_v37  ;;  %v2349_v36 = vadd.f32 %v2348_v55, %v6319_v57  ;;  %v2680_v54 = vpack.c.bf16 %v2667_v63, %v2665_v31  ;;  %4772 = vmatprep.subr.bf16.mxu1 %v5196_v33  ;;  %v5201_v57 = vld [vmem:[#allocation9 + $0x118] sm:$0xff]   ;;  %v5208_v26 = vld [vmem:[#allocation9 + $0x168] sm:$0xff]  }
 0x29a   : > { %v2484_v10 = vadd.f32 %v6378_v62, %v2445_v59  ;;  %v2446_v51 = vmul.f32 %v6372_v14, %v2357_v29  ;;  %v2610_v41 = vld [vmem:[#allocation3 + $0x60] ss:$2 sm:$0xff] }
 0x29b   : > { %v2482_v13 = vadd.f32 %v6378_v62, %v2443_v5  ;;  %v2444_v21 = vmul.f32 %v6372_v14, %v2349_v36  ;;  %3605 = vmatprep.mubr.bf16.mxu0 %v2680_v54  ;;  %v5211_v36 = vld [vmem:[#allocation9 + $0x198] sm:$0xff]   ;;  %v5212_v54 = vld [vmem:[#allocation9 + $0x170] sm:$0xff]  }
 0x29c   : > { %v2516_v40 = vmax.f32 %v2484_v10, 0.0  ;;  %v2485_v20 = vadd.f32 %v6378_v62, %v2446_v51  ;;  %3606 = vmatmul.mubr.bf16.vlgmr.msra.gmra.mrb[160].mxu0 %v2661_v27  ;;  %4773 = vmatpush3.bf16.msra.mxu1 %v5197_v18  ;;  %v5214_v51 = vld [vmem:[#allocation9 + $0x1e0] sm:$0xff]  }
 0x29d   : > { %v2514_v3 = vmax.f32 %v2482_v13, 0.0  ;;  %v2483_v52 = vadd.f32 %v6378_v62, %v2444_v21  ;;  %v4894_v32 = vpop.f32.mrb[144].mxu0  ;;  %4809 = vmatpush3.bf16.msra.mxu0 %v5199_v22  ;;  %4774 = vmatprep.subr.bf16.mxu1 %v5200_v0 }
 0x29e   : > { %2588 = vst [vmem:[#allocation3 + $0xc1] sm:$0xff] %v2516_v40  ;;  %v2517_v17 = vmax.f32 %v2485_v20, 0.0  ;;  %v2370_v43 = vadd.f32 %v4894_v32, %v6334_v19  ;;  %v2361_v56 = vpop.f32.mrb[145].mxu0  ;;  %4810 = vmatprep.subr.bf16.mxu0 %v5202_v24  ;;  %v5205_v19 = vld [vmem:[#allocation9 + $0x120] sm:$0xff]   ;;  %v5213_v32 = vld [vmem:[#allocation9 + $0x130] sm:$0xff]  }
 0x29f   : > { %2586 = vst [vmem:[#allocation3 + $0xa9] sm:$0xff] %v2514_v3  ;;  %v2515_v28 = vmax.f32 %v2483_v52, 0.0  ;;  %v2362_v60 = vadd.f32 %v2361_v56, %v6328_v53  ;;  %v4895_v42 = vpop.f32.mrb[146].mxu0  ;;  %v2632_v6 = vld [vmem:[#allocation3 + $0x91] ss:$2 sm:$0xff]  ;;  %v5207_v53 = vld [vmem:[#allocation9 + $0x190] sm:$0xff]  }
 0x2a0   : > { %v2612_v48 = vld [vmem:[#allocation3 + $0x90] ss:$2 sm:$0xff]  ;;  %2589 = vst [vmem:[#allocation3 + $0xc9] sm:$0xff] %v2517_v17  ;;  %v2449_v23 = vmul.f32 %v6372_v14, %v2370_v43  ;;  %v2373_v33 = vadd.f32 %v4895_v42, %v6337_v12  ;;  %v2364_v25 = vpop.f32.mrb[147].mxu0  ;;  %v2642_v16 = vpack.c.bf16 %v2632_v6, %v2630_v8  ;;  %4775 = vmatpush3.bf16.msra.mxu1 %v5201_v57  ;;  %v5210_v12 = vld [vmem:[#allocation9 + $0x1d8] sm:$0xff]  }
 0x2a1   : > { %v2622_v38 = vpack.c.bf16 %v2612_v48, %v2610_v41  ;;  %2587 = vst [vmem:[#allocation3 + $0xb1] sm:$0xff] %v2515_v28  ;;  %v2447_v45 = vmul.f32 %v6372_v14, %v2362_v60  ;;  %v2365_v37 = vadd.f32 %v2364_v25, %v6331_v2  ;;  %4811 = vmatpush3.bf16.msra.mxu0 %v5203_v35  ;;  %v5209_v2 = vld [vmem:[#allocation9 + $0x128] sm:$0xff]   ;;  %v5216_v17 = vld [vmem:[#allocation9 + $0x178] sm:$0xff]   ;;  %v6455_v25 = vld [vmem:[#allocation9 + $0x200] sm:$0xff]  }
 0x2a2   : > { %4776 = vmatprep.subr.bf16.mxu1 %v5204_v1  ;;  %v2488_v47 = vadd.f32 %v6378_v62, %v2449_v23  ;;  %v2450_v34 = vmul.f32 %v6372_v14, %v2373_v33  ;;  %3548 = vmatprep.mubr.bf16.mxu1 %v2642_v16  ;;  %v2652_v21 = vld [vmem:[#allocation3 + $0x92] ss:$2 sm:$0xff]  ;;  %v5217_v42 = vld [vmem:[#allocation9 + $0x138] sm:$0xff]  }
 0x2a3   : > { %4812 = vmatprep.subr.bf16.mxu0 %v5206_v50  ;;  %v2486_v59 = vadd.f32 %v6378_v62, %v2447_v45  ;;  %v2448_v29 = vmul.f32 %v6372_v14, %v2365_v37  ;;  %3549 = vmatmul.mubr.bf16.gmra.mrb[140].mxu1 %v2622_v38  ;;  %v2669_v3 = vld [vmem:[#allocation3 + $0x78] ss:$2 sm:$0xff] }
 0x2a4   : > { %v2520_v55 = vmax.f32 %v2488_v47, 0.0  ;;  %v2489_v31 = vadd.f32 %v6378_v62, %v2450_v34  ;;  %4777 = vmatpush3.bf16.msra.mxu1 %v5205_v19  ;;  %v2650_v50 = vld [vmem:[#allocation3 + $0x62] ss:$2 sm:$0xff]  ;;  %v5218_v8 = vld [vmem:[#allocation9 + $0x1e8] sm:$0xff]  }
 0x2a5   : > { %v2518_v63 = vmax.f32 %v2486_v59, 0.0  ;;  %v2487_v18 = vadd.f32 %v6378_v62, %v2448_v29  ;;  %v4898_v5 = vpop.f32.mrb[148].mxu0  ;;  %4813 = vmatpush3.bf16.msra.mxu0 %v5207_v53  ;;  %4778 = vmatprep.subr.bf16.mxu1 %v5208_v26  ;;  %v2662_v56 = vpack.c.bf16 %v2652_v21, %v2650_v50  ;;  %v5219_v33 = vld [vmem:[#allocation9 + $0x1a8] sm:$0xff]   ;;  %v5221_v16 = vld [vmem:[#allocation9 + $0x1f0] sm:$0xff]  }
 0x2a6   : > { %2592 = vst [vmem:[#allocation3 + $0xf1] sm:$0xff] %v2520_v55  ;;  %v2521_v22 = vmax.f32 %v2489_v31, 0.0  ;;  %v2386_v0 = vadd.f32 %v4898_v5, %v6346_v49  ;;  %v2377_v10 = vpop.f32.mrb[149].mxu0  ;;  %4814 = vmatprep.subr.bf16.mxu0 %v5210_v12 }
 0x2a7   : > { %2590 = vst [vmem:[#allocation3 + $0xd9] sm:$0xff] %v2518_v63  ;;  %v2519_v27 = vmax.f32 %v2487_v18, 0.0  ;;  %v2378_v24 = vadd.f32 %v2377_v10, %v6340_v7  ;;  %v4899_v13 = vpop.f32.mrb[150].mxu0  ;;  %v5215_v7 = vld [vmem:[#allocation9 + $0x1a0] sm:$0xff]   ;;  %v2634_v37 = vld [vmem:[#allocation3 + $0xc1] ss:$2 sm:$0xff] }
 0x2a8   : > { %2593 = vst [vmem:[#allocation3 + $0xf9] sm:$0xff] %v2521_v22  ;;  %v2453_v40 = vmul.f32 %v6372_v14, %v2386_v0  ;;  %v2389_v20 = vadd.f32 %v4899_v13, %v6349_v39  ;;  %v2380_v57 = vpop.f32.mrb[151].mxu0  ;;  %v2671_v52 = vld [vmem:[#allocation3 + $0xa8] ss:$2 sm:$0xff]  ;;  %4779 = vmatpush3.bf16.msra.mxu1 %v5209_v2 }
 0x2a9   : > { %2591 = vst [vmem:[#allocation3 + $0xe1] sm:$0xff] %v2519_v27  ;;  %v2451_v49 = vmul.f32 %v6372_v14, %v2378_v24  ;;  %v2381_v35 = vadd.f32 %v2380_v57, %v6343_v61  ;;  %v2681_v1 = vpack.c.bf16 %v2671_v52, %v2669_v3  ;;  %4815 = vmatpush3.bf16.msra.mxu0 %v5211_v36  ;;  %v2614_v53 = vld [vmem:[#allocation3 + $0xc0] ss:$2 sm:$0xff] }
 0x2aa   : > { %4780 = vmatprep.subr.bf16.mxu1 %v5212_v54  ;;  %v2492_v43 = vadd.f32 %v6378_v62, %v2453_v40  ;;  %v2454_v39 = vmul.f32 %v6372_v14, %v2389_v20  ;;  %4816 = vmatprep.subr.bf16.mxu0 %v5214_v51  ;;  %v5225_v24 = vld [vmem:[#allocation9 + $0x1b8] sm:$0xff]  }
 0x2ab   : > { %v2490_v41 = vadd.f32 %v6378_v62, %v2451_v49  ;;  %v2452_v28 = vmul.f32 %v6372_v14, %v2381_v35  ;;  %3613 = vmatprep.mubr.bf16.mxu0 %v2681_v1 }
 0x2ac   : > { %v2524_v60 = vmax.f32 %v2492_v43, 0.0  ;;  %v2493_v61 = vadd.f32 %v6378_v62, %v2454_v39  ;;  %3614 = vmatmul.mubr.bf16.gmra.mrb[164].mxu0 %v2662_v56  ;;  %4781 = vmatpush3.bf16.msra.mxu1 %v5213_v32  ;;  %v2654_v43 = vld [vmem:[#allocation3 + $0xc2] ss:$2 sm:$0xff] }
 0x2ad   : > { %v2522_v6 = vmax.f32 %v2490_v41, 0.0  ;;  %v2491_v48 = vadd.f32 %v6378_v62, %v2452_v28  ;;  %v4902_v23 = vpop.f32.mrb[152].mxu0  ;;  %4817 = vmatpush3.bf16.msra.mxu0 %v5215_v7  ;;  %4782 = vmatprep.subr.bf16.mxu1 %v5216_v17 }
 0x2ae   : > { %2596 = vst [vmem:[#allocation3 + $0x121] sm:$0xff] %v2524_v60  ;;  %v2525_v38 = vmax.f32 %v2493_v61, 0.0  ;;  %v2402_v19 = vadd.f32 %v4902_v23, %v6358_v44  ;;  %v2393_v45 = vpop.f32.mrb[153].mxu0  ;;  %4818 = vmatprep.subr.bf16.mxu0 %v5218_v8  ;;  %v2707_v61 = vld [vmem:[#allocation3 + $0x4a] ss:$2 sm:$0xff] }
 0x2af   : > { %2594 = vst [vmem:[#allocation3 + $0x109] sm:$0xff] %v2522_v6  ;;  %v2523_v26 = vmax.f32 %v2491_v48, 0.0  ;;  %v2394_v47 = vadd.f32 %v2393_v45, %v6352_v30  ;;  %v4903_v34 = vpop.f32.mrb[154].mxu0  ;;  %v2636_v12 = vld [vmem:[#allocation3 + $0xf1] ss:$2 sm:$0xff]  ;;  %v5222_v30 = vld [vmem:[#allocation9 + $0x1b0] sm:$0xff]  }
 0x2b0   : > { %v2616_v59 = vld [vmem:[#allocation3 + $0xf0] ss:$2 sm:$0xff]  ;;  %2597 = vst [vmem:[#allocation3 + $0x129] sm:$0xff] %v2525_v38  ;;  %v2457_v29 = vmul.f32 %v6372_v14, %v2402_v19  ;;  %v2405_v55 = vadd.f32 %v4903_v34, %v6361_v58  ;;  %v2396_v31 = vpop.f32.mrb[155].mxu0  ;;  %v2643_v2 = vpack.c.bf16 %v2636_v12, %v2634_v37  ;;  %4783 = vmatpush3.bf16.msra.mxu1 %v5217_v42  ;;  %v5224_v58 = vld [vmem:[#allocation9 + $0x1f8] sm:$0xff]  }
 0x2b1   : > { %v2623_v63 = vpack.c.bf16 %v2616_v59, %v2614_v53  ;;  %2595 = vst [vmem:[#allocation3 + $0x111] sm:$0xff] %v2523_v26  ;;  %v2455_v44 = vmul.f32 %v6372_v14, %v2394_v47  ;;  %v2397_v18 = vadd.f32 %v2396_v31, %v6355_v4  ;;  %4819 = vmatpush3.bf16.msra.mxu0 %v5219_v33  ;;  %v2656_v52 = vld [vmem:[#allocation3 + $0xf2] ss:$2 sm:$0xff]  ;;  %v2687_v37 = vld [vmem:[#allocation3 + $0x49] ss:$2 sm:$0xff] }
 0x2b2   : > { %4932 = vmatprep.subr.bf16.mxu1 %v6455_v25  ;;  %v2496_v5 = vadd.f32 %v6378_v62, %v2457_v29  ;;  %v2458_v36 = vmul.f32 %v6372_v14, %v2405_v55  ;;  %3556 = vmatprep.mubr.bf16.mxu1 %v2643_v2  ;;  %v2673_v1 = vld [vmem:[#allocation3 + $0xd8] ss:$2 sm:$0xff]  ;;  %v2663_v56 = vpack.c.bf16 %v2656_v52, %v2654_v43  ;;  %v2747_v12 = vld [vmem:[#allocation3 + $0x61] ss:$2 sm:$0xff] }
 0x2b3   : > { %4820 = vmatprep.subr.bf16.mxu0 %v5221_v16  ;;  %v2494_v54 = vadd.f32 %v6378_v62, %v2455_v44  ;;  %v2456_v22 = vmul.f32 %v6372_v14, %v2397_v18  ;;  %3557 = vmatmul.mubr.bf16.gmra.mrb[144].mxu1 %v2623_v63  ;;  %v2705_v19 = vld [vmem:[#allocation3 + $0x1a] ss:$2 sm:$0xff]  ;;  %v2711_v26 = vld [vmem:[#allocation3 + $0xaa] ss:$2 sm:$0xff]  ;;  %v2745_v44 = vld [vmem:[#allocation3 + $0x31] ss:$2 sm:$0xff] }
 0x2b4   : > { %v2528_v0 = vmax.f32 %v2496_v5, 0.0  ;;  %v2497_v10 = vadd.f32 %v6378_v62, %v2458_v36  ;;  %v2720_v45 = vpack.c.bf16 %v2707_v61, %v2705_v19  ;;  %v2709_v31 = vld [vmem:[#allocation3 + $0x7a] ss:$2 sm:$0xff]  ;;  %v2691_v5 = vld [vmem:[#allocation3 + $0xa9] ss:$2 sm:$0xff] }
 0x2b5   : > { %v2526_v4 = vmax.f32 %v2494_v54, 0.0  ;;  %v2495_v51 = vadd.f32 %v6378_v62, %v2456_v22  ;;  %v4906_v27 = vpop.f32.mrb[156].mxu0  ;;  %4821 = vmatpush3.bf16.msra.mxu0 %v5222_v30  ;;  %v2721_v63 = vpack.c.bf16 %v2711_v26, %v2709_v31  ;;  %v5223_v18 = vld [vmem:[#allocation9 + $0x208] sm:$0xff]   ;;  %v2760_v30 = vpack.c.bf16 %v2747_v12, %v2745_v44  ;;  %v5226_v36 = vld [vmem:[#allocation9 + $0x210] sm:$0xff]  }
 0x2b6   : > { %2600 = vst [vmem:[#allocation3 + $0x151] sm:$0xff] %v2528_v0  ;;  %v2529_v13 = vmax.f32 %v2497_v10, 0.0  ;;  %v2418_v21 = vadd.f32 %v4906_v27, %v6387_v15  ;;  %v2409_v40 = vpop.f32.mrb[157].mxu0  ;;  %4822 = vmatprep.subr.bf16.mxu0 %v5224_v58  ;;  %v2727_v54 = vld [vmem:[#allocation3 + $0x60] ss:$2 sm:$0xff] }
 0x2b7   : > { %2598 = vst [vmem:[#allocation3 + $0x139] sm:$0xff] %v2526_v4  ;;  %v2527_v20 = vmax.f32 %v2495_v51, 0.0  ;;  %v2410_v57 = vadd.f32 %v2409_v40, %v6364_v46  ;;  %v4907_v3 = vpop.f32.mrb[158].mxu0  ;;  %v2638_v6 = vld [vmem:[#allocation3 + $0x121] ss:$2 sm:$0xff] }
 0x2b8   : > { %2601 = vst [vmem:[#allocation3 + $0x159] sm:$0xff] %v2529_v13  ;;  %v2461_v32 = vmul.f32 %v6372_v14, %v2418_v21  ;;  %v2421_v49 = vadd.f32 %v4907_v3, %v6392_v9  ;;  %v2412_v35 = vpop.f32.mrb[159].mxu0  ;;  %v2675_v50 = vld [vmem:[#allocation3 + $0x108] ss:$2 sm:$0xff]  ;;  %v2689_v22 = vld [vmem:[#allocation3 + $0x79] ss:$2 sm:$0xff] }
 0x2b9   : > { %2599 = vst [vmem:[#allocation3 + $0x141] sm:$0xff] %v2527_v20  ;;  %v2459_v7 = vmul.f32 %v6372_v14, %v2410_v57  ;;  %v2413_v15 = vadd.f32 %v2412_v35, %v6367_v11  ;;  %v2682_v17 = vpack.c.bf16 %v2675_v50, %v2673_v1  ;;  %4823 = vmatpush3.bf16.msra.mxu0 %v5225_v24  ;;  %v2618_v48 = vld [vmem:[#allocation3 + $0x120] ss:$2 sm:$0xff]  ;;  %v2751_v0 = vld [vmem:[#allocation3 + $0xc1] ss:$2 sm:$0xff]  ;;  %v5228_v20 = vld [vmem:[#allocation9 + $0x220] sm:$0xff]  }
 0x2ba   : > { %v2500_v46 = vadd.f32 %v6378_v62, %v2461_v32  ;;  %v2462_v39 = vmul.f32 %v6372_v14, %v2421_v49  ;;  %v2658_v55 = vld [vmem:[#allocation3 + $0x122] ss:$2 sm:$0xff]  ;;  %v2701_v10 = vpack.c.bf16 %v2691_v5, %v2689_v22  ;;  %v2749_v13 = vld [vmem:[#allocation3 + $0x91] ss:$2 sm:$0xff]  ;;  %v2755_v32 = vld [vmem:[#allocation3 + $0x121] ss:$2 sm:$0xff] }
 0x2bb   : > { %v2498_v8 = vadd.f32 %v6378_v62, %v2459_v7  ;;  %v2460_v9 = vmul.f32 %v6372_v14, %v2413_v15  ;;  %3621 = vmatprep.mubr.bf16.mxu0 %v2682_v17  ;;  %v2715_v58 = vld [vmem:[#allocation3 + $0x10a] ss:$2 sm:$0xff]  ;;  %v2713_v4 = vld [vmem:[#allocation3 + $0xda] ss:$2 sm:$0xff]  ;;  %v2761_v40 = vpack.c.bf16 %v2751_v0, %v2749_v13  ;;  %v2693_v52 = vld [vmem:[#allocation3 + $0xd9] ss:$2 sm:$0xff] }
 0x2bc   : > { %v2532_v41 = vmax.f32 %v2500_v46, 0.0  ;;  %v2501_v28 = vadd.f32 %v6378_v62, %v2462_v39  ;;  %3622 = vmatmul.mubr.bf16.gmra.mrb[168].mxu0 %v2663_v56  ;;  %v2725_v51 = vld [vmem:[#allocation3 + $0x30] ss:$2 sm:$0xff]  ;;  %v2722_v27 = vpack.c.bf16 %v2715_v58, %v2713_v4  ;;  %v5227_v21 = vld [vmem:[#allocation9 + $0x218] sm:$0xff]   ;;  %v2753_v15 = vld [vmem:[#allocation3 + $0xf1] ss:$2 sm:$0xff] }
 0x2bd   : > { %v2530_v60 = vmax.f32 %v2498_v8, 0.0  ;;  %v2499_v11 = vadd.f32 %v6378_v62, %v2460_v9  ;;  %v2685_v62 = vld [vmem:[#allocation3 + $0x19] ss:$2 sm:$0xff]  ;;  %v2740_v24 = vpack.c.bf16 %v2727_v54, %v2725_v51  ;;  %v2731_v3 = vld [vmem:[#allocation3 + $0xc0] ss:$2 sm:$0xff]  ;;  %v2762_v43 = vpack.c.bf16 %v2755_v32, %v2753_v15 }
 0x2be   : > { %2604 = vst [vmem:[#allocation3 + $0x181] sm:$0xff] %v2532_v41  ;;  %v2533_v42 = vmax.f32 %v2501_v28, 0.0  ;;  %v2700_v29 = vpack.c.bf16 %v2687_v37, %v2685_v62  ;;  %v2729_v1 = vld [vmem:[#allocation3 + $0x90] ss:$2 sm:$0xff]  ;;  %v5230_v39 = vld [vmem:[#allocation9 + $0x230] sm:$0xff]  }
 0x2bf   : > { %2602 = vst [vmem:[#allocation3 + $0x169] sm:$0xff] %v2530_v60  ;;  %v2531_v23 = vmax.f32 %v2499_v11, 0.0  ;;  %v2640_v33 = vld [vmem:[#allocation3 + $0x151] ss:$2 sm:$0xff]  ;;  %v2620_v16 = vld [vmem:[#allocation3 + $0x150] ss:$2 sm:$0xff]  ;;  %v2741_v7 = vpack.c.bf16 %v2731_v3, %v2729_v1 }
 0x2c0   : > { %2605 = vst [vmem:[#allocation3 + $0x189] sm:$0xff] %v2533_v42  ;;  %v2644_v38 = vpack.c.bf16 %v2640_v33, %v2638_v6  ;;  %v2624_v14 = vpack.c.bf16 %v2620_v16, %v2618_v48  ;;  %v2660_v53 = vld [vmem:[#allocation3 + $0x152] ss:$2 sm:$0xff]  ;;  %v2767_v8 = vld [vmem:[#allocation3 + $0x62] ss:$2 sm:$0xff] }
 0x2c1   : > { %2603 = vst [vmem:[#allocation3 + $0x171] sm:$0xff] %v2531_v23  ;;  %v2677_v47 = vld [vmem:[#allocation3 + $0x138] ss:$2 sm:$0xff]  ;;  %v2664_v2 = vpack.c.bf16 %v2660_v53, %v2658_v55  ;;  %v2697_v9 = vld [vmem:[#allocation3 + $0x139] ss:$2 sm:$0xff]  ;;  %v5231_v48 = vld [vmem:[#allocation9 + $0x238] sm:$0xff]  }
 0x2c2   : > { %3564 = vmatprep.mubr.bf16.mxu1 %v2644_v38  ;;  %v2717_v35 = vld [vmem:[#allocation3 + $0x13a] ss:$2 sm:$0xff]  ;;  %v2757_v6 = vld [vmem:[#allocation3 + $0x151] ss:$2 sm:$0xff] }
 0x2c3   : > { %3565 = vmatmul.mubr.bf16.gmra.mrb[148].mxu1 %v2624_v14  ;;  %v5229_v17 = vld [vmem:[#allocation9 + $0x228] sm:$0xff]   ;;  %v2735_v56 = vld [vmem:[#allocation3 + $0x120] ss:$2 sm:$0xff] }
 0x2c4   : > { %3670 = vmatprep.mubr.bf16.mxu1 %v2720_v45  ;;  %v2733_v60 = vld [vmem:[#allocation3 + $0xf0] ss:$2 sm:$0xff] }
 0x2c5   : > { %v2765_v11 = vld [vmem:[#allocation3 + $0x32] ss:$2 sm:$0xff]  ;;  %v2742_v61 = vpack.c.bf16 %v2735_v56, %v2733_v60  ;;  %v2771_v33 = vld [vmem:[#allocation3 + $0xc2] ss:$2 sm:$0xff] }
 0x2c6   : > { %v2780_v42 = vpack.c.bf16 %v2767_v8, %v2765_v11  ;;  %v2775_v38 = vld [vmem:[#allocation3 + $0x122] ss:$2 sm:$0xff]  ;;  %v2769_v14 = vld [vmem:[#allocation3 + $0x92] ss:$2 sm:$0xff] }
 0x2c7   : > { %v2759_v41 = vld [vmem:[#allocation3 + $0x181] ss:$2 sm:$0xff]  ;;  %v2739_v16 = vld [vmem:[#allocation3 + $0x180] ss:$2 sm:$0xff]  ;;  %v2737_v19 = vld [vmem:[#allocation3 + $0x150] ss:$2 sm:$0xff]  ;;  %v2781_v45 = vpack.c.bf16 %v2771_v33, %v2769_v14 }
 0x2c8   : > { %v2679_v34 = vld [vmem:[#allocation3 + $0x168] ss:$2 sm:$0xff]  ;;  %v2699_v46 = vld [vmem:[#allocation3 + $0x169] ss:$2 sm:$0xff]  ;;  %v2763_v23 = vpack.c.bf16 %v2759_v41, %v2757_v6  ;;  %v2743_v37 = vpack.c.bf16 %v2739_v16, %v2737_v19 }
 0x2c9   : > { %v2683_v59 = vpack.c.bf16 %v2679_v34, %v2677_v47  ;;  %v2719_v57 = vld [vmem:[#allocation3 + $0x16a] ss:$2 sm:$0xff]  ;;  %v2703_v28 = vpack.c.bf16 %v2699_v46, %v2697_v9 }
 0x2ca   : > { %v2723_v50 = vpack.c.bf16 %v2719_v57, %v2717_v35  ;;  %v2773_v62 = vld [vmem:[#allocation3 + $0xf2] ss:$2 sm:$0xff]  ;;  %v2779_v26 = vld [vmem:[#allocation3 + $0x182] ss:$2 sm:$0xff] }
 0x2cb   : > { %3629 = vmatprep.mubr.bf16.mxu0 %v2683_v59  ;;  %3671 = vmatmul.mubr.bf16.vlgmr.msra.gmra.mrb[152].mxu1 %v2700_v29  ;;  %v2782_v53 = vpack.c.bf16 %v2775_v38, %v2773_v62  ;;  %v2777_v47 = vld [vmem:[#allocation3 + $0x152] ss:$2 sm:$0xff] }
 0x2cc   : > { %3630 = vmatmul.mubr.bf16.gmra.mrb[172].mxu0 %v2664_v2  ;;  %3678 = vmatprep.mubr.bf16.mxu1 %v2721_v63  ;;  %v2783_v34 = vpack.c.bf16 %v2779_v26, %v2777_v47 }
 0x2cd   : > { %4933 = vmatpush3.bf16.msra.mxu1 %v6455_v25  ;;  %3735 = vmatprep.mubr.bf16.mxu0 %v2760_v30  ;;  %v2695_v25 = vld [vmem:[#allocation3 + $0x109] ss:$2 sm:$0xff] }
 0x2ce   : > { %4934 = vmatprep.subr.bf16.mxu1 %v5223_v18  ;;  %v2702_v49 = vpack.c.bf16 %v2695_v25, %v2693_v52 }
 0x2d1   : > { %4935 = vmatpush3.bf16.msra.mxu1 %v5223_v18 }
 0x2d2   : > { %4936 = vmatprep.subr.bf16.mxu1 %v5226_v36 }
 0x2d3   : > { %3679 = vmatmul.mubr.bf16.gmra.mrb[156].mxu1 %v2701_v10 }
 0x2d4   : > { %3686 = vmatprep.mubr.bf16.mxu1 %v2722_v27  ;;  %3736 = vmatmul.mubr.bf16.vlgmr.msra.gmra.mrb[176].mxu0 %v2740_v24 }
 0x2d5   : > { %4937 = vmatpush3.bf16.msra.mxu1 %v5226_v36  ;;  %3743 = vmatprep.mubr.bf16.mxu0 %v2761_v40 }
 0x2d6   : > { %4938 = vmatprep.subr.bf16.mxu1 %v5227_v21 }
 0x2d9   : > { %4939 = vmatpush3.bf16.msra.mxu1 %v5227_v21 }
 0x2da   : > { %4940 = vmatprep.subr.bf16.mxu1 %v5228_v20 }
 0x2db   : > { %3687 = vmatmul.mubr.bf16.gmra.mrb[160].mxu1 %v2702_v49 }
 0x2dc   : > { %3694 = vmatprep.mubr.bf16.mxu1 %v2723_v50  ;;  %3744 = vmatmul.mubr.bf16.gmra.mrb[180].mxu0 %v2741_v7 }
 0x2dd   : > { %4941 = vmatpush3.bf16.msra.mxu1 %v5228_v20  ;;  %3751 = vmatprep.mubr.bf16.mxu0 %v2762_v43 }
 0x2de   : > { %4942 = vmatprep.subr.bf16.mxu1 %v5229_v17 }
 0x2e1   : > { %4943 = vmatpush3.bf16.msra.mxu1 %v5229_v17 }
 0x2e2   : > { %4944 = vmatprep.subr.bf16.mxu1 %v5230_v39 }
 0x2e3   : > { %3695 = vmatmul.mubr.bf16.gmra.mrb[164].mxu1 %v2703_v28 }
 0x2e4   : > { %3752 = vmatmul.mubr.bf16.gmra.mrb[184].mxu0 %v2742_v61  ;;  %4948 = vmatprep.mubr.bf16.mxu1 %v2780_v42 }
 0x2e5   : > { %4945 = vmatpush3.bf16.msra.mxu1 %v5230_v39  ;;  %3759 = vmatprep.mubr.bf16.mxu0 %v2763_v23 }
 0x2e6   : > { %4946 = vmatprep.subr.bf16.mxu1 %v5231_v48 }
 0x2e9   : > { %4947 = vmatpush3.bf16.msra.mxu1 %v5231_v48 }
 0x2ec   : > { %4949 = vmatmul.mubr.bf16.vlgmr.msra.gmra.mrb[128].mxu1 %v2781_v45  ;;  %3760 = vmatmul.mubr.bf16.gmra.mrb[188].mxu0 %v2743_v37 }
 0x2ed   : > { %4952 = vmatprep.mubr.bf16.mxu1 %v2782_v53 }
 0x2f4   : > { %4953 = vmatmul.mubr.bf16.gmra.mrb[132].mxu1 %v2783_v34 }
 0x366   : > { %v4704_v12 = vpop.f32.mrb[136].mxu1 }
 0x367   : > { %v4705_v59 = vpop.f32.mrb[137].mxu1 }
 0x368   : > { %v4706_v29 = vadd.f32 %v4705_v59, %v4704_v12  ;;  %v4707_v55 = vpop.f32.mrb[138].mxu1 }
 0x369   : > { %v4708_v31 = vpop.f32.mrb[139].mxu1 }
 0x36a   : > { %v4709_v2 = vadd.f32 %v4708_v31, %v4707_v55 }
 0x36f   : > { %v4744_v63 = vpop.f32.mrb[160].mxu0 }
 0x370   : > { %v4745_v44 = vpop.f32.mrb[161].mxu0 }
 0x371   : > { %v4746_v18 = vadd.f32 %v4745_v44, %v4744_v63  ;;  %v4747_v30 = vpop.f32.mrb[162].mxu0 }
 0x372   : > { %v4748_v5 = vpop.f32.mrb[163].mxu0 }
 0x373   : > { %v4960_v36 = vadd.f32 %v4746_v18, %v4706_v29  ;;  %v4749_v58 = vadd.f32 %v4748_v5, %v4747_v30 }
 0x375   : > { %v4968_v54 = vadd.f32 %v4749_v58, %v4709_v2 }
 0x376   : > { %v4710_v22 = vpop.f32.mrb[140].mxu1 }
 0x377   : > { %v4711_v0 = vpop.f32.mrb[141].mxu1 }
 0x378   : > { %v4712_v10 = vadd.f32 %v4711_v0, %v4710_v22  ;;  %v4713_v4 = vpop.f32.mrb[142].mxu1 }
 0x379   : > { %v4714_v51 = vpop.f32.mrb[143].mxu1 }
 0x37a   : > { %v4715_v27 = vadd.f32 %v4714_v51, %v4713_v4 }
 0x37f   : > { %v4750_v24 = vpop.f32.mrb[164].mxu0 }
 0x380   : > { %v4751_v13 = vpop.f32.mrb[165].mxu0 }
 0x381   : > { %v4752_v21 = vadd.f32 %v4751_v13, %v4750_v24  ;;  %v4753_v40 = vpop.f32.mrb[166].mxu0 }
 0x382   : > { %v4754_v25 = vpop.f32.mrb[167].mxu0 }
 0x383   : > { %v4956_v20 = vadd.f32 %v4752_v21, %v4712_v10  ;;  %v4755_v57 = vadd.f32 %v4754_v25, %v4753_v40 }
 0x385   : > { %v4964_v3 = vadd.f32 %v4755_v57, %v4715_v27 }
 0x386   : > { %v4716_v52 = vpop.f32.mrb[144].mxu1 }
 0x387   : > { %v4717_v32 = vpop.f32.mrb[145].mxu1 }
 0x388   : > { %v4718_v49 = vadd.f32 %v4717_v32, %v4716_v52  ;;  %v4719_v35 = vpop.f32.mrb[146].mxu1 }
 0x389   : > { %v4720_v1 = vpop.f32.mrb[147].mxu1 }
 0x38a   : > { %v4721_v50 = vadd.f32 %v4720_v1, %v4719_v35 }
 0x38f   : > { %v4756_v7 = vpop.f32.mrb[168].mxu0 }
 0x390   : > { %v4757_v15 = vpop.f32.mrb[169].mxu0 }
 0x391   : > { %v4758_v17 = vadd.f32 %v4757_v15, %v4756_v7  ;;  %v4759_v43 = vpop.f32.mrb[170].mxu0 }
 0x392   : > { %v4760_v46 = vpop.f32.mrb[171].mxu0 }
 0x393   : > { %v4976_v39 = vadd.f32 %v4758_v17, %v4718_v49  ;;  %v4761_v56 = vadd.f32 %v4760_v46, %v4759_v43 }
 0x395   : > { %v4984_v8 = vadd.f32 %v4761_v56, %v4721_v50 }
 0x396   : > { %v4722_v9 = vpop.f32.mrb[148].mxu1 }
 0x397   : > { %v4723_v41 = vpop.f32.mrb[149].mxu1 }
 0x398   : > { %v4724_v28 = vadd.f32 %v4723_v41, %v4722_v9  ;;  %v4725_v60 = vpop.f32.mrb[150].mxu1 }
 0x399   : > { %v4726_v11 = vpop.f32.mrb[151].mxu1 }
 0x39a   : > { %v4727_v61 = vadd.f32 %v4726_v11, %v4725_v60 }
 0x39e   : > { %v4784_v42 = vpop.f32.mrb[152].mxu1 }
 0x39f   : > { %v4762_v6 = vpop.f32.mrb[172].mxu0  ;;  %v4785_v48 = vpop.f32.mrb[153].mxu1 }
 0x3a0   : > { %v4786_v23 = vadd.f32 %v4785_v48, %v4784_v42  ;;  %v4763_v33 = vpop.f32.mrb[173].mxu0  ;;  %v4787_v16 = vpop.f32.mrb[154].mxu1 }
 0x3a1   : > { %v4764_v38 = vadd.f32 %v4763_v33, %v4762_v6  ;;  %v4765_v14 = vpop.f32.mrb[174].mxu0  ;;  %v4788_v19 = vpop.f32.mrb[155].mxu1  ;;  %v4196_v6 = vld [vmem:[%s6544_s7] ss:$0 sm:$0xff] }
 0x3a2   : > { %v4961_v45 = vadd.f32 %v4960_v36, %v4786_v23  ;;  %v4789_v37 = vadd.f32 %v4788_v19, %v4787_v16  ;;  %v4766_v62 = vpop.f32.mrb[175].mxu0 }
 0x3a3   : > { %v4972_v53 = vadd.f32 %v4764_v38, %v4724_v28  ;;  %v4767_v26 = vadd.f32 %v4766_v62, %v4765_v14 }
 0x3a4   : > { %v4969_v47 = vadd.f32 %v4968_v54, %v4789_v37 }
 0x3a5   : > { %v4980_v34 = vadd.f32 %v4767_v26, %v4727_v61 }
 0x3a6   : > { %v4790_v12 = vpop.f32.mrb[156].mxu1 }
 0x3a7   : > { %v4791_v59 = vpop.f32.mrb[157].mxu1  ;;  %v4824_v29 = vpop.f32.mrb[176].mxu0 }
 0x3a8   : > { %v4792_v55 = vadd.f32 %v4791_v59, %v4790_v12  ;;  %v4793_v31 = vpop.f32.mrb[158].mxu1  ;;  %v4825_v2 = vpop.f32.mrb[177].mxu0 }
 0x3a9   : > { %v4826_v63 = vadd.f32 %v4825_v2, %v4824_v29  ;;  %v4794_v44 = vpop.f32.mrb[159].mxu1  ;;  %v4827_v18 = vpop.f32.mrb[178].mxu0 }
 0x3aa   : > { %v4957_v30 = vadd.f32 %v4956_v20, %v4792_v55  ;;  %v4795_v5 = vadd.f32 %v4794_v44, %v4793_v31  ;;  %v4828_v58 = vpop.f32.mrb[179].mxu0 }
 0x3ab   : > { %v4829_v22 = vadd.f32 %v4828_v58, %v4827_v18  ;;  %v4962_v36 = vadd.f32 %v4961_v45, %v4826_v63 }
 0x3ac   : > { %v4965_v0 = vadd.f32 %v4964_v3, %v4795_v5 }
 0x3ad   : > { %v4970_v10 = vadd.f32 %v4969_v47, %v4829_v22 }
 0x3ae   : > { %v4796_v4 = vpop.f32.mrb[160].mxu1 }
 0x3af   : > { %v4797_v51 = vpop.f32.mrb[161].mxu1  ;;  %v4830_v54 = vpop.f32.mrb[180].mxu0 }
 0x3b0   : > { %v4798_v27 = vadd.f32 %v4797_v51, %v4796_v4  ;;  %v4799_v24 = vpop.f32.mrb[162].mxu1  ;;  %v4831_v13 = vpop.f32.mrb[181].mxu0 }
 0x3b1   : > { %v4832_v21 = vadd.f32 %v4831_v13, %v4830_v54  ;;  %v4800_v40 = vpop.f32.mrb[163].mxu1  ;;  %v4833_v25 = vpop.f32.mrb[182].mxu0 }
 0x3b2   : > { %v4977_v57 = vadd.f32 %v4976_v39, %v4798_v27  ;;  %v4801_v52 = vadd.f32 %v4800_v40, %v4799_v24  ;;  %v4834_v32 = vpop.f32.mrb[183].mxu0 }
 0x3b3   : > { %v4835_v49 = vadd.f32 %v4834_v32, %v4833_v25  ;;  %v4958_v20 = vadd.f32 %v4957_v30, %v4832_v21 }
 0x3b4   : > { %v4985_v35 = vadd.f32 %v4984_v8, %v4801_v52 }
 0x3b5   : > { %v4966_v1 = vadd.f32 %v4965_v0, %v4835_v49 }
 0x3b6   : > { %v4802_v50 = vpop.f32.mrb[164].mxu1 }
 0x3b7   : > { %v4803_v3 = vpop.f32.mrb[165].mxu1  ;;  %v4836_v7 = vpop.f32.mrb[184].mxu0 }
 0x3b8   : > { %v4804_v15 = vadd.f32 %v4803_v3, %v4802_v50  ;;  %v4805_v17 = vpop.f32.mrb[166].mxu1  ;;  %v4837_v43 = vpop.f32.mrb[185].mxu0 }
 0x3b9   : > { %v4838_v46 = vadd.f32 %v4837_v43, %v4836_v7  ;;  %v4806_v56 = vpop.f32.mrb[167].mxu1  ;;  %v4839_v9 = vpop.f32.mrb[186].mxu0 }
 0x3ba   : > { %v4973_v41 = vadd.f32 %v4972_v53, %v4804_v15  ;;  %v4807_v28 = vadd.f32 %v4806_v56, %v4805_v17  ;;  %v4840_v60 = vpop.f32.mrb[187].mxu0 }
 0x3bb   : > { %v4841_v39 = vadd.f32 %v4840_v60, %v4839_v9  ;;  %v4978_v11 = vadd.f32 %v4977_v57, %v4838_v46 }
 0x3bc   : > { %v4981_v61 = vadd.f32 %v4980_v34, %v4807_v28 }
 0x3bd   : > { %v4986_v42 = vadd.f32 %v4985_v35, %v4841_v39 }
 0x3bf   : > { %v4950_v8 = vpop.f32.mrb[128].mxu1  ;;  %v4842_v48 = vpop.f32.mrb[188].mxu0 }
 0x3c0   : > { %v4959_v23 = vadd.f32 %v4958_v20, %v4950_v8  ;;  %v3802_v33 = vpop.f32.mrb[129].mxu1  ;;  %v4843_v16 = vpop.f32.mrb[189].mxu0 }
 0x3c1   : > { %v4963_v38 = vadd.f32 %v4962_v36, %v3802_v33  ;;  %v4844_v14 = vadd.f32 %v4843_v16, %v4842_v48  ;;  %v4951_v19 = vpop.f32.mrb[130].mxu1  ;;  %v4845_v45 = vpop.f32.mrb[190].mxu0 }
 0x3c2   : > { %v3842_v37 = vadd.f32 %v4959_v23, %v4196_v6  ;;  %v4967_v62 = vadd.f32 %v4966_v1, %v4951_v19  ;;  %v3805_v53 = vpop.f32.mrb[131].mxu1  ;;  %v4846_v26 = vpop.f32.mrb[191].mxu0 }
 0x3c3   : > { %v3840_v47 = vadd.f32 %v4963_v38, %v4196_v6  ;;  %v4971_v34 = vadd.f32 %v4970_v10, %v3805_v53  ;;  %v4847_v12 = vadd.f32 %v4846_v26, %v4845_v45  ;;  %v4974_v59 = vadd.f32 %v4973_v41, %v4844_v14 }
 0x3c4   : > { %3850 = vst [vmem:[%s394_s24 + $0x10] sm:$0xff] %v3842_v37  ;;  %v3843_v29 = vadd.f32 %v4967_v62, %v4196_v6 }
 0x3c5   : > { %3848 = vst [vmem:[%s394_s24] sm:$0xff] %v3840_v47  ;;  %v3841_v55 = vadd.f32 %v4971_v34, %v4196_v6  ;;  %v4982_v31 = vadd.f32 %v4981_v61, %v4847_v12 }
 0x3c6   : > { %3851 = vst [vmem:[%s394_s24 + $0x18] sm:$0xff] %v3843_v29 }
 0x3c7   : > { %3849 = vst [vmem:[%s394_s24 + $0x8] sm:$0xff] %v3841_v55  ;;  %v4954_v2 = vpop.f32.mrb[132].mxu1 }
 0x3c8   : > { %v4975_v63 = vadd.f32 %v4974_v59, %v4954_v2  ;;  %v3818_v44 = vpop.f32.mrb[133].mxu1 }
 0x3c9   : > { %v4979_v18 = vadd.f32 %v4978_v11, %v3818_v44  ;;  %v4955_v30 = vpop.f32.mrb[134].mxu1 }
 0x3ca   : > { %v3846_v5 = vadd.f32 %v4975_v63, %v4196_v6  ;;  %v4983_v58 = vadd.f32 %v4982_v31, %v4955_v30  ;;  %v3821_v22 = vpop.f32.mrb[135].mxu1 }
 0x3cb   : > { %v3844_v36 = vadd.f32 %v4979_v18, %v4196_v6  ;;  %v4987_v0 = vadd.f32 %v4986_v42, %v3821_v22 }
 0x3cc   : > { %3854 = vst [vmem:[%s394_s24 + $0x30] sm:$0xff] %v3846_v5  ;;  %v3847_v10 = vadd.f32 %v4983_v58, %v4196_v6 }
 0x3cd   : > { %3852 = vst [vmem:[%s394_s24 + $0x20] sm:$0xff] %v3844_v36  ;;  %v3845_v4 = vadd.f32 %v4987_v0, %v4196_v6 }
 0x3ce   : > { %3855 = vst [vmem:[%s394_s24 + $0x38] sm:$0xff] %v3847_v10 }
 0x3cf   : > { %3853 = vst [vmem:[%s394_s24 + $0x28] sm:$0xff] %v3845_v4 }
 0x3d0   : > { %5360 = shalt.err (!%p5357_p4)
}
 0x3d1   : > { %s5361_s20 = scalar_lea.hbm %s6493_s23, 1024  ;;  %s5365_s24 = scalar_lea.hbm %s6570_s18, 2048 }
 0x3d2   : > { %p5362_p9 = scmp.ne.s32.totalorder %s6493_s23, %s5361_s20  ;;  %p5366_p8 = scmp.lt.u32.totalorder %s6493_s23, %s6570_s18 }
 0x3d3   : > { %p5367_p13 = scmp.lt.u32.totalorder %s5365_s24, %s5361_s20  ;;  %p5369_p10 = scmp.lt.u32.totalorder %s5361_s20, %s6493_s23 }
 0x3d4   : > { %p5363_p0 = pnand %p5362_p9, %p5640_p5 }
 0x3d5   : > { %p5368_p6 = por %p5367_p13, %p5366_p8 }
 0x3d6   : > { %p5364_p11 = pneg %p5363_p0 }
 0x3d7   : > { %p5370_p3 = por %p5369_p10, %p5368_p6 }
 0x3d9   : > { %p5371_p7 = pnand %p5370_p3, %p5364_p11 }
 0x3db   : > { %5374 = shalt.err (!%p5371_p7)
}
 0x3dc   : > { %s5434_s17 = smov 128   ;;  %s5435_s19 = smov 8  }
 0x3dd   : > { %5010 = dma.vmem_to_hbm [thread:$0]  (%p5640_p5), %s6488_s25, 1024, %s6493_s23, %s3857_s13, %s5434_s17, %s5434_s17, %s5435_s19  }
 0x3de PF: > { %s6571_s22 = sld [smem:[#allocation17_spill]]  ;;  %s6572_s26 = sld [smem:[#allocation18_spill]] }
 0x3df   : > { %p6574_p1 = scmp.ge.s32.totalorder %s5421_s12, 2 }
 0x3e4   : > { %s3885_s21 = sand.u32 1, %s6571_s22   ;;  %p6573_p12 = scmp.ne.s32.totalorder %s6572_s26, 0 }
 0x3e5   : > { %s3886_s20 = scalar_lea.sflag [#allocation6], %s3885_s21 }
 0x3e6   : > { %p5027_p2 = pnand %p6574_p1, %p6573_p12 }
 0x3e8   : > { %5404 = dma.done.wait (!%p5027_p2), %s3886_s20, 1024  }
 0x3e9   : > { %5406 = vsyncadd (!%p5027_p2), %s3886_s20, 4294966272  ;;  %p24_p4 = scmp.ge.s32.totalorder %s5626_s14, 4   ;;  %s6575_s30 = smov %s5413_s10 }
 0x3ea   : > { %s6576_s10 = smov %s5417_s11  ;;  %s6577_s11 = smov %s5636_s16 }
 0x3eb   : > { %s6578_s12 = smov %s5626_s14  ;;  %26 = sbr.rel (!%p24_p4) target bundleno = 9 (0x9), region = 195 }
 0x3f2   :  { %3891 = vsyncpa [#allocation5], 1 }
 0x3f3   :  { %3893 = vsyncpa [#allocation5 + $0x1], 1 }
 0x3f4   :  { %3894 = vsyncpa [#allocation8], 1 }
 0x3f5   :  { %3895 = vsyncpa [#allocation11], 1 }
 0x3f6   :  { %3896 = vsyncpa [#allocation6], 1 }
 0x3f7   :  { %3898 = vsyncpa [#allocation6 + $0x1], 1 }

</bundles_post_ra>
